<compile_context>
chip_gen: v5e
topology: v5e:2x2
jax: 0.10.0
libtpu: 0.0.40
codegen_flags: <defaults>
</compile_context>

<pallas_src>
import functools

import jax
import jax.numpy as jnp
from jax import lax
from jax.experimental import pallas as pl
from jax.experimental.pallas import tpu as pltpu


def _meta_sgd_kernel(labels_ref, sup_ref, qry_ref, w_ref, b_ref, out_ref, *,
                     inner_steps, inner_lr):
  """Adapt a block of T tasks entirely in VMEM, then project the queries.

  Layout: class axis on sublanes, sample axis on lanes ([T, C, N]).

  labels_ref: [T, 1, Ns]  int32 support labels (lane-major)
  sup_ref:    [T, Ns, D]  bf16 support features
  qry_ref:    [T, Nq, D]  bf16 query features
  w_ref:      [T, C,  D]  f32 classifier weight (per task)
  b_ref:      [T, C,  1]  f32 classifier bias   (per task)
  out_ref:    [T, C, Nq]  f32 query logits (transposed back in the wrapper)
  """
  t, ns, _ = sup_ref.shape
  c = w_ref.shape[1]

  sup = sup_ref[...]                                        # [T, Ns, D] bf16

  # One-hot in [T, C, Ns]: labels ([T,1,Ns], Ns on lanes) broadcast along the
  # class/sublane axis against an iota -- no relayout of the labels needed.
  onehot = (labels_ref[...] ==
            lax.broadcasted_iota(jnp.int32, (t, c, ns), 1)).astype(jnp.float32)

  scale = inner_lr / ns                                     # fold lr and 1/Ns

  def inner_step(_, carry):
    w, b = carry                                            # f32 fast weights
    # T independent [C,D]x[D,Ns] matmuls per serial inner step fill the MXU
    # pipeline; bf16 operands, f32 accumulation.
    logits = jnp.einsum('tcd,tnd->tcn', w.astype(jnp.bfloat16), sup,
                        preferred_element_type=jnp.float32) + b   # [T, C, Ns]
    m = jnp.max(logits, axis=1, keepdims=True)
    e = jnp.exp(logits - m)
    p = e * pl.reciprocal(jnp.sum(e, axis=1, keepdims=True), approx=False)
    diff = (p - onehot) * scale                             # [T, C, Ns]
    w = w - jnp.einsum('tcn,tnd->tcd', diff.astype(jnp.bfloat16), sup,
                       preferred_element_type=jnp.float32)  # dW (pre-scaled)
    b = b - jnp.sum(diff, axis=2, keepdims=True)            # db (pre-scaled)
    return w, b

  # Fast weights carried as loop values (no scratch st/ld on the serial path);
  # unroll=True keeps LLO scheduler visibility for the short fixed trip count.
  w, b = lax.fori_loop(0, inner_steps, inner_step,
                       (w_ref[...], b_ref[...]), unroll=True)

  q_logits = jnp.einsum('tcd,tqd->tcq', w.astype(jnp.bfloat16), qry_ref[...],
                        preferred_element_type=jnp.float32) + b   # [T, C, Nq]
  out_ref[...] = q_logits.astype(out_ref.dtype)


def meta_sgd_forward(support_features, support_labels, query_features,
                     weight, bias, *, inner_steps=5, inner_lr=0.01,
                     tasks_per_block=None):
  """Task-batched wrapper.

  support_features: [B, Ns, D] (or [Ns, D] for a single task)
  support_labels:   [B, Ns]    int
  query_features:   [B, Nq, D]
  weight:           [C, D] shared init (or [B, C, D] per task)
  bias:             [C]        (or [B, C])
  returns           [B, Nq, C] query logits
  """
  single_task = support_features.ndim == 2
  if single_task:
    support_features = support_features[None]
    support_labels = support_labels[None]
    query_features = query_features[None]

  num_tasks, ns, d = support_features.shape
  nq = query_features.shape[1]

  if weight.ndim == 2:
    weight = jnp.broadcast_to(weight[None], (num_tasks,) + weight.shape)
  if bias.ndim == 1:
    bias = jnp.broadcast_to(bias[None], (num_tasks,) + bias.shape)
  c = weight.shape[-2]

  # Blocking: <=32 tasks per grid step; an even number of blocks keeps v7x's
  # two TensorCores balanced ("parallel" axis) and costs at most one extra
  # ~0.35us grid step on single-TC chips (v5e/v6e).  Override with
  # tasks_per_block=num_tasks to collapse to one block on 1-TC chips.
  if tasks_per_block is None:
    num_blocks = max(1, (num_tasks + 31) // 32)
    if num_tasks > 1 and num_blocks % 2 == 1:
      num_blocks += 1
    t_blk = (num_tasks + num_blocks - 1) // num_blocks
  else:
    t_blk = max(1, min(int(tasks_per_block), num_tasks))
    num_blocks = (num_tasks + t_blk - 1) // t_blk
  padded = t_blk * num_blocks
  pad = padded - num_tasks

  # bf16 feature operands halve the dominant HBM->VMEM DMA and hit the MXU's
  # native bf16 path; fast weights stay f32 (cast to bf16 at matmul inputs).
  labels = support_labels.astype(jnp.int32).reshape(num_tasks, 1, ns)
  sup = support_features.astype(jnp.bfloat16)
  qry = query_features.astype(jnp.bfloat16)
  w = weight.astype(jnp.float32)
  b3 = bias.reshape(num_tasks, c, 1).astype(jnp.float32)

  if pad:
    def pad0(x):
      return jnp.pad(x, ((0, pad),) + ((0, 0),) * (x.ndim - 1))
    labels, sup, qry, w, b3 = map(pad0, (labels, sup, qry, w, b3))

  kernel = functools.partial(_meta_sgd_kernel,
                             inner_steps=inner_steps, inner_lr=inner_lr)

  grid_spec = pltpu.PrefetchScalarGridSpec(
      num_scalar_prefetch=0,
      grid=(num_blocks,),
      in_specs=[
          pl.BlockSpec((t_blk, 1, ns), lambda i: (i, 0, 0)),   # labels
          pl.BlockSpec((t_blk, ns, d), lambda i: (i, 0, 0)),   # support (bf16)
          pl.BlockSpec((t_blk, nq, d), lambda i: (i, 0, 0)),   # query   (bf16)
          pl.BlockSpec((t_blk, c, d), lambda i: (i, 0, 0)),    # W
          pl.BlockSpec((t_blk, c, 1), lambda i: (i, 0, 0)),    # b
      ],
      out_specs=pl.BlockSpec((t_blk, c, nq), lambda i: (i, 0, 0)),
  )

  out = pl.pallas_call(
      kernel,
      out_shape=jax.ShapeDtypeStruct((padded, c, nq), jnp.float32),
      grid_spec=grid_spec,
      compiler_params=pltpu.CompilerParams(
          dimension_semantics=("parallel",),        # tasks are independent
          vmem_limit_bytes=32 * 1024 * 1024,        # ~0.5 MiB used; v7x-safe
      ),
  )(labels, sup, qry, w, b3)

  out = jnp.swapaxes(out, 1, 2)[:num_tasks]         # [B, Nq, C]
  if single_task:
    out = out[0]
  return out


def meta_sgd_reference(support_features, support_labels, query_features,
                       weight, bias, *, inner_steps=5, inner_lr=0.01):
  """Pure-JAX single-task reference (same analytic grads as autograd)."""
  ns = support_features.shape[0]
  c = weight.shape[0]
  onehot = jax.nn.one_hot(support_labels, c, dtype=jnp.float32)
  w, b = weight, bias
  for _ in range(inner_steps):
    logits = support_features @ w.T + b
    p = jax.nn.softmax(logits, axis=-1)
    diff = (p - onehot) / ns
    w = w - inner_lr * (diff.T @ support_features)
    b = b - inner_lr * jnp.sum(diff, axis=0)
  return query_features @ w.T + b


if __name__ == "__main__":
  # Small shapes consistent with the module: 5-way, 25 support / 15 query
  # samples per task, feature_dim=128, with a batch of 20 meta-tasks.
  feature_dim = 128
  n_way = 5
  inner_steps = 5
  inner_lr = 0.01
  n_support = 25
  n_query = 15
  num_tasks = 20          # auto-blocking -> 2 balanced blocks of 10 tasks

  key = jax.random.PRNGKey(0)
  k_sup, k_qry, k_lab, k_w, k_b = jax.random.split(key, 5)

  support_features = jax.random.normal(
      k_sup, (num_tasks, n_support, feature_dim), dtype=jnp.float32)
  query_features = jax.random.normal(
      k_qry, (num_tasks, n_query, feature_dim), dtype=jnp.float32)
  support_labels = jax.random.randint(
      k_lab, (num_tasks, n_support), 0, n_way, dtype=jnp.int32)

  # nn.Linear-style init: U(-1/sqrt(D), 1/sqrt(D)); shared across tasks.
  bound = 1.0 / (feature_dim ** 0.5)
  weight = jax.random.uniform(k_w, (n_way, feature_dim), jnp.float32,
                              -bound, bound)
  bias = jax.random.uniform(k_b, (n_way,), jnp.float32, -bound, bound)

  out = meta_sgd_forward(support_features, support_labels, query_features,
                         weight, bias, inner_steps=inner_steps,
                         inner_lr=inner_lr)
  out = jax.block_until_ready(out)

  ref_fn = functools.partial(meta_sgd_reference, inner_steps=inner_steps,
                             inner_lr=inner_lr)
  ref = jax.vmap(lambda s, l, q: ref_fn(s, l, q, weight, bias))(
      support_features, support_labels, query_features)

  assert out.shape == (num_tasks, n_query, n_way)
  assert jnp.allclose(out, ref, rtol=1e-2, atol=1e-2)

  print("KERNEL_OK")
</pallas_src>

<mosaic_0001>
module attributes {stable_mosaic.version = 11 : i64} {
  func.func @_meta_sgd_kernel(%arg0: i32, %arg1: memref<10x1x25xi32, #tpu.memory_space<vmem>>, %arg2: memref<10x25x128xbf16, #tpu.memory_space<vmem>>, %arg3: memref<10x15x128xbf16, #tpu.memory_space<vmem>>, %arg4: memref<10x5x128xf32, #tpu.memory_space<vmem>>, %arg5: memref<10x5x1xf32, #tpu.memory_space<vmem>>, %arg6: memref<10x5x15xf32, #tpu.memory_space<vmem>>) attributes {dimension_semantics = [#tpu.dimension_semantics<parallel>], iteration_bounds = array<i64: 2>, scalar_prefetch = 0 : i64, scratch_operands = 0 : i64, tpu.core_type = #tpu.core_type<tc>, window_params = [{transform_indices = @transform_0, window_bounds = array<i64: 10, 1, 25>}, {transform_indices = @transform_1, window_bounds = array<i64: 10, 25, 128>}, {transform_indices = @transform_2, window_bounds = array<i64: 10, 15, 128>}, {transform_indices = @transform_3, window_bounds = array<i64: 10, 5, 128>}, {transform_indices = @transform_4, window_bounds = array<i64: 10, 5, 1>}, {transform_indices = @transform_5, window_bounds = array<i64: 10, 5, 15>}]} {
    %c0 = arith.constant 0 : index
    %c0_0 = arith.constant 0 : index
    %c0_1 = arith.constant 0 : index
    %0 = vector.load %arg2[%c0, %c0_0, %c0_1] : memref<10x25x128xbf16, #tpu.memory_space<vmem>>, vector<10x25x128xbf16>
    %c0_2 = arith.constant 0 : index
    %c0_3 = arith.constant 0 : index
    %c0_4 = arith.constant 0 : index
    %1 = vector.load %arg1[%c0_2, %c0_3, %c0_4] : memref<10x1x25xi32, #tpu.memory_space<vmem>>, vector<10x1x25xi32>
    %2 = tpu.iota {dimensions = array<i32: 1>} : vector<10x5x25xi32>
    %3 = vector.broadcast %1 : vector<10x1x25xi32> to vector<10x5x25xi32>
    %4 = arith.cmpi eq, %3, %2 : vector<10x5x25xi32>
    %5 = arith.extui %4 : vector<10x5x25xi1> to vector<10x5x25xi32>
    %6 = arith.sitofp %5 : vector<10x5x25xi32> to vector<10x5x25xf32>
    %c0_5 = arith.constant 0 : index
    %c0_6 = arith.constant 0 : index
    %c0_7 = arith.constant 0 : index
    %7 = vector.load %arg4[%c0_5, %c0_6, %c0_7] : memref<10x5x128xf32, #tpu.memory_space<vmem>>, vector<10x5x128xf32>
    %c0_8 = arith.constant 0 : index
    %c0_9 = arith.constant 0 : index
    %c0_10 = arith.constant 0 : index
    %8 = vector.load %arg5[%c0_8, %c0_9, %c0_10] : memref<10x5x1xf32, #tpu.memory_space<vmem>>, vector<10x5x1xf32>
    %c0_i32 = arith.constant 0 : i32
    %9 = arith.truncf %7 : vector<10x5x128xf32> to vector<10x5x128xbf16>
    "tpu.trace_start"() <{level = 10 : i32, message = "tcd,tnd->tcn"}> : () -> ()
    %cst = arith.constant dense<0.000000e+00> : vector<10x5x25xf32>
    %10 = tpu.matmul %9, %0, %cst {dimension_numbers = #tpu.dot_dimension_numbers<[2], [2], [1], [1], [0, 0, 0, 1, 1, 1], [0], [0]>} : vector<10x5x128xbf16>, vector<10x25x128xbf16>, vector<10x5x25xf32> -> vector<10x5x25xf32>
    "tpu.trace_stop"() : () -> ()
    %11 = vector.broadcast %8 : vector<10x5x1xf32> to vector<10x5x25xf32>
    %12 = arith.addf %10, %11 : vector<10x5x25xf32>
    %cst_11 = arith.constant dense<0xFF800000> : vector<10x25xf32>
    %13 = vector.multi_reduction <maximumf>, %12, %cst_11 [1] : vector<10x5x25xf32> to vector<10x25xf32>
    %14 = vector.shape_cast %13 : vector<10x25xf32> to vector<10x1x25xf32>
    %15 = vector.broadcast %14 : vector<10x1x25xf32> to vector<10x5x25xf32>
    %16 = arith.subf %12, %15 : vector<10x5x25xf32>
    %17 = math.exp %16 : vector<10x5x25xf32>
    %cst_12 = arith.constant dense<0.000000e+00> : vector<10x25xf32>
    %18 = vector.multi_reduction <add>, %17, %cst_12 [1] : vector<10x5x25xf32> to vector<10x25xf32>
    %19 = vector.shape_cast %18 : vector<10x25xf32> to vector<10x1x25xf32>
    %20 = tpu.reciprocal %19 : vector<10x1x25xf32> -> vector<10x1x25xf32>
    %21 = vector.broadcast %20 : vector<10x1x25xf32> to vector<10x5x25xf32>
    %22 = arith.mulf %17, %21 : vector<10x5x25xf32>
    %23 = arith.subf %22, %6 : vector<10x5x25xf32>
    %cst_13 = arith.constant 4.000000e-04 : f32
    %24 = vector.broadcast %cst_13 : f32 to vector<10x5x25xf32>
    %25 = arith.mulf %23, %24 : vector<10x5x25xf32>
    %26 = arith.truncf %25 : vector<10x5x25xf32> to vector<10x5x25xbf16>
    "tpu.trace_start"() <{level = 10 : i32, message = "tcn,tnd->tcd"}> : () -> ()
    %cst_14 = arith.constant dense<0.000000e+00> : vector<10x5x128xf32>
    %27 = tpu.matmul %26, %0, %cst_14 {dimension_numbers = #tpu.dot_dimension_numbers<[2], [1], [1], [2], [0, 0, 0, 1, 1, 2], [0], [0]>} : vector<10x5x25xbf16>, vector<10x25x128xbf16>, vector<10x5x128xf32> -> vector<10x5x128xf32>
    "tpu.trace_stop"() : () -> ()
    %28 = arith.subf %7, %27 : vector<10x5x128xf32>
    %cst_15 = arith.constant dense<0.000000e+00> : vector<10x5xf32>
    %29 = vector.multi_reduction <add>, %25, %cst_15 [2] : vector<10x5x25xf32> to vector<10x5xf32>
    %30 = vector.shape_cast %29 : vector<10x5xf32> to vector<10x5x1xf32>
    %31 = arith.subf %8, %30 : vector<10x5x1xf32>
    %c1_i32 = arith.constant 1 : i32
    %32 = arith.truncf %28 : vector<10x5x128xf32> to vector<10x5x128xbf16>
    "tpu.trace_start"() <{level = 10 : i32, message = "tcd,tnd->tcn"}> : () -> ()
    %cst_16 = arith.constant dense<0.000000e+00> : vector<10x5x25xf32>
    %33 = tpu.matmul %32, %0, %cst_16 {dimension_numbers = #tpu.dot_dimension_numbers<[2], [2], [1], [1], [0, 0, 0, 1, 1, 1], [0], [0]>} : vector<10x5x128xbf16>, vector<10x25x128xbf16>, vector<10x5x25xf32> -> vector<10x5x25xf32>
    "tpu.trace_stop"() : () -> ()
    %34 = vector.broadcast %31 : vector<10x5x1xf32> to vector<10x5x25xf32>
    %35 = arith.addf %33, %34 : vector<10x5x25xf32>
    %cst_17 = arith.constant dense<0xFF800000> : vector<10x25xf32>
    %36 = vector.multi_reduction <maximumf>, %35, %cst_17 [1] : vector<10x5x25xf32> to vector<10x25xf32>
    %37 = vector.shape_cast %36 : vector<10x25xf32> to vector<10x1x25xf32>
    %38 = vector.broadcast %37 : vector<10x1x25xf32> to vector<10x5x25xf32>
    %39 = arith.subf %35, %38 : vector<10x5x25xf32>
    %40 = math.exp %39 : vector<10x5x25xf32>
    %cst_18 = arith.constant dense<0.000000e+00> : vector<10x25xf32>
    %41 = vector.multi_reduction <add>, %40, %cst_18 [1] : vector<10x5x25xf32> to vector<10x25xf32>
    %42 = vector.shape_cast %41 : vector<10x25xf32> to vector<10x1x25xf32>
    %43 = tpu.reciprocal %42 : vector<10x1x25xf32> -> vector<10x1x25xf32>
    %44 = vector.broadcast %43 : vector<10x1x25xf32> to vector<10x5x25xf32>
    %45 = arith.mulf %40, %44 : vector<10x5x25xf32>
    %46 = arith.subf %45, %6 : vector<10x5x25xf32>
    %cst_19 = arith.constant 4.000000e-04 : f32
    %47 = vector.broadcast %cst_19 : f32 to vector<10x5x25xf32>
    %48 = arith.mulf %46, %47 : vector<10x5x25xf32>
    %49 = arith.truncf %48 : vector<10x5x25xf32> to vector<10x5x25xbf16>
    "tpu.trace_start"() <{level = 10 : i32, message = "tcn,tnd->tcd"}> : () -> ()
    %cst_20 = arith.constant dense<0.000000e+00> : vector<10x5x128xf32>
    %50 = tpu.matmul %49, %0, %cst_20 {dimension_numbers = #tpu.dot_dimension_numbers<[2], [1], [1], [2], [0, 0, 0, 1, 1, 2], [0], [0]>} : vector<10x5x25xbf16>, vector<10x25x128xbf16>, vector<10x5x128xf32> -> vector<10x5x128xf32>
    "tpu.trace_stop"() : () -> ()
    %51 = arith.subf %28, %50 : vector<10x5x128xf32>
    %cst_21 = arith.constant dense<0.000000e+00> : vector<10x5xf32>
    %52 = vector.multi_reduction <add>, %48, %cst_21 [2] : vector<10x5x25xf32> to vector<10x5xf32>
    %53 = vector.shape_cast %52 : vector<10x5xf32> to vector<10x5x1xf32>
    %54 = arith.subf %31, %53 : vector<10x5x1xf32>
    %c2_i32 = arith.constant 2 : i32
    %55 = arith.truncf %51 : vector<10x5x128xf32> to vector<10x5x128xbf16>
    "tpu.trace_start"() <{level = 10 : i32, message = "tcd,tnd->tcn"}> : () -> ()
    %cst_22 = arith.constant dense<0.000000e+00> : vector<10x5x25xf32>
    %56 = tpu.matmul %55, %0, %cst_22 {dimension_numbers = #tpu.dot_dimension_numbers<[2], [2], [1], [1], [0, 0, 0, 1, 1, 1], [0], [0]>} : vector<10x5x128xbf16>, vector<10x25x128xbf16>, vector<10x5x25xf32> -> vector<10x5x25xf32>
    "tpu.trace_stop"() : () -> ()
    %57 = vector.broadcast %54 : vector<10x5x1xf32> to vector<10x5x25xf32>
    %58 = arith.addf %56, %57 : vector<10x5x25xf32>
    %cst_23 = arith.constant dense<0xFF800000> : vector<10x25xf32>
    %59 = vector.multi_reduction <maximumf>, %58, %cst_23 [1] : vector<10x5x25xf32> to vector<10x25xf32>
    %60 = vector.shape_cast %59 : vector<10x25xf32> to vector<10x1x25xf32>
    %61 = vector.broadcast %60 : vector<10x1x25xf32> to vector<10x5x25xf32>
    %62 = arith.subf %58, %61 : vector<10x5x25xf32>
    %63 = math.exp %62 : vector<10x5x25xf32>
    %cst_24 = arith.constant dense<0.000000e+00> : vector<10x25xf32>
    %64 = vector.multi_reduction <add>, %63, %cst_24 [1] : vector<10x5x25xf32> to vector<10x25xf32>
    %65 = vector.shape_cast %64 : vector<10x25xf32> to vector<10x1x25xf32>
    %66 = tpu.reciprocal %65 : vector<10x1x25xf32> -> vector<10x1x25xf32>
    %67 = vector.broadcast %66 : vector<10x1x25xf32> to vector<10x5x25xf32>
    %68 = arith.mulf %63, %67 : vector<10x5x25xf32>
    %69 = arith.subf %68, %6 : vector<10x5x25xf32>
    %cst_25 = arith.constant 4.000000e-04 : f32
    %70 = vector.broadcast %cst_25 : f32 to vector<10x5x25xf32>
    %71 = arith.mulf %69, %70 : vector<10x5x25xf32>
    %72 = arith.truncf %71 : vector<10x5x25xf32> to vector<10x5x25xbf16>
    "tpu.trace_start"() <{level = 10 : i32, message = "tcn,tnd->tcd"}> : () -> ()
    %cst_26 = arith.constant dense<0.000000e+00> : vector<10x5x128xf32>
    %73 = tpu.matmul %72, %0, %cst_26 {dimension_numbers = #tpu.dot_dimension_numbers<[2], [1], [1], [2], [0, 0, 0, 1, 1, 2], [0], [0]>} : vector<10x5x25xbf16>, vector<10x25x128xbf16>, vector<10x5x128xf32> -> vector<10x5x128xf32>
    "tpu.trace_stop"() : () -> ()
    %74 = arith.subf %51, %73 : vector<10x5x128xf32>
    %cst_27 = arith.constant dense<0.000000e+00> : vector<10x5xf32>
    %75 = vector.multi_reduction <add>, %71, %cst_27 [2] : vector<10x5x25xf32> to vector<10x5xf32>
    %76 = vector.shape_cast %75 : vector<10x5xf32> to vector<10x5x1xf32>
    %77 = arith.subf %54, %76 : vector<10x5x1xf32>
    %c3_i32 = arith.constant 3 : i32
    %78 = arith.truncf %74 : vector<10x5x128xf32> to vector<10x5x128xbf16>
    "tpu.trace_start"() <{level = 10 : i32, message = "tcd,tnd->tcn"}> : () -> ()
    %cst_28 = arith.constant dense<0.000000e+00> : vector<10x5x25xf32>
    %79 = tpu.matmul %78, %0, %cst_28 {dimension_numbers = #tpu.dot_dimension_numbers<[2], [2], [1], [1], [0, 0, 0, 1, 1, 1], [0], [0]>} : vector<10x5x128xbf16>, vector<10x25x128xbf16>, vector<10x5x25xf32> -> vector<10x5x25xf32>
    "tpu.trace_stop"() : () -> ()
    %80 = vector.broadcast %77 : vector<10x5x1xf32> to vector<10x5x25xf32>
    %81 = arith.addf %79, %80 : vector<10x5x25xf32>
    %cst_29 = arith.constant dense<0xFF800000> : vector<10x25xf32>
    %82 = vector.multi_reduction <maximumf>, %81, %cst_29 [1] : vector<10x5x25xf32> to vector<10x25xf32>
    %83 = vector.shape_cast %82 : vector<10x25xf32> to vector<10x1x25xf32>
    %84 = vector.broadcast %83 : vector<10x1x25xf32> to vector<10x5x25xf32>
    %85 = arith.subf %81, %84 : vector<10x5x25xf32>
    %86 = math.exp %85 : vector<10x5x25xf32>
    %cst_30 = arith.constant dense<0.000000e+00> : vector<10x25xf32>
    %87 = vector.multi_reduction <add>, %86, %cst_30 [1] : vector<10x5x25xf32> to vector<10x25xf32>
    %88 = vector.shape_cast %87 : vector<10x25xf32> to vector<10x1x25xf32>
    %89 = tpu.reciprocal %88 : vector<10x1x25xf32> -> vector<10x1x25xf32>
    %90 = vector.broadcast %89 : vector<10x1x25xf32> to vector<10x5x25xf32>
    %91 = arith.mulf %86, %90 : vector<10x5x25xf32>
    %92 = arith.subf %91, %6 : vector<10x5x25xf32>
    %cst_31 = arith.constant 4.000000e-04 : f32
    %93 = vector.broadcast %cst_31 : f32 to vector<10x5x25xf32>
    %94 = arith.mulf %92, %93 : vector<10x5x25xf32>
    %95 = arith.truncf %94 : vector<10x5x25xf32> to vector<10x5x25xbf16>
    "tpu.trace_start"() <{level = 10 : i32, message = "tcn,tnd->tcd"}> : () -> ()
    %cst_32 = arith.constant dense<0.000000e+00> : vector<10x5x128xf32>
    %96 = tpu.matmul %95, %0, %cst_32 {dimension_numbers = #tpu.dot_dimension_numbers<[2], [1], [1], [2], [0, 0, 0, 1, 1, 2], [0], [0]>} : vector<10x5x25xbf16>, vector<10x25x128xbf16>, vector<10x5x128xf32> -> vector<10x5x128xf32>
    "tpu.trace_stop"() : () -> ()
    %97 = arith.subf %74, %96 : vector<10x5x128xf32>
    %cst_33 = arith.constant dense<0.000000e+00> : vector<10x5xf32>
    %98 = vector.multi_reduction <add>, %94, %cst_33 [2] : vector<10x5x25xf32> to vector<10x5xf32>
    %99 = vector.shape_cast %98 : vector<10x5xf32> to vector<10x5x1xf32>
    %100 = arith.subf %77, %99 : vector<10x5x1xf32>
    %c4_i32 = arith.constant 4 : i32
    %101 = arith.truncf %97 : vector<10x5x128xf32> to vector<10x5x128xbf16>
    "tpu.trace_start"() <{level = 10 : i32, message = "tcd,tnd->tcn"}> : () -> ()
    %cst_34 = arith.constant dense<0.000000e+00> : vector<10x5x25xf32>
    %102 = tpu.matmul %101, %0, %cst_34 {dimension_numbers = #tpu.dot_dimension_numbers<[2], [2], [1], [1], [0, 0, 0, 1, 1, 1], [0], [0]>} : vector<10x5x128xbf16>, vector<10x25x128xbf16>, vector<10x5x25xf32> -> vector<10x5x25xf32>
    "tpu.trace_stop"() : () -> ()
    %103 = vector.broadcast %100 : vector<10x5x1xf32> to vector<10x5x25xf32>
    %104 = arith.addf %102, %103 : vector<10x5x25xf32>
    %cst_35 = arith.constant dense<0xFF800000> : vector<10x25xf32>
    %105 = vector.multi_reduction <maximumf>, %104, %cst_35 [1] : vector<10x5x25xf32> to vector<10x25xf32>
    %106 = vector.shape_cast %105 : vector<10x25xf32> to vector<10x1x25xf32>
    %107 = vector.broadcast %106 : vector<10x1x25xf32> to vector<10x5x25xf32>
    %108 = arith.subf %104, %107 : vector<10x5x25xf32>
    %109 = math.exp %108 : vector<10x5x25xf32>
    %cst_36 = arith.constant dense<0.000000e+00> : vector<10x25xf32>
    %110 = vector.multi_reduction <add>, %109, %cst_36 [1] : vector<10x5x25xf32> to vector<10x25xf32>
    %111 = vector.shape_cast %110 : vector<10x25xf32> to vector<10x1x25xf32>
    %112 = tpu.reciprocal %111 : vector<10x1x25xf32> -> vector<10x1x25xf32>
    %113 = vector.broadcast %112 : vector<10x1x25xf32> to vector<10x5x25xf32>
    %114 = arith.mulf %109, %113 : vector<10x5x25xf32>
    %115 = arith.subf %114, %6 : vector<10x5x25xf32>
    %cst_37 = arith.constant 4.000000e-04 : f32
    %116 = vector.broadcast %cst_37 : f32 to vector<10x5x25xf32>
    %117 = arith.mulf %115, %116 : vector<10x5x25xf32>
    %118 = arith.truncf %117 : vector<10x5x25xf32> to vector<10x5x25xbf16>
    "tpu.trace_start"() <{level = 10 : i32, message = "tcn,tnd->tcd"}> : () -> ()
    %cst_38 = arith.constant dense<0.000000e+00> : vector<10x5x128xf32>
    %119 = tpu.matmul %118, %0, %cst_38 {dimension_numbers = #tpu.dot_dimension_numbers<[2], [1], [1], [2], [0, 0, 0, 1, 1, 2], [0], [0]>} : vector<10x5x25xbf16>, vector<10x25x128xbf16>, vector<10x5x128xf32> -> vector<10x5x128xf32>
    "tpu.trace_stop"() : () -> ()
    %120 = arith.subf %97, %119 : vector<10x5x128xf32>
    %cst_39 = arith.constant dense<0.000000e+00> : vector<10x5xf32>
    %121 = vector.multi_reduction <add>, %117, %cst_39 [2] : vector<10x5x25xf32> to vector<10x5xf32>
    %122 = vector.shape_cast %121 : vector<10x5xf32> to vector<10x5x1xf32>
    %123 = arith.subf %100, %122 : vector<10x5x1xf32>
    %124 = arith.truncf %120 : vector<10x5x128xf32> to vector<10x5x128xbf16>
    %c0_40 = arith.constant 0 : index
    %c0_41 = arith.constant 0 : index
    %c0_42 = arith.constant 0 : index
    %125 = vector.load %arg3[%c0_40, %c0_41, %c0_42] : memref<10x15x128xbf16, #tpu.memory_space<vmem>>, vector<10x15x128xbf16>
    "tpu.trace_start"() <{level = 10 : i32, message = "tcd,tqd->tcq"}> : () -> ()
    %cst_43 = arith.constant dense<0.000000e+00> : vector<10x5x15xf32>
    %126 = tpu.matmul %124, %125, %cst_43 {dimension_numbers = #tpu.dot_dimension_numbers<[2], [2], [1], [1], [0, 0, 0, 1, 1, 1], [0], [0]>} : vector<10x5x128xbf16>, vector<10x15x128xbf16>, vector<10x5x15xf32> -> vector<10x5x15xf32>
    "tpu.trace_stop"() : () -> ()
    %127 = vector.broadcast %123 : vector<10x5x1xf32> to vector<10x5x15xf32>
    %128 = arith.addf %126, %127 : vector<10x5x15xf32>
    %c0_44 = arith.constant 0 : index
    %c0_45 = arith.constant 0 : index
    %c0_46 = arith.constant 0 : index
    %129 = vector.load %arg6[%c0_44, %c0_45, %c0_46] : memref<10x5x15xf32, #tpu.memory_space<vmem>>, vector<10x5x15xf32>
    tpu.vector_store %arg6[%c0_44, %c0_45, %c0_46], %128 {strides = array<i32>} : memref<10x5x15xf32, #tpu.memory_space<vmem>>, vector<10x5x15xf32>,
    return
  }
  func.func @transform_0(%arg0: i32) -> (i32, i32, i32) {
    %c0_i32 = arith.constant 0 : i32
    %c0_i32_0 = arith.constant 0 : i32
    %c0_i32_1 = arith.constant 0 : i32
    return %arg0, %c0_i32, %c0_i32_0 : i32, i32, i32
  }
  func.func @transform_1(%arg0: i32) -> (i32, i32, i32) {
    %c0_i32 = arith.constant 0 : i32
    %c0_i32_0 = arith.constant 0 : i32
    %c0_i32_1 = arith.constant 0 : i32
    return %arg0, %c0_i32, %c0_i32_0 : i32, i32, i32
  }
  func.func @transform_2(%arg0: i32) -> (i32, i32, i32) {
    %c0_i32 = arith.constant 0 : i32
    %c0_i32_0 = arith.constant 0 : i32
    %c0_i32_1 = arith.constant 0 : i32
    return %arg0, %c0_i32, %c0_i32_0 : i32, i32, i32
  }
  func.func @transform_3(%arg0: i32) -> (i32, i32, i32) {
    %c0_i32 = arith.constant 0 : i32
    %c0_i32_0 = arith.constant 0 : i32
    %c0_i32_1 = arith.constant 0 : i32
    return %arg0, %c0_i32, %c0_i32_0 : i32, i32, i32
  }
  func.func @transform_4(%arg0: i32) -> (i32, i32, i32) {
    %c0_i32 = arith.constant 0 : i32
    %c0_i32_0 = arith.constant 0 : i32
    %c0_i32_1 = arith.constant 0 : i32
    return %arg0, %c0_i32, %c0_i32_0 : i32, i32, i32
  }
  func.func @transform_5(%arg0: i32) -> (i32, i32, i32) {
    %c0_i32 = arith.constant 0 : i32
    %c0_i32_0 = arith.constant 0 : i32
    %c0_i32_1 = arith.constant 0 : i32
    return %arg0, %c0_i32, %c0_i32_0 : i32, i32, i32
  }
}

</mosaic_0001>

<bundles_post_ra>
// kernel: tpu_custom_call.1
= control target key start
LH: loop header
LB: loop body
LE: loop exit
PB: predicated region body
PF: predicated region fallthrough
CT: control target
= control target key end

     0   :  { %s5271_s18 = smov 0   ;;  %s7733_s0 = inlined_call_operand.vmem [shape: s32[20,1,25], index: 0, kind: input, shape index: {}]   ;;  %s7734_s1 = inlined_call_operand.vmem [shape: bf16[20,25,128], index: 1, kind: input, shape index: {}]   ;;  %s7735_s2 = inlined_call_operand.vmem [shape: bf16[20,15,128], index: 2, kind: input, shape index: {}]   ;;  %s7736_s3 = inlined_call_operand.vmem [shape: f32[20,5,128], index: 3, kind: input, shape index: {}]   ;;  %s7737_s4 = inlined_call_operand.vmem [shape: f32[20,5,1], index: 4, kind: input, shape index: {}]   ;;  %s7738_s5 = inlined_call_operand.vmem [shape: f32[20,5,15], index: 5, kind: output, shape index: {}]  }
   0x1 LB: > { %s4720_s19 = sadd.s32 4294967295, %s5236_s18   ;;  %p4724_p0 = scmp.ge.s32.totalorder %s5236_s18, 1  ;;  %s5236_s18 = sphi %s5271_s18, %s15_s18  }
   0x2   : > { %p233_p1 = scmp.lt.s32.totalorder %s5236_s18, 3 }
   0x4   : > { %p234_p2 = pnand %p4724_p0, %p233_p1 }
   0x6   : > { %237 = sbr.rel (%p234_p2) target bundleno = 1905 (0x771), region = 40 }
   0xb   : > { %s282_s20 = smul.u32 10, %s4720_s19  ;;  %v5238_v0 = vmov 0   ;;  %vm742_vm0 = vcmask 200704   ;;  %vm1097_vm3 = vcmask 1043456   ;;  %vm1098_vm4 = vcmask 1044480  }
   0xc   : > { %4957 = vset.pattern.permute.xlu0 %v5238_v0  ;;  %4958 = vset.pattern.permute.xlu1 %v5238_v0 }
   0xd   : > { %p283_p3 = scmp.lt.s32.totalorder %s282_s20, 19  ;;  %4959 = vset.pattern.permute.xlu2 %v5238_v0 }
   0xf   : > { %s8068_s20 = smov (!%p283_p3, %s282_s20), 19 }
  0x10   : > { %s5279_s21 = sshll.u32 %s8068_s20, 3  ;;  %s5284_s24 = scalar_lea.vmem %s7733_s0, %s8068_s20 }
  0x11   : > { %s5290_s27 = scalar_lea.vmem %s7737_s4, %s5279_s21  ;;  %s4914_s28 = sshll.u32 %s8068_s20, 4 }
  0x12   : > { %v422_v1 = vld [vmem:[%s5290_s27] sm:$0x1f]  ;;  %s5296_s6 = scalar_lea.vmem %s7734_s1, %s4914_s28  ;;  %v423_v14 = vld [vmem:[%s5290_s27 + $0x8] sm:$0x1f]  ;;  %s5338_s9 = scalar_lea.vmem %s7736_s3, %s5279_s21  ;;  %v424_v26 = vld [vmem:[%s5290_s27 + $0x10] sm:$0x1f] }
  0x13   : > { %444 = vperm.xlu0 %4957, %v422_v1   ;;  %v4748_v2 = vld [vmem:[%s5296_s6 + $0x8] sm:$0xf]  ;;  %v4917_v3 = vld [vmem:[%s5296_s6 + $0x8] sm:$0x10]  ;;  %v4756_v4 = vld [vmem:[%s5296_s6 + $0x18] sm:$0xf]  ;;  %454 = vperm.xlu1 %4958, %v424_v26   ;;  %s7672_s12 = scalar_lea.vmem %s7735_s2, %s5279_s21  ;;  %s7708_s15 = scalar_lea.vmem %s7738_s5, %s5279_s21 }
  0x14   : > { %v5301_v5 = vor.u32 %v4917_v3, %v4748_v2  ;;  %v4919_v6 = vld [vmem:[%s5296_s6 + $0x18] sm:$0x10]  ;;  %v4764_v7 = vld [vmem:[%s5296_s6 + $0x28] sm:$0xf]  ;;  %v4921_v8 = vld [vmem:[%s5296_s6 + $0x28] sm:$0x10] }
  0x15   : > { %v5306_v9 = vor.u32 %v4919_v6, %v4756_v4  ;;  %v5308_v10 = vor.u32 %v4921_v8, %v4764_v7  ;;  %v4772_v11 = vld [vmem:[%s5296_s6 + $0x38] sm:$0xf]  ;;  %v4923_v12 = vld [vmem:[%s5296_s6 + $0x38] sm:$0x10]  ;;  %v5320_v15 = vld [vmem:[%s5296_s6] sm:$0xff] }
  0x16   : > { %510 = vmatpush.bf16.xpose.msra.mxu0 %v5301_v5  ;;  %v5313_v13 = vor.u32 %v4923_v12, %v4772_v11  ;;  %v5323_v16 = vld [vmem:[%s5296_s6 + $0x10] sm:$0xff]  ;;  %v5326_v17 = vld [vmem:[%s5296_s6 + $0x20] sm:$0xff]  ;;  %v4780_v18 = vld [vmem:[%s5296_s6 + $0x48] sm:$0xf] }
  0x17   : > { %535 = vmatpush.bf16.xpose.msra.mxu1 %v5306_v9  ;;  %560 = vmatpush.bf16.xpose.msra.mxu2 %v5308_v10  ;;  %v4925_v19 = vld [vmem:[%s5296_s6 + $0x48] sm:$0x10]  ;;  %v4788_v20 = vld [vmem:[%s5296_s6 + $0x58] sm:$0xf]  ;;  %v4927_v21 = vld [vmem:[%s5296_s6 + $0x58] sm:$0x10] }
  0x18   : > { %585 = vmatpush.bf16.xpose.msra.mxu3 %v5313_v13  ;;  %v4796_v22 = vld [vmem:[%s5296_s6 + $0x68] sm:$0xf]  ;;  %v4929_v23 = vld [vmem:[%s5296_s6 + $0x68] sm:$0x10]  ;;  %v4804_v24 = vld [vmem:[%s5296_s6 + $0x78] sm:$0xf]  ;;  %v5346_v28 = vor.u32 %v4925_v19, %v4780_v18  ;;  %v5348_v29 = vor.u32 %v4927_v21, %v4788_v20 }
  0x19   : > { %v4931_v25 = vld [vmem:[%s5296_s6 + $0x78] sm:$0x10]  ;;  %v5344_v27 = vld [vmem:[%s5296_s6 + $0x30] sm:$0xff]  ;;  %v5350_v30 = vor.u32 %v4929_v23, %v4796_v22  ;;  %v412_v31 = vld [vmem:[%s5338_s9] sm:$0x1f] }
  0x1a   : > { %v5354_v32 = vor.u32 %v4931_v25, %v4804_v24  ;;  %v413_v33 = vld [vmem:[%s5338_s9 + $0x8] sm:$0x1f]  ;;  %v414_v34 = vld [vmem:[%s5338_s9 + $0x10] sm:$0x1f]  ;;  %v415_v36 = vld [vmem:[%s5338_s9 + $0x18] sm:$0x1f]  ;;  %v432_v38 = vpack.c.bf16 %v412_v31, %v412_v31 }
  0x1b   : > { %449 = vperm.xlu0 %4957, %v423_v14   ;;  %v428_v35 = vld [vmem:[%s5290_s27 + $0x30] sm:$0x1f]  ;;  %v425_v37 = vld [vmem:[%s5290_s27 + $0x18] sm:$0x1f]  ;;  %v4812_v39 = vld [vmem:[%s5296_s6 + $0x88] sm:$0xf]  ;;  %v433_v42 = vpack.c.bf16 %v413_v33, %v413_v33  ;;  %v434_v43 = vpack.c.bf16 %v414_v34, %v414_v34  ;;  %v435_v45 = vpack.c.bf16 %v415_v36, %v415_v36 }
  0x1c   : > { %v4933_v40 = vld [vmem:[%s5296_s6 + $0x88] sm:$0x10]  ;;  %v426_v41 = vld [vmem:[%s5290_s27 + $0x20] sm:$0x1f]  ;;  %459 = vperm.xlu1 %4958, %v425_v37   ;;  %v4820_v46 = vld [vmem:[%s5296_s6 + $0x98] sm:$0xf] }
  0x1d   : > { %v5372_v44 = vld [vmem:[%s5296_s6 + $0x40] sm:$0xff]  ;;  %464 = vperm.xlu2 %4959, %v426_v41   ;;  %v4935_v47 = vld [vmem:[%s5296_s6 + $0x98] sm:$0x10]  ;;  %v5377_v48 = vld [vmem:[%s5296_s6 + $0x50] sm:$0xff]  ;;  %v5385_v51 = vor.u32 %v4933_v40, %v4812_v39 }
  0x1e   : > { %511 = vmatpush.bf16.xpose.msra.mxu0 %v5320_v15  ;;  %v5380_v49 = vld [vmem:[%s5296_s6 + $0x60] sm:$0xff]  ;;  %v5383_v50 = vld [vmem:[%s5296_s6 + $0x70] sm:$0xff]  ;;  %v5387_v52 = vor.u32 %v4935_v47, %v4820_v46  ;;  %v431_v53 = vld [vmem:[%s5290_s27 + $0x48] sm:$0x1f] }
  0x1f   : > { %536 = vmatpush.bf16.xpose.msra.mxu1 %v5323_v16  ;;  %561 = vmatpush.bf16.xpose.msra.mxu2 %v5326_v17  ;;  %7831 = vst [vmem:[#allocation2_spill] sm:$0xff] %v5385_v51  ;;  %v429_v54 = vld [vmem:[%s5290_s27 + $0x38] sm:$0x1f]  ;;  %v427_v55 = vld [vmem:[%s5290_s27 + $0x28] sm:$0x1f]  ;;  %v5400_v57 = vld [vmem:[%s5296_s6 + $0x80] sm:$0xff] }
  0x20   : > { %586 = vmatpush.bf16.xpose.msra.mxu3 %v5344_v27  ;;  %7832 = vst [vmem:[#allocation3_spill] sm:$0xff] %v5387_v52  ;;  %v416_v56 = vld [vmem:[%s5338_s9 + $0x20] sm:$0x1f]  ;;  %v417_v58 = vld [vmem:[%s5338_s9 + $0x28] sm:$0x1f]  ;;  %v5405_v60 = vld [vmem:[%s5296_s6 + $0x90] sm:$0xff] }
  0x21   : > { %v418_v59 = vld [vmem:[%s5338_s9 + $0x30] sm:$0x1f]  ;;  %v419_v61 = vld [vmem:[%s5338_s9 + $0x38] sm:$0x1f]  ;;  %v436_v62 = vpack.c.bf16 %v416_v56, %v416_v56  ;;  %v430_v63 = vld [vmem:[%s5290_s27 + $0x40] sm:$0x1f]  ;;  %v437_v0 = vpack.c.bf16 %v417_v58, %v417_v58 }
  0x22   : > { %v438_v1 = vpack.c.bf16 %v418_v59, %v418_v59  ;;  %v439_v2 = vpack.c.bf16 %v419_v61, %v419_v61  ;;  %v420_v3 = vld [vmem:[%s5338_s9 + $0x40] sm:$0x1f]  ;;  %v421_v4 = vld [vmem:[%s5338_s9 + $0x48] sm:$0x1f] }
  0x23   : > { %474 = vperm.xlu0 %4957, %v428_v35   ;;  %v440_v6 = vpack.c.bf16 %v420_v3, %v420_v3  ;;  %v441_v7 = vpack.c.bf16 %v421_v4, %v421_v4 }
  0x24   : > { %479 = vperm.xlu1 %4958, %v429_v54  }
  0x25   : > { %512 = vmatmul.bf16.vlgmr.msra.gmra.mxu0 %v432_v38  ;;  %469 = vperm.xlu2 %4959, %v427_v55  }
  0x26   : > { %610 = vmatpush.bf16.xpose.msrb.mxu0 %v5346_v28  ;;  %537 = vmatmul.bf16.vlgmr.msra.gmra.mxu1 %v433_v42 }
  0x27   : > { %635 = vmatpush.bf16.xpose.msrb.mxu1 %v5348_v29  ;;  %660 = vmatpush.bf16.xpose.msrb.mxu2 %v5350_v30 }
  0x28   : > { %685 = vmatpush.bf16.xpose.msrb.mxu3 %v5354_v32  ;;  %562 = vmatmul.bf16.vlgmr.msra.gmra.mxu2 %v434_v43 }
  0x29   : > { %587 = vmatmul.bf16.vlgmr.msra.gmra.mxu3 %v435_v45 }
  0x2b   : > { %489 = vperm.xlu0 %4957, %v431_v53  }
  0x2d   : > { %484 = vperm.xlu2 %4959, %v430_v63  }
  0x2e   : > { %611 = vmatpush.bf16.xpose.msrb.mxu0 %v5372_v44 }
  0x2f   : > { %636 = vmatpush.bf16.xpose.msrb.mxu1 %v5377_v48  ;;  %661 = vmatpush.bf16.xpose.msrb.mxu2 %v5380_v49 }
  0x30   : > { %686 = vmatpush.bf16.xpose.msrb.mxu3 %v5383_v50 }
  0x35   : > { %612 = vmatmul.bf16.vlgmr.msrb.gmra.mxu0 %v436_v62 }
  0x36   : > { %710 = vmatpush.bf16.xpose.msra.mxu0 %v5385_v51  ;;  %637 = vmatmul.bf16.vlgmr.msrb.gmra.mxu1 %v437_v0 }
  0x37   : > { %735 = vmatpush.bf16.xpose.msra.mxu1 %v5387_v52 }
  0x38   : > { %662 = vmatmul.bf16.vlgmr.msrb.gmra.mxu2 %v438_v1 }
  0x39   : > { %687 = vmatmul.bf16.vlgmr.msrb.gmra.mxu3 %v439_v2 }
  0x3e   : > { %711 = vmatpush.bf16.xpose.msra.mxu0 %v5400_v57 }
  0x3f   : > { %736 = vmatpush.bf16.xpose.msra.mxu1 %v5405_v60 }
  0x45   : > { %712 = vmatmul.bf16.vlgmr.msra.gmra.mxu0 %v440_v6 }
  0x46   : > { %737 = vmatmul.bf16.vlgmr.msra.gmra.mxu1 %v441_v7 }
  0x77   : > { %v465_v25 = vpop.permute.xlu2 %464 }
  0x7f   : > { %v470_v4 = vpop.permute.xlu2 %469 }
  0x85   : > { %v445_v8 = vpop.permute.xlu0 %444  ;;  %v455_v11 = vpop.permute.xlu1 %454 }
  0x8d   : > { %v450_v14 = vpop.permute.xlu0 %449 }
  0x8e   : > { %v460_v31 = vpop.permute.xlu1 %459 }
  0xa2   : > { %v513_v12 = vpop.f32.mrf.mxu0 }
  0xa3   : > { %v514_v18 = vadd.f32 %v513_v12, %v445_v8  ;;  %v538_v19 = vpop.f32.mrf.mxu1 }
  0xa4   : > { %v539_v20 = vadd.f32 %v538_v19, %v450_v14 }
  0xa5   : > { %v743_v21 = vsel %vm742_vm0, %v514_v18, -inf }
  0xa6   : > { %v744_v22 = vrot.slane %v743_v21, 4  ;;  %v750_v23 = vsel %vm742_vm0, %v539_v20, -inf }
  0xa7   : > { %v751_v24 = vrot.slane %v750_v23, 4 }
  0xa8   : > { %v745_v26 = vmax.f32 %v743_v21, %v744_v22 }
  0xa9   : > { %v752_v33 = vmax.f32 %v750_v23, %v751_v24 }
  0xaa   : > { %v746_v35 = vrot.slane %v745_v26, 2  ;;  %v515_v38 = vpop.f32.mrf.mxu0 }
  0xab   : > { %v563_v34 = vpop.f32.mrf.mxu2  ;;  %v753_v39 = vrot.slane %v752_v33, 2  ;;  %v540_v41 = vpop.f32.mrf.mxu1 }
  0xac   : > { %v564_v36 = vadd.f32 %v563_v34, %v455_v11  ;;  %v588_v37 = vpop.f32.mrf.mxu3  ;;  %v747_v42 = vmax.f32 %v745_v26, %v746_v35 }
  0xad   : > { %v589_v40 = vadd.f32 %v588_v37, %v460_v31  ;;  %v754_v45 = vmax.f32 %v752_v33, %v753_v39  ;;  %v480_v37 = vpop.permute.xlu1 %479 }
  0xae   : > { %v757_v43 = vsel %vm742_vm0, %v564_v36, -inf  ;;  %v748_v53 = vrot.slane %v747_v42, 1 }
  0xaf   : > { %v758_v46 = vrot.slane %v757_v43, 4  ;;  %v764_v47 = vsel %vm742_vm0, %v589_v40, -inf  ;;  %v755_v55 = vrot.slane %v754_v45, 1 }
  0xb0   : > { %v765_v54 = vrot.slane %v764_v47, 4  ;;  %v749_v58 = vmax.f32 %v747_v42, %v748_v53  ;;  %v370_v53 = vlaneseq }
  0xb1   : > { %v759_v56 = vmax.f32 %v757_v43, %v758_v46  ;;  %v756_v61 = vmax.f32 %v754_v45, %v755_v55 }
  0xb2   : > { %v766_v59 = vmax.f32 %v764_v47, %v765_v54  ;;  %v813_v0 = vsub.f32 %v514_v18, %v749_v58  ;;  %v613_v3 = vpop.f32.mrf.mxu0 }
  0xb3   : > { %v760_v62 = vrot.slane %v759_v56, 2  ;;  %v565_v63 = vpop.f32.mrf.mxu2  ;;  %v814_v6 = vsub.f32 %v539_v20, %v756_v61  ;;  %v5417_v8 = vadd.f32 %v613_v3, %v465_v25  ;;  %v638_v11 = vpop.f32.mrf.mxu1 }
  0xb4   : > { %v767_v1 = vrot.slane %v766_v59, 2  ;;  %v590_v2 = vpop.f32.mrf.mxu3  ;;  %v823_v12 = vmul.f32 1.442695, %v813_v0  ;;  %v5419_v19 = vadd.f32 %v638_v11, %v470_v4  ;;  %v475_v25 = vpop.permute.xlu0 %474 }
  0xb5   : > { %v761_v7 = vmax.f32 %v759_v56, %v760_v62  ;;  %v825_v21 = vmul.f32 1.442695, %v814_v6  ;;  %v771_v23 = vsel %vm742_vm0, %v5417_v8, -inf }
  0xb6   : > { %v768_v14 = vmax.f32 %v766_v59, %v767_v1  ;;  %4970 = vpow2.f32 %v823_v12  ;;  %v772_v24 = vrot.slane %v771_v23, 4  ;;  %v778_v20 = vsel %vm742_vm0, %v5419_v19, -inf }
  0xb7   : > { %v762_v22 = vrot.slane %v761_v7, 1  ;;  %4972 = vpow2.f32 %v825_v21  ;;  %v779_v34 = vrot.slane %v778_v20, 4 }
  0xb8   : > { %v769_v18 = vrot.slane %v768_v14, 1  ;;  %v773_v33 = vmax.f32 %v771_v23, %v772_v24 }
  0xb9   : > { %v763_v26 = vmax.f32 %v761_v7, %v762_v22  ;;  %v780_v42 = vmax.f32 %v778_v20, %v779_v34  ;;  %v5441_v20 = vshrl.u32 %v370_v53, 7 }
  0xba   : > { %v770_v31 = vmax.f32 %v768_v14, %v769_v18  ;;  %v774_v41 = vrot.slane %v773_v33, 2  ;;  %v615_v46 = vpop.f32.mrf.mxu0 }
  0xbb   : > { %v815_v35 = vsub.f32 %v564_v36, %v763_v26  ;;  %v663_v38 = vpop.f32.mrf.mxu2  ;;  %v640_v55 = vpop.f32.mrf.mxu1  ;;  %v781_v61 = vrot.slane %v780_v42, 2 }
  0xbc   : > { %v816_v39 = vsub.f32 %v589_v40, %v770_v31  ;;  %v5425_v43 = vadd.f32 %v663_v38, %v475_v25  ;;  %v688_v45 = vpop.f32.mrf.mxu3  ;;  %v5429_v56 = vpop.eup %4970  ;;  %v775_v59 = vmax.f32 %v773_v33, %v774_v41  ;;  %v4960_v25 = vld [vmem:[%s5284_s24 + $0x3] ss:$0 sm:$0xff] }
  0xbd   : > { %v827_v47 = vmul.f32 1.442695, %v815_v35  ;;  %v5427_v54 = vadd.f32 %v688_v45, %v480_v37  ;;  %v5433_v40 = vpop.eup %4972  ;;  %v843_v62 = vsel %vm742_vm0, %v5429_v56, 0.0  ;;  %v782_v6 = vmax.f32 %v780_v42, %v781_v61  ;;  %v485_v38 = vpop.permute.xlu2 %484 }
  0xbe   : > { %v829_v58 = vmul.f32 1.442695, %v816_v39  ;;  %v785_v36 = vsel %vm742_vm0, %v5425_v43, -inf  ;;  %v844_v1 = vrot.slane %v843_v62, 4  ;;  %v850_v2 = vsel %vm742_vm0, %v5433_v40, 0.0 }
  0xbf   : > { %4974 = vpow2.f32 %v827_v47  ;;  %v786_v63 = vrot.slane %v785_v36, 4  ;;  %v792_v0 = vsel %vm742_vm0, %v5427_v54, -inf  ;;  %v776_v3 = vrot.slane %v775_v59, 1 }
  0xc0   : > { %4976 = vpow2.f32 %v829_v58  ;;  %v851_v4 = vrot.slane %v850_v2, 4  ;;  %v793_v11 = vrot.slane %v792_v0, 4  ;;  %v845_v12 = vadd.f32 %v844_v1, %v843_v62 }
  0xc1   : > { %v787_v7 = vmax.f32 %v785_v36, %v786_v63  ;;  %v777_v14 = vmax.f32 %v775_v59, %v776_v3  ;;  %v783_v22 = vrot.slane %v782_v6, 1  ;;  %vm385_vm1 = vcmp.eq.s32.totalorder %v4960_v25, %v5441_v20 }
  0xc2   : > { %v852_v21 = vadd.f32 %v851_v4, %v850_v2  ;;  %v794_v18 = vmax.f32 %v792_v0, %v793_v11  ;;  %v846_v26 = vrot.slane %v845_v12, 2  ;;  %v713_v34 = vpop.f32.mrf.mxu0 }
  0xc3   : > { %v788_v23 = vrot.slane %v787_v7, 2  ;;  %v665_v24 = vpop.f32.mrf.mxu2  ;;  %v817_v31 = vsub.f32 %v5417_v8, %v777_v14  ;;  %v784_v39 = vmax.f32 %v782_v6, %v783_v22  ;;  %v738_v45 = vpop.f32.mrf.mxu1  ;;  %v5451_v58 = vadd.f32 %v713_v34, %v485_v38 }
  0xc4   : > { %v690_v33 = vpop.f32.mrf.mxu3  ;;  %v853_v37 = vrot.slane %v852_v21, 2  ;;  %v795_v42 = vrot.slane %v794_v18, 2  ;;  %v847_v47 = vadd.f32 %v846_v26, %v845_v12  ;;  %v7739_v12 = vmov 0.0  }
  0xc5   : > { %v5445_v35 = vpop.eup %4974  ;;  %v789_v41 = vmax.f32 %v787_v7, %v788_v23  ;;  %v831_v55 = vmul.f32 1.442695, %v817_v31  ;;  %v818_v61 = vsub.f32 %v5419_v19, %v784_v39  ;;  %v799_v7 = vsel %vm742_vm0, %v5451_v58, -inf  ;;  %v490_v23 = vpop.permute.xlu0 %489 }
  0xc6   : > { %v5447_v46 = vpop.eup %4976  ;;  %v857_v53 = vsel %vm742_vm0, %v5445_v35, 0.0  ;;  %v854_v63 = vadd.f32 %v853_v37, %v852_v21  ;;  %v796_v2 = vmax.f32 %v794_v18, %v795_v42  ;;  %v848_v3 = vrot.slane %v847_v47, 1  ;;  %v4961_v18 = vld [vmem:[%s5284_s24 + $0x7] ss:$0 sm:$0xff] }
  0xc7   : > { %v858_v8 = vrot.slane %v857_v53, 4  ;;  %v864_v59 = vsel %vm742_vm0, %v5447_v46, 0.0  ;;  %4978 = vpow2.f32 %v831_v55  ;;  %v790_v62 = vrot.slane %v789_v41, 1 }
  0xc8   : > { %v865_v36 = vrot.slane %v864_v59, 4  ;;  %v833_v1 = vmul.f32 1.442695, %v818_v61  ;;  %v5460_v19 = vsel %vm385_vm1, 1.0, %v7739_v12  ;;  %v855_v24 = vrot.slane %v854_v63, 1 }
  0xc9   : > { %v859_v0 = vadd.f32 %v858_v8, %v857_v53  ;;  %v791_v6 = vmax.f32 %v789_v41, %v790_v62  ;;  %7833 = vst [vmem:[#allocation4_spill] sm:$0xff] %v5460_v19  ;;  %v797_v25 = vrot.slane %v796_v2, 1  ;;  %v800_v31 = vrot.slane %v799_v7, 4 }
  0xca   : > { %v866_v4 = vadd.f32 %v865_v36, %v864_v59  ;;  %4980 = vpow2.f32 %v833_v1  ;;  %v715_v21 = vpop.f32.mrf.mxu0  ;;  %v5466_v37 = vadd.f32 %v848_v3, %v847_v47  ;;  %v5468_v41 = vadd.f32 %v738_v45, %v490_v23 }
  0xcb   : > { %v860_v11 = vrot.slane %v859_v0, 2  ;;  %v819_v22 = vsub.f32 %v5425_v43, %v791_v6  ;;  %v740_v33 = vpop.f32.mrf.mxu1  ;;  %v798_v53 = vmax.f32 %v796_v2, %v797_v25  ;;  %v801_v55 = vmax.f32 %v799_v7, %v800_v31 }
  0xcc   : > { %v867_v14 = vrot.slane %v866_v4, 2  ;;  %v806_v61 = vsel %vm742_vm0, %v5468_v41, -inf  ;;  %v5476_v47 = vadd.f32 %v855_v24, %v854_v63  ;;  %vm389_vm2 = vcmp.eq.s32.totalorder %v4961_v18, %v5441_v20 }
  0xcd   : > { %v861_v26 = vadd.f32 %v860_v11, %v859_v0  ;;  %v5464_v34 = vpop.eup %4978  ;;  %v835_v39 = vmul.f32 1.442695, %v819_v22  ;;  %v820_v45 = vsub.f32 %v5427_v54, %v798_v53  ;;  %v802_v62 = vrot.slane %v801_v55, 2 }
  0xce   : > { %v868_v38 = vadd.f32 %v867_v14, %v866_v4  ;;  %v871_v43 = vsel %vm742_vm0, %v5464_v34, 0.0  ;;  %v807_v3 = vrot.slane %v806_v61, 4  ;;  %v5489_v63 = vsel %vm389_vm2, 1.0, %v7739_v12 }
  0xcf   : > { %v862_v42 = vrot.slane %v861_v26, 1  ;;  %v872_v59 = vrot.slane %v871_v43, 4  ;;  %4982 = vpow2.f32 %v835_v39  ;;  %v837_v6 = vmul.f32 1.442695, %v820_v45 }
  0xd0   : > { %v869_v8 = vrot.slane %v868_v38, 1  ;;  %v5474_v36 = vpop.eup %4980  ;;  %4984 = vrcp.f32 %v5466_v37  ;;  %v803_v7 = vmax.f32 %v801_v55, %v802_v62  ;;  %v808_v23 = vmax.f32 %v806_v61, %v807_v3 }
  0xd1   : > { %v873_v1 = vadd.f32 %v872_v59, %v871_v43  ;;  %v878_v2 = vsel %vm742_vm0, %v5474_v36, 0.0  ;;  %v5485_v11 = vadd.f32 %v862_v42, %v861_v26  ;;  %vm932_vm11 = vweird.f32 %v5476_v47 }
  0xd2   : > { %v5480_v0 = vadd.f32 %v869_v8, %v868_v38  ;;  %v879_v4 = vrot.slane %v878_v2, 4  ;;  %v804_v22 = vrot.slane %v803_v7, 1  ;;  %v809_v33 = vrot.slane %v808_v23, 2 }
  0xd3   : > { %v874_v54 = vrot.slane %v873_v1, 2  ;;  %v5240_v38 = vmov 65535   ;;  %vm918_vm15 = vweird.f32 %v5466_v37 }
  0xd4   : > { %4986 = vrcp.f32 %v5480_v0  ;;  %v880_v14 = vadd.f32 %v879_v4, %v878_v2  ;;  %v805_v25 = vmax.f32 %v803_v7, %v804_v22  ;;  %v1099_v39 = vsel %vm1097_vm3, 4294967295, %v5240_v38 }
  0xd5   : > { %4988 = vpow2.f32 %v837_v6  ;;  %v5491_v21 = vpop.eup %4982  ;;  %v875_v24 = vadd.f32 %v874_v54, %v873_v1  ;;  %vm960_vm5 = vweird.f32 %v5480_v0  ;;  %v5502_v8 = vsel %vm1098_vm4, %v1099_v39, 0 }
  0xd6   : > { %7834 = vst [vmem:[#allocation5_spill] sm:$0xff] %v5491_v21  ;;  %4990 = vrcp.f32 %v5476_v47  ;;  %v881_v18 = vrot.slane %v880_v14, 2  ;;  %v885_v26 = vsel %vm742_vm0, %v5491_v21, 0.0  ;;  %v5498_v42 = vpop.eup %4984  ;;  %v821_v55 = vsub.f32 %v5451_v58, %v805_v25 }
  0xd7   : > { %4992 = vrcp.f32 %v5485_v11  ;;  %v886_v31 = vrot.slane %v885_v26, 4  ;;  %v876_v43 = vrot.slane %v875_v24, 1  ;;  %v810_v45 = vmax.f32 %v808_v23, %v809_v33 }
  0xd8   : > { %v882_v53 = vadd.f32 %v881_v18, %v880_v14  ;;  %v5506_v62 = vand.u32 %v5301_v5, %v5502_v8  ;;  %v5510_v1 = vand.u32 %v5306_v9, %v5502_v8  ;;  %v964_v4 = vand.u32 2147483647, %v5480_v0 }
  0xd9   : > { %v887_v61 = vadd.f32 %v886_v31, %v885_v26  ;;  %v966_v58 = vand.u32 2147483648, %v5480_v0  ;;  %v839_v22 = vmul.f32 1.442695, %v821_v55  ;;  %v811_v23 = vrot.slane %v810_v45, 1  ;;  %v4962_v55 = vld [vmem:[%s5284_s24 + $0x1] ss:$0 sm:$0xff] }
  0xda   : > { %v4987_v59 = vpop.eup %4986  ;;  %7835 = vst [vmem:[#allocation6_spill] sm:$0xff] %v5506_v62  ;;  %v883_v6 = vrot.slane %v882_v53, 1  ;;  %1110 = vmatpush.bf16.msra.mxu2 %v5506_v62  ;;  %1129 = vmatpush.bf16.msra.mxu3 %v5510_v1  ;;  %v5523_v26 = vadd.f32 %v876_v43, %v875_v24  ;;  %v5531_v12 = vand.u32 %v5308_v10, %v5502_v8  ;;  %vm5538_vm7 = vcmp.eq.f32.partialorder %v964_v4, 8.507059e+37 }
  0xdb   : > { %7836 = vst [vmem:[#allocation7_spill] sm:$0xff] %v5510_v1  ;;  %v5512_v2 = vpop.eup %4988  ;;  %v956_v3 = vmul.f32 %v4987_v59, %v5480_v0  ;;  %v888_v54 = vrot.slane %v887_v61, 2  ;;  %4994 = vpow2.f32 %v839_v22  ;;  %v812_v39 = vmax.f32 %v810_v45, %v811_v23 }
  0xdc   : > { %v5517_v7 = vpop.eup %4990  ;;  %v892_v14 = vsel %vm742_vm0, %v5512_v2, 0.0  ;;  %v5525_v25 = vadd.f32 %v883_v6, %v882_v53  ;;  %7837 = vst [vmem:[#allocation8_spill] sm:$0xff] %v5531_v12  ;;  %vm961_vm6 = vweird.f32 %v4987_v59  ;;  %v5536_v24 = vand.u32 %v5313_v13, %v5502_v8  ;;  %1148 = vmatpush.bf16.msrb.mxu0 %v5531_v12 }
  0xdd   : > { %v957_v18 = vsub.f32 1.0, %v956_v3  ;;  %v893_v31 = vrot.slane %v892_v14, 4  ;;  %v5527_v33 = vpop.eup %4992  ;;  %v889_v38 = vadd.f32 %v888_v54, %v887_v61  ;;  %v822_v61 = vsub.f32 %v5468_v41, %v812_v39  ;;  %vm962_vm8 = vmor %vm960_vm5, %vm961_vm6  ;;  %v4963_v41 = vld [vmem:[%s5284_s24] ss:$0 sm:$0xff] }
  0xde   : > { %7838 = vst [vmem:[#allocation9_spill] sm:$0xff] %v5536_v24  ;;  %1111 = vmatpush.bf16.msra.mxu2 %v5320_v15  ;;  %1130 = vmatpush.bf16.msra.mxu3 %v5323_v16  ;;  %v928_v45 = vmul.f32 %v5517_v7, %v5476_v47  ;;  %v967_v6 = vor.u32 1.1754944e-38, %v966_v58  ;;  %4996 = vrcp.f32 %v5523_v26  ;;  %vm383_vm9 = vcmp.eq.s32.totalorder %v4962_v55, %v5441_v20 }
  0xdf   : > { %v958_v21 = vmul.f32 %v4987_v59, %v957_v18  ;;  %v894_v62 = vadd.f32 %v893_v31, %v892_v14  ;;  %v890_v53 = vrot.slane %v889_v38, 1  ;;  %1167 = vmatpush.bf16.msrb.mxu1 %v5536_v24  ;;  %4998 = vrcp.f32 %v5525_v25 }
  0xe0   : > { %v841_v15 = vmul.f32 1.442695, %v822_v61  ;;  %v929_v16 = vsub.f32 1.0, %v928_v45  ;;  %vm933_vm10 = vweird.f32 %v5517_v7  ;;  %v936_v23 = vand.u32 2147483647, %v5476_v47  ;;  %1149 = vmatpush.bf16.msrb.mxu0 %v5326_v17 }
  0xe1   : > { %v959_v3 = vadd.f32 %v4987_v59, %v958_v21  ;;  %v895_v54 = vrot.slane %v894_v62, 2  ;;  %v5556_v4 = vadd.f32 %v890_v53, %v889_v38  ;;  %v5559_v14 = vpop.eup %4994  ;;  %v938_v18 = vand.u32 2147483648, %v5476_v47  ;;  %vm934_vm13 = vmor %vm932_vm11, %vm933_vm10 }
  0xe2   : > { %v930_v0 = vmul.f32 %v5517_v7, %v929_v16  ;;  %5000 = vpow2.f32 %v841_v15  ;;  %vm382_vm12 = vcmp.eq.s32.totalorder %v4963_v41, %v5441_v20  ;;  %v7841_v61 = vmov 0.0  }
  0xe3   : > { %v963_v21 = vsel %vm962_vm8, %v4987_v59, %v959_v3  ;;  %v896_v58 = vadd.f32 %v895_v54, %v894_v62  ;;  %v899_v59 = vsel %vm742_vm0, %v5559_v14, 0.0  ;;  %1168 = vmatpush.bf16.msrb.mxu1 %v5344_v27  ;;  %v5582_v45 = vsel %vm383_vm9, 1.0, %v7841_v61 }
  0xe4   : > { %v968_v22 = vsel %vm5538_vm7, %v967_v6, %v963_v21  ;;  %v900_v62 = vrot.slane %v899_v59, 4  ;;  %v931_v38 = vadd.f32 %v5517_v7, %v930_v0  ;;  %v5574_v43 = vpop.eup %4996  ;;  %7842 = vst [vmem:[#allocation10_spill] sm:$0xff] %v5582_v45  ;;  %v914_v17 = vmul.f32 %v5498_v42, %v5466_v37 }
  0xe5   : > { %v1056_v31 = vmul.f32 %v5447_v46, %v968_v22  ;;  %v897_v39 = vrot.slane %v896_v58, 1  ;;  %v5588_v27 = vpop.eup %4998  ;;  %5002 = vrcp.f32 %v5556_v4  ;;  %v939_v6 = vor.u32 1.1754944e-38, %v938_v18 }
  0xe6   : > { %v901_v47 = vadd.f32 %v900_v62, %v899_v59  ;;  %v935_v3 = vsel %vm934_vm13, %v5517_v7, %v931_v38  ;;  %vm937_vm14 = vcmp.eq.f32.partialorder %v936_v23, 8.507059e+37  ;;  %v5594_v55 = vsel %vm382_vm12, 1.0, %v7841_v61 }
  0xe7   : > { %v1066_v46 = vsub.f32 %v1056_v31, %v5460_v19  ;;  %v5577_v53 = vadd.f32 %v897_v39, %v896_v58  ;;  %v922_v54 = vand.u32 2147483647, %v5466_v37  ;;  %v940_v16 = vsel %vm937_vm14, %v939_v6, %v935_v3  ;;  %v5628_v6 = vld [vmem:[%s5284_s24 + $0x2] ss:$0 sm:$0xff] }
  0xe8   : > { %v902_v15 = vrot.slane %v901_v47, 2  ;;  %v915_v41 = vsub.f32 1.0, %v914_v17  ;;  %v5598_v21 = vpop.eup %5000  ;;  %v1054_v7 = vmul.f32 %v5433_v40, %v940_v16  ;;  %vm919_vm1 = vweird.f32 %v5498_v42 }
  0xe9   : > { %5004 = vrcp.f32 %v5577_v53  ;;  %v5600_v58 = vmul.f32 0.0004, %v1066_v46  ;;  %v924_v22 = vand.u32 2147483648, %v5466_v37  ;;  %v1020_v0 = vand.u32 2147483647, %v5577_v53  ;;  %vm920_vm4 = vmor %vm918_vm15, %vm919_vm1 }
  0xea   : > { %v903_v23 = vadd.f32 %v902_v15, %v901_v47  ;;  %v906_v18 = vsel %vm742_vm0, %v5598_v21, 0.0  ;;  %v916_v31 = vmul.f32 %v5498_v42, %v915_v41  ;;  %v1022_v39 = vand.u32 2147483648, %v5577_v53 }
  0xeb   : > { %v907_v59 = vrot.slane %v906_v18, 4  ;;  %v1064_v62 = vsub.f32 %v1054_v7, %v5582_v45  ;;  %vm5611_vm2 = vcmp.eq.f32.partialorder %v922_v54, 8.507059e+37  ;;  %v5615_v38 = vpop.eup %5002  ;;  %vm1016_vm3 = vweird.f32 %v5577_v53 }
  0xec   : > { %v904_v46 = vrot.slane %v903_v23, 1  ;;  %v917_v17 = vadd.f32 %v5498_v42, %v916_v31  ;;  %v5621_v47 = vand.u32 %v5346_v28, %v5502_v8  ;;  %v5625_v3 = vand.u32 %v5348_v29, %v5502_v8 }
  0xed   : > { %v908_v15 = vadd.f32 %v907_v59, %v906_v18  ;;  %v1074_v16 = vmul.f32 0.0004, %v1064_v62  ;;  %v925_v41 = vor.u32 1.1754944e-38, %v924_v22  ;;  %v942_v7 = vmul.f32 %v5527_v33, %v5485_v11 }
  0xee   : > { %7845 = vst [vmem:[#allocation11_spill] sm:$0xff] %v5621_v47  ;;  %vm5637_vm5 = vcmp.eq.f32.partialorder %v1020_v0, 8.507059e+37  ;;  %v5641_v19 = vadd.f32 %v904_v46, %v903_v23  ;;  %v921_v18 = vsel %vm920_vm4, %v5498_v42, %v917_v17  ;;  %vm1093_vm6 = vcmask 203776   ;;  %1186 = vmatpush.bf16.msrb.mxu2 %v5621_v47  ;;  %1205 = vmatpush.bf16.msrb.mxu3 %v5625_v3 }
  0xef   : > { %7846 = vst [vmem:[#allocation12_spill] sm:$0xff] %v5625_v3  ;;  %v5005_v54 = vpop.eup %5004  ;;  %v909_v37 = vrot.slane %v908_v15, 2  ;;  %v1301_v22 = vsel %vm742_vm0, %v1074_v16, 0.0  ;;  %v1084_v59 = vpack.c.bf16 %v1074_v16, %v1074_v16  ;;  %v926_v62 = vsel %vm5611_vm2, %v925_v41, %v921_v18 }
  0xf0   : > { %v1012_v31 = vmul.f32 %v5005_v54, %v5577_v53  ;;  %v1023_v12 = vor.u32 1.1754944e-38, %v1022_v39  ;;  %1302 = vadd.xlane.f32.xlu2 %v1301_v22  ;;  %v1053_v23 = vmul.f32 %v5429_v56, %v926_v62  ;;  %vm384_vm7 = vcmp.eq.s32.totalorder %v5628_v6, %v5441_v20 }
  0xf1   : > { %vm1017_vm8 = vweird.f32 %v5005_v54  ;;  %5006 = vrcp.f32 %v5641_v19  ;;  %v910_v42 = vadd.f32 %v909_v37, %v908_v15  ;;  %4823 = vmatmul.msk.bf16.vlgmr.msra.gmra.mxu3 %vm1093_vm6, %v1084_v59  ;;  %v943_v46 = vsub.f32 1.0, %v942_v7  ;;  %v4965_v7 = vld [vmem:[%s5284_s24 + $0x5] ss:$0 sm:$0xff] }
  0xf2   : > { %v1013_v0 = vsub.f32 1.0, %v1012_v31  ;;  %v1063_v40 = vsub.f32 %v1053_v23, %v5594_v55  ;;  %vm947_vm9 = vweird.f32 %v5527_v33  ;;  %v952_v39 = vand.u32 2147483648, %v5485_v11  ;;  %1187 = vmatpush.bf16.msrb.mxu2 %v5372_v44  ;;  %1206 = vmatpush.bf16.msrb.mxu3 %v5377_v48  ;;  %vm1018_vm11 = vmor %vm1016_vm3, %vm1017_vm8 }
  0xf3   : > { %v911_v56 = vrot.slane %v910_v42, 1  ;;  %v944_v16 = vmul.f32 %v5527_v33, %v943_v46  ;;  %v950_v41 = vand.u32 2147483647, %v5485_v11  ;;  %v1086_v15 = vpack.c.bf16 %v5600_v58, %v5600_v58 }
  0xf4   : > { %v1014_v17 = vmul.f32 %v5005_v54, %v1013_v0  ;;  %v1073_v18 = vmul.f32 0.0004, %v1063_v40  ;;  %vm946_vm10 = vweird.f32 %v5485_v11  ;;  %v1307_v37 = vsel %vm742_vm0, %v5600_v58, 0.0 }
  0xf5   : > { %v5670_v44 = vadd.f32 %v911_v56, %v910_v42  ;;  %v945_v48 = vadd.f32 %v5527_v33, %v944_v16  ;;  %4825 = vmatmul.msk.bf16.vlgmr.msrb.gmra.mxu1 %vm1093_vm6, %v1086_v15  ;;  %v5676_v22 = vand.u32 %v5350_v30, %v5502_v8  ;;  %v5680_v11 = vand.u32 %v5354_v32, %v5502_v8  ;;  %vm948_vm12 = vmor %vm946_vm10, %vm947_vm9 }
  0xf6   : > { %v1015_v31 = vadd.f32 %v5005_v54, %v1014_v17  ;;  %v1298_v58 = vsel %vm742_vm0, %v1073_v18, 0.0  ;;  %v1083_v62 = vpack.c.bf16 %v1073_v18, %v1073_v18  ;;  %v953_v53 = vor.u32 1.1754944e-38, %v952_v39 }
  0xf7   : > { %7849 = vst [vmem:[#allocation13_spill] sm:$0xff] %v5676_v22  ;;  %v5685_v0 = vpop.eup %5006  ;;  %1299 = vadd.xlane.f32.xlu1 %v1298_v58  ;;  %v949_v42 = vsel %vm948_vm12, %v5527_v33, %v945_v48  ;;  %vm951_vm13 = vcmp.eq.f32.partialorder %v950_v41, 8.507059e+37  ;;  %1224 = vmatpush.bf16.msra.mxu0 %v5676_v22  ;;  %vm387_vm14 = vcmp.eq.s32.totalorder %v4965_v7, %v5441_v20  ;;  %v5698_v46 = vsel %vm384_vm7, 1.0, %v7841_v61  ;;  %v4966_v33 = vld [vmem:[%s5284_s24 + $0x4] ss:$0 sm:$0xff] }
  0xf8   : > { %7850 = vst [vmem:[#allocation14_spill] sm:$0xff] %v5680_v11  ;;  %v1019_v59 = vsel %vm1018_vm11, %v5005_v54, %v1015_v31  ;;  %4822 = vmatmul.msk.bf16.vlgmr.msra.gmra.mxu2 %vm1093_vm6, %v1083_v62  ;;  %v954_v45 = vsel %vm951_vm13, %v953_v53, %v949_v42  ;;  %1308 = vadd.xlane.f32.xlu2 %v1307_v37  ;;  %5008 = vrcp.f32 %v5670_v44  ;;  %v5708_v40 = vsel %vm387_vm14, 1.0, %v7841_v61  ;;  %v4967_v62 = vld [vmem:[%s5284_s24 + $0x6] ss:$0 sm:$0xff] }
  0xf9   : > { %v1024_v23 = vsel %vm5637_vm5, %v1023_v12, %v1019_v59  ;;  %v984_v12 = vmul.f32 %v5588_v27, %v5525_v25  ;;  %v1055_v17 = vmul.f32 %v5445_v35, %v954_v45  ;;  %1243 = vmatpush.bf16.msra.mxu1 %v5680_v11  ;;  %vm988_vm15 = vweird.f32 %v5525_v25 }
  0xfa   : > { %v1060_v54 = vmul.f32 %v5512_v2, %v1024_v23  ;;  %v992_v2 = vand.u32 2147483647, %v5525_v25  ;;  %v970_v39 = vmul.f32 %v5574_v43, %v5523_v26  ;;  %vm989_vm1 = vweird.f32 %v5588_v27 }
  0xfb   : > { %v985_v6 = vsub.f32 1.0, %v984_v12  ;;  %v1065_v16 = vsub.f32 %v1055_v17, %v5698_v46  ;;  %v994_v35 = vand.u32 2147483648, %v5525_v25  ;;  %1225 = vmatpush.bf16.msra.mxu0 %v5380_v49  ;;  %vm386_vm3 = vcmp.eq.s32.totalorder %v4966_v33, %v5441_v20  ;;  %vm990_vm5 = vmor %vm988_vm15, %vm989_vm1 }
  0xfc   : > { %v1070_v56 = vsub.f32 %v1060_v54, %v5489_v63  ;;  %vm5719_vm2 = vcmp.eq.f32.partialorder %v992_v2, 8.507059e+37  ;;  %v971_v7 = vsub.f32 1.0, %v970_v39  ;;  %vm975_vm4 = vweird.f32 %v5574_v43 }
  0xfd   : > { %v986_v41 = vmul.f32 %v5588_v27, %v985_v6  ;;  %v1075_v31 = vmul.f32 0.0004, %v1065_v16  ;;  %v978_v18 = vand.u32 2147483647, %v5523_v26  ;;  %v980_v37 = vand.u32 2147483648, %v5523_v26  ;;  %1244 = vmatpush.bf16.msra.mxu1 %v5383_v50 }
  0xfe   : > { %v972_v48 = vmul.f32 %v5574_v43, %v971_v7  ;;  %v5732_v59 = vand.u32 %v5385_v51, %v5502_v8  ;;  %v5736_v58 = vand.u32 %v5387_v52, %v5502_v8  ;;  %v5740_v53 = vpop.eup %5008  ;;  %v5742_v23 = vmul.f32 0.0004, %v1070_v56 }
  0xff   : > { %v987_v49 = vadd.f32 %v5588_v27, %v986_v41  ;;  %v1304_v50 = vsel %vm742_vm0, %v1075_v31, 0.0  ;;  %v1085_v42 = vpack.c.bf16 %v1075_v31, %v1075_v31  ;;  %v995_v54 = vor.u32 1.1754944e-38, %v994_v35  ;;  %v5792_v31 = vld [vmem:[%s5296_s6 + $0x10] sm:$0xff] }
 0x100   : > { %1305 = vadd.xlane.f32.xlu0 %v1304_v50  ;;  %v5753_v45 = vsel %vm386_vm3, 1.0, %v7841_v61  ;;  %v973_v12 = vadd.f32 %v5574_v43, %v972_v48  ;;  %vm974_vm7 = vweird.f32 %v5523_v26  ;;  %1262 = vmatpush.bf16.msra.mxu2 %v5732_v59  ;;  %vm979_vm9 = vcmp.eq.f32.partialorder %v978_v18, 8.507059e+37 }
 0x101   : > { %1417 = vmatpush.bf16.xpose.msrb.mxu1 %v5306_v9  ;;  %v991_v8 = vsel %vm990_vm5, %v5588_v27, %v987_v49  ;;  %4824 = vmatmul.msk.bf16.vlgmr.msrb.gmra.mxu0 %vm1093_vm6, %v1085_v42  ;;  %vm976_vm8 = vmor %vm974_vm7, %vm975_vm4  ;;  %v981_v27 = vor.u32 1.1754944e-38, %v980_v37  ;;  %v998_v33 = vmul.f32 %v5615_v38, %v5556_v4  ;;  %vm388_vm10 = vcmp.eq.s32.totalorder %v4967_v62, %v5441_v20 }
 0x102   : > { %v996_v25 = vsel %vm5719_vm2, %v995_v54, %v991_v8  ;;  %1281 = vmatpush.bf16.msra.mxu3 %v5736_v58  ;;  %v977_v26 = vsel %vm976_vm8, %v5574_v43, %v973_v12  ;;  %v1006_v2 = vand.u32 2147483647, %v5556_v4  ;;  %1404 = vmatpush.bf16.xpose.msrb.mxu0 %v5301_v5  ;;  %v1008_v56 = vand.u32 2147483648, %v5556_v4 }
 0x103   : > { %v1058_v17 = vmul.f32 %v5474_v36, %v996_v25  ;;  %v982_v6 = vsel %vm979_vm9, %v981_v27, %v977_v26  ;;  %v999_v39 = vsub.f32 1.0, %v998_v33  ;;  %v1090_v16 = vpack.c.bf16 %v5742_v23, %v5742_v23  ;;  %v5815_v33 = vld [vmem:[%s5296_s6] sm:$0xff] }
 0x104   : > { %v1057_v36 = vmul.f32 %v5464_v34, %v982_v6  ;;  %1263 = vmatpush.bf16.msra.mxu2 %v5400_v57  ;;  %vm1003_vm11 = vweird.f32 %v5615_v38  ;;  %v1040_v41 = vmul.f32 %v5740_v53, %v5670_v44  ;;  %v5787_v34 = vsel %vm388_vm10, 1.0, %v7841_v61  ;;  %v4968_v57 = vld [vmem:[%s5284_s24 + $0x9] ss:$0 sm:$0xff] }
 0x105   : > { %v1068_v35 = vsub.f32 %v1058_v17, %v5708_v40  ;;  %v1000_v43 = vmul.f32 %v5615_v38, %v999_v39  ;;  %4829 = vmatmul.msk.bf16.vlgmr.msra.gmra.mxu1 %vm1093_vm6, %v1090_v16  ;;  %vm1002_vm12 = vweird.f32 %v5556_v4  ;;  %vm5796_vm13 = vcmp.eq.f32.partialorder %v1006_v2, 8.507059e+37  ;;  %v4969_v39 = vld [vmem:[%s5284_s24 + $0x8] ss:$0 sm:$0xff] }
 0x106   : > { %1282 = vmatpush.bf16.msra.mxu3 %v5405_v60  ;;  %v1067_v7 = vsub.f32 %v1057_v36, %v5753_v45  ;;  %v1009_v37 = vor.u32 1.1754944e-38, %v1008_v56  ;;  %v1041_v49 = vsub.f32 1.0, %v1040_v41  ;;  %vm1004_vm14 = vmor %vm1002_vm12, %vm1003_vm11  ;;  %v1050_v50 = vand.u32 2147483648, %v5670_v44 }
 0x107   : > { %v1078_v15 = vmul.f32 0.0004, %v1068_v35  ;;  %v1001_v60 = vadd.f32 %v5615_v38, %v1000_v43  ;;  %vm1045_vm15 = vweird.f32 %v5740_v53  ;;  %v1048_v8 = vand.u32 2147483647, %v5670_v44 }
 0x108   : > { %v1077_v4 = vmul.f32 0.0004, %v1067_v7  ;;  %v1042_v54 = vmul.f32 %v5740_v53, %v1041_v49  ;;  %vm391_vm1 = vcmp.eq.s32.totalorder %v4968_v57, %v5441_v20  ;;  %vm1044_vm2 = vweird.f32 %v5670_v44 }
 0x109   : > { %1418 = vmatpush.bf16.xpose.msrb.mxu1 %v5792_v31  ;;  %v1088_v48 = vpack.c.bf16 %v1078_v15, %v1078_v15  ;;  %v1313_v62 = vsel %vm742_vm0, %v1078_v15, 0.0  ;;  %v1005_v42 = vsel %vm1004_vm14, %v5615_v38, %v1001_v60  ;;  %v7855_v38 = vld [vmem:[#allocation5_spill] sm:$0xff]  ;;  %v1026_v2 = vmul.f32 %v5685_v0, %v5641_v19  ;;  %vm1046_vm3 = vmor %vm1044_vm2, %vm1045_vm15  ;;  %v5842_v60 = vld [vmem:[%s5296_s6 + $0x50] sm:$0xff] }
 0x10a   : > { %1314 = vadd.xlane.f32.xlu2 %v1313_v62  ;;  %v1087_v12 = vpack.c.bf16 %v1077_v4, %v1077_v4  ;;  %v1310_v25 = vsel %vm742_vm0, %v1077_v4, 0.0  ;;  %v1010_v27 = vsel %vm5796_vm13, %v1009_v37, %v1005_v42  ;;  %1405 = vmatpush.bf16.xpose.msrb.mxu0 %v5815_v33  ;;  %v1043_v26 = vadd.f32 %v5740_v53, %v1042_v54  ;;  %v5866_v42 = vld [vmem:[%s5296_s6 + $0x20] sm:$0xff] }
 0x10b   : > { %4827 = vmatmul.msk.bf16.vlgmr.msrb.gmra.mxu3 %vm1093_vm6, %v1088_v48  ;;  %1311 = vadd.xlane.f32.xlu1 %v1310_v25  ;;  %v1059_v17 = vmul.f32 %v7855_v38, %v1010_v27  ;;  %v1051_v6 = vor.u32 1.1754944e-38, %v1050_v50  ;;  %vm1049_vm4 = vcmp.eq.f32.partialorder %v1048_v8, 8.507059e+37  ;;  %v1027_v35 = vsub.f32 1.0, %v1026_v2  ;;  %v5860_v50 = vld [vmem:[%s5296_s6 + $0x30] sm:$0xff]  ;;  %v5885_v38 = vld [vmem:[%s5296_s6 + $0x60] sm:$0xff] }
 0x10c   : > { %1443 = vmatpush.bf16.xpose.msrb.mxu3 %v5313_v13  ;;  %4826 = vmatmul.msk.bf16.vlgmr.msrb.gmra.mxu2 %vm1093_vm6, %v1087_v12  ;;  %v1047_v16 = vsel %vm1046_vm3, %v5740_v53, %v1043_v26  ;;  %v5834_v44 = vsel %vm391_vm1, 1.0, %v7841_v61  ;;  %vm1031_vm5 = vweird.f32 %v5685_v0  ;;  %v1036_v43 = vand.u32 2147483648, %v5641_v19  ;;  %v5881_v27 = vld [vmem:[%s5296_s6 + $0x70] sm:$0xff]  ;;  %v5178_v26 = vld [vmem:[%s5290_s27 + $0x8] sm:$0x1f] }
 0x10d   : > { %v1069_v56 = vsub.f32 %v1059_v17, %v5787_v34  ;;  %1430 = vmatpush.bf16.xpose.msrb.mxu2 %v5308_v10  ;;  %v1052_v36 = vsel %vm1049_vm4, %v1051_v6, %v1047_v16  ;;  %v1028_v7 = vmul.f32 %v5685_v0, %v1027_v35  ;;  %v1034_v53 = vand.u32 2147483647, %v5641_v19  ;;  %v5180_v35 = vld [vmem:[%s5290_s27 + $0x18] sm:$0x1f] }
 0x10e   : > { %v1062_v15 = vmul.f32 %v5598_v21, %v1052_v36  ;;  %vm390_vm7 = vcmp.eq.s32.totalorder %v4969_v39, %v5441_v20  ;;  %vm1030_vm8 = vweird.f32 %v5641_v19  ;;  %v1319_v49 = vsel %vm742_vm0, %v5742_v23, 0.0  ;;  %v5179_v39 = vld [vmem:[%s5290_s27] sm:$0x1f] }
 0x10f   : > { %v1079_v41 = vmul.f32 0.0004, %v1069_v56  ;;  %v1029_v21 = vadd.f32 %v5685_v0, %v1028_v7  ;;  %vm1032_vm9 = vmor %vm1030_vm8, %vm1031_vm5  ;;  %v1037_v48 = vor.u32 1.1754944e-38, %v1036_v43  ;;  %vm1035_vm10 = vcmp.eq.f32.partialorder %v1034_v53, 8.507059e+37  ;;  %v5182_v53 = vld [vmem:[%s5290_s27 + $0x10] sm:$0x1f] }
 0x110   : > { %v1072_v37 = vsub.f32 %v1062_v15, %v5834_v44  ;;  %v5857_v62 = vsel %vm390_vm7, 1.0, %v7841_v61  ;;  %v5181_v15 = vld [vmem:[%s5338_s9 + $0x18] sm:$0x1f] }
 0x111   : > { %1469 = vmatpush.bf16.xpose.msra.mxu1 %v5348_v29  ;;  %v1089_v57 = vpack.c.bf16 %v1079_v41, %v1079_v41  ;;  %v1316_v18 = vsel %vm742_vm0, %v1079_v41, 0.0  ;;  %v1033_v19 = vsel %vm1032_vm9, %v5685_v0, %v1029_v21 }
 0x112   : > { %1317 = vadd.xlane.f32.xlu0 %v1316_v18  ;;  %v1082_v20 = vmul.f32 0.0004, %v1072_v37  ;;  %v1038_v4 = vsel %vm1035_vm10, %v1037_v48, %v1033_v19  ;;  %v5183_v37 = vld [vmem:[%s5338_s9 + $0x8] sm:$0x1f] }
 0x113   : > { %4828 = vmatmul.msk.bf16.vlgmr.msra.gmra.mxu0 %vm1093_vm6, %v1089_v57  ;;  %1320 = vadd.xlane.f32.xlu1 %v1319_v49  ;;  %v1061_v23 = vmul.f32 %v5559_v14, %v1038_v4  ;;  %v5875_v14 = vld [vmem:[%s5296_s6 + $0x40] sm:$0xff] }
 0x114   : > { %1444 = vmatpush.bf16.xpose.msrb.mxu3 %v5860_v50  ;;  %1456 = vmatpush.bf16.xpose.msra.mxu0 %v5346_v28  ;;  %v1092_v0 = vpack.c.bf16 %v1082_v20, %v1082_v20  ;;  %v1325_v61 = vsel %vm742_vm0, %v1082_v20, 0.0 }
 0x115   : > { %1431 = vmatpush.bf16.xpose.msrb.mxu2 %v5866_v42  ;;  %v1071_v54 = vsub.f32 %v1061_v23, %v5857_v62  ;;  %v5184_v23 = vld [vmem:[%s5338_s9] sm:$0x1f] }
 0x117   : > { %v1081_v8 = vmul.f32 0.0004, %v1071_v54  ;;  %v5185_v54 = vld [vmem:[%s5290_s27 + $0x28] sm:$0x1f] }
 0x119   : > { %1470 = vmatpush.bf16.xpose.msra.mxu1 %v5842_v60  ;;  %v1091_v12 = vpack.c.bf16 %v1081_v8, %v1081_v8  ;;  %v1322_v25 = vsel %vm742_vm0, %v1081_v8, 0.0 }
 0x11a   : > { %1326 = vadd.xlane.f32.xlu0 %v1325_v61  ;;  %1323 = vadd.xlane.f32.xlu2 %v1322_v25 }
 0x11b   : > { %4831 = vmatmul.msk.bf16.vlgmr.msra.gmra.mxu3 %vm1093_vm6, %v1092_v0 }
 0x11c   : > { %1495 = vmatpush.bf16.xpose.msra.mxu3 %v5354_v32  ;;  %1457 = vmatpush.bf16.xpose.msra.mxu0 %v5875_v14 }
 0x11d   : > { %4830 = vmatmul.msk.bf16.vlgmr.msra.gmra.mxu2 %vm1093_vm6, %v1091_v12 }
 0x11e   : > { %1482 = vmatpush.bf16.xpose.msra.mxu2 %v5350_v30 }
 0x124   : > { %1496 = vmatpush.bf16.xpose.msra.mxu3 %v5881_v27 }
 0x126   : > { %1483 = vmatpush.bf16.xpose.msra.mxu2 %v5885_v38 }
 0x163   : > { %v1303_v17 = vpop.xlane.xlu2 %1302 }
 0x164   : > { %v5889_v2 = vsub.f32 %v5178_v26, %v1303_v17  ;;  %v5186_v26 = vld [vmem:[%s5290_s27 + $0x20] sm:$0x1f] }
 0x166   : > { %1355 = vperm.xlu2 %4959, %v5889_v2  }
 0x16a   : > { %v1300_v6 = vpop.xlane.xlu1 %1299 }
 0x16b   : > { %v5893_v56 = vsub.f32 %v5179_v39, %v1300_v6  ;;  %v1309_v16 = vpop.xlane.xlu2 %1308  ;;  %v5187_v39 = vld [vmem:[%s5338_s9 + $0x10] sm:$0x1f] }
 0x16c   : > { %v5897_v36 = vsub.f32 %v5180_v35, %v1309_v16 }
 0x16d   : > { %1350 = vperm.xlu1 %4958, %v5893_v56  }
 0x16e   : > { %7856 = vst [vmem:[#allocation5_spill] sm:$0xff] %v5897_v36 }
 0x172   : > { %v1170_v43 = vpop.f32.mrf.mxu1 }
 0x173   : > { %v1306_v41 = vpop.xlane.xlu0 %1305  ;;  %v5900_v7 = vsub.f32 %v5181_v15, %v1170_v43  ;;  %v5937_v43 = vld [vmem:[%s5296_s6 + $0x90] sm:$0xff]  ;;  %v5189_v15 = vld [vmem:[%s5338_s9 + $0x38] sm:$0x1f] }
 0x174   : > { %v5903_v57 = vsub.f32 %v5182_v53, %v1306_v41  ;;  %v1132_v18 = vpop.f32.mrf.mxu3 }
 0x175   : > { %7857 = vst [vmem:[#allocation15_spill] sm:$0xff] %v5900_v7  ;;  %1365 = vperm.xlu1 %4958, %v5897_v36   ;;  %v5907_v21 = vsub.f32 %v5183_v37, %v1132_v18  ;;  %v1341_v49 = vpack.c.bf16 %v5900_v7, %v5900_v7  ;;  %v7865_v18 = vld [vmem:[#allocation6_spill] sm:$0xff] }
 0x176   : > { %7858 = vst [vmem:[#allocation16_spill] sm:$0xff] %v5903_v57  ;;  %1360 = vperm.xlu0 %4957, %v5903_v57  }
 0x177   : > { %7859 = vst [vmem:[#allocation17_spill] sm:$0xff] %v5907_v21  ;;  %v1339_v48 = vpack.c.bf16 %v5907_v21, %v5907_v21  ;;  %1445 = vmatmul.bf16.vlgmr.msrb.gmra.mxu3 %v1341_v49 }
 0x178   : > { %1903 = vmatpush.bf16.msrb.mxu3 %v5510_v1 }
 0x179   : > { %1419 = vmatmul.bf16.vlgmr.msrb.gmra.mxu1 %v1339_v48  ;;  %v5190_v48 = vld [vmem:[%s5290_s27 + $0x30] sm:$0x1f] }
 0x17a   : > { %v1172_v20 = vpop.f32.mrf.mxu1  ;;  %1521 = vmatpush.bf16.xpose.msrb.mxu1 %v5387_v52 }
 0x17b   : > { %v1113_v19 = vpop.f32.mrf.mxu2 }
 0x17c   : > { %v5917_v0 = vsub.f32 %v5184_v23, %v1113_v19  ;;  %v1134_v61 = vpop.f32.mrf.mxu3  ;;  %1904 = vmatpush.bf16.msrb.mxu3 %v5792_v31  ;;  %v5191_v23 = vld [vmem:[%s5290_s27 + $0x38] sm:$0x1f] }
 0x17d   : > { %v1315_v4 = vpop.xlane.xlu2 %1314 }
 0x17e   : > { %7860 = vst [vmem:[#allocation18_spill] sm:$0xff] %v5917_v0  ;;  %v5921_v8 = vsub.f32 %v5185_v54, %v1315_v4  ;;  %v1312_v12 = vpop.xlane.xlu1 %1311  ;;  %v1338_v25 = vpack.c.bf16 %v5917_v0, %v5917_v0  ;;  %v1151_v17 = vpop.f32.mrf.mxu0  ;;  %v5956_v54 = vld [vmem:[%s5296_s6 + $0x80] sm:$0xff] }
 0x17f   : > { %v5926_v6 = vsub.f32 %v5186_v26, %v1312_v12  ;;  %v5929_v16 = vsub.f32 %v5187_v39, %v1151_v17  ;;  %v5193_v26 = vld [vmem:[%s5290_s27 + $0x48] sm:$0x1f] }
 0x180   : > { %7861 = vst [vmem:[#allocation19_spill] sm:$0xff] %v5921_v8  ;;  %1375 = vperm.xlu2 %4959, %v5921_v8   ;;  %1406 = vmatmul.bf16.vlgmr.msrb.gmra.mxu0 %v1338_v25 }
 0x181   : > { %7862 = vst [vmem:[#allocation20_spill] sm:$0xff] %v5926_v6  ;;  %v1340_v31 = vpack.c.bf16 %v5929_v16, %v5929_v16  ;;  %1370 = vperm.xlu0 %4957, %v5926_v6   ;;  %1508 = vmatpush.bf16.xpose.msrb.mxu0 %v5385_v51 }
 0x182   : > { %7863 = vst [vmem:[#allocation21_spill] sm:$0xff] %v5929_v16  ;;  %v1246_v35 = vpop.f32.mrf.mxu1  ;;  %1522 = vmatpush.bf16.xpose.msrb.mxu1 %v5937_v43 }
 0x183   : > { %1432 = vmatmul.bf16.vlgmr.msrb.gmra.mxu2 %v1340_v31  ;;  %v1115_v41 = vpop.f32.mrf.mxu2  ;;  %v5941_v53 = vsub.f32 %v5189_v15, %v1246_v35  ;;  %v5194_v31 = vld [vmem:[%s5338_s9 + $0x28] sm:$0x1f]  ;;  %v5195_v15 = vld [vmem:[%s5290_s27 + $0x40] sm:$0x1f] }
 0x184   : > { %1887 = vmatpush.bf16.msrb.mxu2 %v7865_v18 }
 0x185   : > { %7864 = vst [vmem:[#allocation22_spill] sm:$0xff] %v5941_v53  ;;  %v1318_v37 = vpop.xlane.xlu0 %1317  ;;  %v1345_v49 = vpack.c.bf16 %v5941_v53, %v5941_v53 }
 0x186   : > { %v5947_v20 = vsub.f32 %v5190_v48, %v1318_v37  ;;  %v1321_v19 = vpop.xlane.xlu1 %1320  ;;  %v1153_v4 = vpop.f32.mrf.mxu0 }
 0x187   : > { %v5950_v61 = vsub.f32 %v5191_v23, %v1321_v19  ;;  %1497 = vmatmul.bf16.vlgmr.msra.gmra.mxu3 %v1345_v49  ;;  %v5196_v49 = vld [vmem:[%s5338_s9 + $0x20] sm:$0x1f]  ;;  %v5197_v23 = vld [vmem:[%s5338_s9 + $0x30] sm:$0x1f] }
 0x188   : > { %7866 = vst [vmem:[#allocation23_spill] sm:$0xff] %v5947_v20  ;;  %1380 = vperm.xlu1 %4958, %v5947_v20   ;;  %1888 = vmatpush.bf16.msrb.mxu2 %v5815_v33 }
 0x189   : > { %7867 = vst [vmem:[#allocation24_spill] sm:$0xff] %v5950_v61  ;;  %1385 = vperm.xlu0 %4957, %v5950_v61   ;;  %1509 = vmatpush.bf16.xpose.msrb.mxu0 %v5956_v54 }
 0x18a   : > { %v1248_v12 = vpop.f32.mrf.mxu1  ;;  %1967 = vmatpush.bf16.msra.mxu3 %v5625_v3 }
 0x18d   : > { %v1327_v25 = vpop.xlane.xlu0 %1326  ;;  %v1324_v33 = vpop.xlane.xlu2 %1323 }
 0x18e   : > { %v1208_v17 = vpop.f32.mrf.mxu3  ;;  %v5961_v39 = vsub.f32 %v5193_v26, %v1327_v25  ;;  %1968 = vmatpush.bf16.msra.mxu3 %v5842_v60  ;;  %v5968_v37 = vsub.f32 %v5195_v15, %v1324_v33  ;;  %v7873_v26 = vld [vmem:[#allocation8_spill] sm:$0xff]  ;;  %v5198_v15 = vld [vmem:[%s5338_s9 + $0x48] sm:$0x1f] }
 0x18f   : > { %v5964_v35 = vsub.f32 %v5194_v31, %v1208_v17  ;;  %v1189_v41 = vpop.f32.mrf.mxu2 }
 0x190   : > { %7868 = vst [vmem:[#allocation25_spill] sm:$0xff] %v5961_v39  ;;  %v5971_v48 = vsub.f32 %v5196_v49, %v1189_v41  ;;  %v1227_v4 = vpop.f32.mrf.mxu0  ;;  %1395 = vperm.xlu1 %4958, %v5961_v39   ;;  %1390 = vperm.xlu2 %4959, %v5968_v37  }
 0x191   : > { %7869 = vst [vmem:[#allocation26_spill] sm:$0xff] %v5964_v35  ;;  %v1343_v19 = vpack.c.bf16 %v5964_v35, %v5964_v35  ;;  %v5977_v12 = vsub.f32 %v5197_v23, %v1227_v4  ;;  %v5199_v23 = vld [vmem:[%s5338_s9 + $0x40] sm:$0x1f] }
 0x192   : > { %7870 = vst [vmem:[#allocation27_spill] sm:$0xff] %v5968_v37  ;;  %v1342_v60 = vpack.c.bf16 %v5971_v48, %v5971_v48 }
 0x193   : > { %7871 = vst [vmem:[#allocation28_spill] sm:$0xff] %v5971_v48  ;;  %1471 = vmatmul.bf16.vlgmr.msra.gmra.mxu1 %v1343_v19  ;;  %v1344_v25 = vpack.c.bf16 %v5977_v12, %v5977_v12 }
 0x194   : > { %7872 = vst [vmem:[#allocation29_spill] sm:$0xff] %v5977_v12  ;;  %1935 = vmatpush.bf16.msra.mxu1 %v5536_v24  ;;  %1458 = vmatmul.bf16.vlgmr.msra.gmra.mxu0 %v1342_v60 }
 0x195   : > { %1484 = vmatmul.bf16.vlgmr.msra.gmra.mxu2 %v1344_v25  ;;  %1919 = vmatpush.bf16.msra.mxu0 %v7873_v26 }
 0x196   : > { %v1210_v17 = vpop.f32.mrf.mxu3  ;;  %1951 = vmatpush.bf16.msra.mxu2 %v5621_v47 }
 0x197   : > { %v1191_v31 = vpop.f32.mrf.mxu2 }
 0x198   : > { %1936 = vmatpush.bf16.msra.mxu1 %v5860_v50  ;;  %v1229_v33 = vpop.f32.mrf.mxu0 }
 0x199   : > { %1920 = vmatpush.bf16.msra.mxu0 %v5866_v42 }
 0x19a   : > { %1952 = vmatpush.bf16.msra.mxu2 %v5875_v14 }
 0x19e   : > { %v1284_v41 = vpop.f32.mrf.mxu3 }
 0x19f   : > { %v5991_v49 = vsub.f32 %v5198_v15, %v1284_v41 }
 0x1a0   : > { %v1265_v19 = vpop.f32.mrf.mxu2 }
 0x1a1   : > { %7874 = vst [vmem:[#allocation30_spill] sm:$0xff] %v5991_v49  ;;  %v1347_v4 = vpack.c.bf16 %v5991_v49, %v5991_v49  ;;  %v5996_v60 = vsub.f32 %v5199_v23, %v1265_v19 }
 0x1a3   : > { %7875 = vst [vmem:[#allocation31_spill] sm:$0xff] %v5996_v60  ;;  %1523 = vmatmul.bf16.vlgmr.msrb.gmra.mxu1 %v1347_v4  ;;  %v1346_v50 = vpack.c.bf16 %v5996_v60, %v5996_v60 }
 0x1a4   : > { %1999 = vmatpush.bf16.msrb.mxu1 %v5680_v11 }
 0x1a5   : > { %1510 = vmatmul.bf16.vlgmr.msrb.gmra.mxu0 %v1346_v50 }
 0x1a6   : > { %v1286_v42 = vpop.f32.mrf.mxu3  ;;  %1983 = vmatpush.bf16.msrb.mxu0 %v5676_v22 }
 0x1a8   : > { %2000 = vmatpush.bf16.msrb.mxu1 %v5881_v27  ;;  %v1267_v14 = vpop.f32.mrf.mxu2 }
 0x1aa   : > { %1984 = vmatpush.bf16.msrb.mxu0 %v5885_v38 }
 0x1c0   : > { %v1356_v17 = vpop.permute.xlu2 %1355 }
 0x1df   : > { %v1351_v25 = vpop.permute.xlu1 %1350 }
 0x1e7   : > { %v1366_v19 = vpop.permute.xlu1 %1365 }
 0x1e8   : > { %v1361_v41 = vpop.permute.xlu0 %1360 }
 0x1f3   : > { %v1371_v38 = vpop.permute.xlu0 %1370 }
 0x1f6   : > { %v1420_v31 = vpop.f32.mrf.mxu1 }
 0x1f7   : > { %v1421_v33 = vadd.f32 %v1420_v31, %v1356_v17 }
 0x1f9   : > { %v1535_v15 = vsel %vm742_vm0, %v1421_v33, -inf }
 0x1fa   : > { %v1536_v4 = vrot.slane %v1535_v15, 4  ;;  %v1446_v23 = vpop.f32.mrf.mxu3 }
 0x1fb   : > { %v1447_v11 = vadd.f32 %v1446_v23, %v1366_v19 }
 0x1fc   : > { %v1537_v50 = vmax.f32 %v1535_v15, %v1536_v4 }
 0x1fd   : > { %v1407_v42 = vpop.f32.mrf.mxu0  ;;  %v1549_v22 = vsel %vm742_vm0, %v1447_v11, -inf }
 0x1fe   : > { %v1408_v49 = vadd.f32 %v1407_v42, %v1351_v25  ;;  %v1538_v27 = vrot.slane %v1537_v50, 2  ;;  %v1550_v14 = vrot.slane %v1549_v22, 4  ;;  %v1422_v60 = vpop.f32.mrf.mxu1 }
 0x200   : > { %v1528_v24 = vsel %vm742_vm0, %v1408_v49, -inf  ;;  %v1539_v26 = vmax.f32 %v1537_v50, %v1538_v27  ;;  %v1551_v17 = vmax.f32 %v1549_v22, %v1550_v14  ;;  %v1386_v22 = vpop.permute.xlu0 %1385 }
 0x201   : > { %v1529_v31 = vrot.slane %v1528_v24, 4 }
 0x202   : > { %v1540_v47 = vrot.slane %v1539_v26, 1  ;;  %v1552_v35 = vrot.slane %v1551_v17, 2  ;;  %v1448_v48 = vpop.f32.mrf.mxu3 }
 0x203   : > { %v1530_v12 = vmax.f32 %v1528_v24, %v1529_v31 }
 0x204   : > { %v1541_v37 = vmax.f32 %v1539_v26, %v1540_v47  ;;  %v1553_v19 = vmax.f32 %v1551_v17, %v1552_v35  ;;  %v1376_v17 = vpop.permute.xlu2 %1375 }
 0x205   : > { %v1531_v15 = vrot.slane %v1530_v12, 2  ;;  %v1409_v4 = vpop.f32.mrf.mxu0 }
 0x206   : > { %v1599_v23 = vsub.f32 %v1421_v33, %v1541_v37  ;;  %v1433_v39 = vpop.f32.mrf.mxu2  ;;  %v1554_v25 = vrot.slane %v1553_v19, 1 }
 0x207   : > { %v1532_v42 = vmax.f32 %v1530_v12, %v1531_v15  ;;  %v1434_v3 = vadd.f32 %v1433_v39, %v1361_v41 }
 0x208   : > { %v1610_v60 = vmul.f32 1.442695, %v1599_v23  ;;  %v1555_v51 = vmax.f32 %v1553_v19, %v1554_v25 }
 0x209   : > { %v1533_v53 = vrot.slane %v1532_v42, 1  ;;  %v1542_v50 = vsel %vm742_vm0, %v1434_v3, -inf }
 0x20a   : > { %5010 = vpow2.f32 %v1610_v60  ;;  %v1543_v27 = vrot.slane %v1542_v50, 4  ;;  %v1601_v14 = vsub.f32 %v1447_v11, %v1555_v51  ;;  %v1498_v48 = vpop.f32.mrf.mxu3 }
 0x20b   : > { %v1534_v24 = vmax.f32 %v1532_v42, %v1533_v53  ;;  %v6008_v47 = vadd.f32 %v1498_v48, %v1386_v22 }
 0x20c   : > { %v1544_v35 = vmax.f32 %v1542_v50, %v1543_v27  ;;  %v1614_v26 = vmul.f32 1.442695, %v1601_v14 }
 0x20d   : > { %v1598_v37 = vsub.f32 %v1408_v49, %v1534_v24  ;;  %v1577_v12 = vsel %vm742_vm0, %v6008_v47, -inf }
 0x20e   : > { %v1545_v39 = vrot.slane %v1544_v35, 2  ;;  %5012 = vpow2.f32 %v1614_v26  ;;  %v1435_v33 = vpop.f32.mrf.mxu2  ;;  %v1578_v41 = vrot.slane %v1577_v12, 4 }
 0x20f   : > { %v1608_v31 = vmul.f32 1.442695, %v1598_v37 }
 0x210   : > { %v1472_v19 = vpop.f32.mrf.mxu1  ;;  %v6012_v15 = vpop.eup %5010  ;;  %v1546_v51 = vmax.f32 %v1544_v35, %v1545_v39  ;;  %v1579_v53 = vmax.f32 %v1577_v12, %v1578_v41 }
 0x211   : > { %v6014_v11 = vadd.f32 %v1472_v19, %v1376_v17  ;;  %5014 = vpow2.f32 %v1608_v31  ;;  %v1635_v49 = vsel %vm742_vm0, %v6012_v15, 0.0  ;;  %v1459_v4 = vpop.f32.mrf.mxu0  ;;  %v1381_v31 = vpop.permute.xlu1 %1380 }
 0x212   : > { %v1636_v23 = vrot.slane %v1635_v49, 4  ;;  %v1547_v25 = vrot.slane %v1546_v51, 1  ;;  %v6018_v42 = vadd.f32 %v1459_v4, %v1371_v38  ;;  %v1500_v50 = vpop.f32.mrf.mxu3  ;;  %v1580_v27 = vrot.slane %v1579_v53, 2 }
 0x213   : > { %v1563_v60 = vsel %vm742_vm0, %v6014_v11, -inf }
 0x214   : > { %v1564_v22 = vrot.slane %v1563_v60, 4  ;;  %v6022_v14 = vpop.eup %5012  ;;  %v1637_v48 = vadd.f32 %v1636_v23, %v1635_v49  ;;  %v1548_v24 = vmax.f32 %v1546_v51, %v1547_v25  ;;  %v1556_v35 = vsel %vm742_vm0, %v6018_v42, -inf }
 0x215   : > { %v1649_v26 = vsel %vm742_vm0, %v6022_v14, 0.0  ;;  %v1557_v37 = vrot.slane %v1556_v35, 4  ;;  %v1581_v38 = vmax.f32 %v1579_v53, %v1580_v27 }
 0x216   : > { %v1565_v12 = vmax.f32 %v1563_v60, %v1564_v22  ;;  %v1638_v39 = vrot.slane %v1637_v48, 2  ;;  %v1600_v33 = vsub.f32 %v1434_v3, %v1548_v24  ;;  %v1650_v41 = vrot.slane %v1649_v26, 4 }
 0x217   : > { %v6028_v17 = vpop.eup %5014  ;;  %v1558_v19 = vmax.f32 %v1556_v35, %v1557_v37  ;;  %v1582_v50 = vrot.slane %v1581_v38, 1 }
 0x218   : > { %v1566_v4 = vrot.slane %v1565_v12, 2  ;;  %v1474_v49 = vpop.f32.mrf.mxu1  ;;  %v1628_v51 = vsel %vm742_vm0, %v6028_v17, 0.0  ;;  %v1639_v23 = vadd.f32 %v1638_v39, %v1637_v48  ;;  %v1612_v25 = vmul.f32 1.442695, %v1600_v33  ;;  %v1485_v20 = vpop.f32.mrf.mxu2 }
 0x219   : > { %v1651_v61 = vadd.f32 %v1650_v41, %v1649_v26  ;;  %v1629_v18 = vrot.slane %v1628_v51, 4  ;;  %v1559_v60 = vrot.slane %v1558_v19, 2  ;;  %v6032_v22 = vadd.f32 %v1485_v20, %v1381_v31  ;;  %v1461_v3 = vpop.f32.mrf.mxu0 }
 0x21a   : > { %v1567_v53 = vmax.f32 %v1565_v12, %v1566_v4  ;;  %v1640_v27 = vrot.slane %v1639_v23, 1  ;;  %5016 = vpow2.f32 %v1612_v25  ;;  %v1583_v35 = vmax.f32 %v1581_v38, %v1582_v50 }
 0x21b   : > { %v1652_v24 = vrot.slane %v1651_v61, 2  ;;  %v1630_v37 = vadd.f32 %v1629_v18, %v1628_v51  ;;  %v1560_v8 = vmax.f32 %v1558_v19, %v1559_v60  ;;  %v1570_v0 = vsel %vm742_vm0, %v6032_v22, -inf  ;;  %v1396_v19 = vpop.permute.xlu1 %1395 }
 0x21c   : > { %v1568_v49 = vrot.slane %v1567_v53, 1  ;;  %v6036_v48 = vadd.f32 %v1640_v27, %v1639_v23  ;;  %v1571_v39 = vrot.slane %v1570_v0, 4  ;;  %v1605_v33 = vsub.f32 %v6008_v47, %v1583_v35  ;;  %v1391_v35 = vpop.permute.xlu2 %1390 }
 0x21d   : > { %v1653_v26 = vadd.f32 %v1652_v24, %v1651_v61  ;;  %v1631_v12 = vrot.slane %v1630_v37, 2  ;;  %v1561_v20 = vrot.slane %v1560_v8, 1 }
 0x21e   : > { %v1569_v41 = vmax.f32 %v1567_v53, %v1568_v49  ;;  %5018 = vrcp.f32 %v6036_v48  ;;  %v1572_v4 = vmax.f32 %v1570_v0, %v1571_v39  ;;  %v1622_v38 = vmul.f32 1.442695, %v1605_v33 }
 0x21f   : > { %v1654_v31 = vrot.slane %v1653_v26, 1  ;;  %v1632_v18 = vadd.f32 %v1631_v12, %v1630_v37  ;;  %v1562_v50 = vmax.f32 %v1560_v8, %v1561_v20  ;;  %vm1717_vm1 = vweird.f32 %v6036_v48 }
 0x220   : > { %v1603_v51 = vsub.f32 %v6014_v11, %v1569_v41  ;;  %v1524_v25 = vpop.f32.mrf.mxu1  ;;  %v6041_v23 = vpop.eup %5016  ;;  %v1573_v60 = vrot.slane %v1572_v4, 2  ;;  %5020 = vpow2.f32 %v1622_v38 }
 0x221   : > { %v6043_v61 = vadd.f32 %v1654_v31, %v1653_v26  ;;  %v1487_v47 = vpop.f32.mrf.mxu2  ;;  %v6045_v3 = vadd.f32 %v1524_v25, %v1396_v19  ;;  %v1633_v53 = vrot.slane %v1632_v18, 1  ;;  %v1642_v0 = vsel %vm742_vm0, %v6041_v23, 0.0 }
 0x222   : > { %v1602_v27 = vsub.f32 %v6018_v42, %v1562_v50  ;;  %v1618_v24 = vmul.f32 1.442695, %v1603_v51  ;;  %v1643_v8 = vrot.slane %v1642_v0, 4  ;;  %v1511_v11 = vpop.f32.mrf.mxu0  ;;  %v1574_v12 = vmax.f32 %v1572_v4, %v1573_v60 }
 0x223   : > { %5022 = vrcp.f32 %v6043_v61  ;;  %v6051_v37 = vadd.f32 %v1633_v53, %v1632_v18  ;;  %v1751_v33 = vand.u32 2147483648, %v6043_v61  ;;  %v6056_v20 = vadd.f32 %v1511_v11, %v1391_v35 }
 0x224   : > { %v1616_v49 = vmul.f32 1.442695, %v1602_v27  ;;  %5024 = vpow2.f32 %v1618_v24  ;;  %v6053_v26 = vpop.eup %5018  ;;  %v1644_v39 = vadd.f32 %v1643_v8, %v1642_v0  ;;  %v1749_v42 = vand.u32 2147483647, %v6043_v61 }
 0x225   : > { %v1591_v41 = vsel %vm742_vm0, %v6045_v3, -inf  ;;  %v1713_v31 = vmul.f32 %v6053_v26, %v6036_v48  ;;  %v1575_v19 = vrot.slane %v1574_v12, 1  ;;  %v1584_v50 = vsel %vm742_vm0, %v6056_v20, -inf }
 0x226   : > { %v6063_v38 = vpop.eup %5020  ;;  %v1645_v18 = vrot.slane %v1644_v39, 2  ;;  %5026 = vpow2.f32 %v1616_v49  ;;  %vm1745_vm11 = vweird.f32 %v6043_v61  ;;  %v1585_v51 = vrot.slane %v1584_v50, 4 }
 0x227   : > { %5028 = vrcp.f32 %v6051_v37  ;;  %v1677_v4 = vsel %vm742_vm0, %v6063_v38, 0.0  ;;  %v1592_v25 = vrot.slane %v1591_v41, 4  ;;  %v1752_v0 = vor.u32 1.1754944e-38, %v1751_v33 }
 0x228   : > { %v1526_v60 = vpop.f32.mrf.mxu1  ;;  %v1646_v53 = vadd.f32 %v1645_v18, %v1644_v39  ;;  %v1576_v27 = vmax.f32 %v1574_v12, %v1575_v19  ;;  %v1678_v24 = vrot.slane %v1677_v4, 4  ;;  %vm6074_vm12 = vcmp.eq.f32.partialorder %v1749_v42, 8.507059e+37 }
 0x229   : > { %v5023_v47 = vpop.eup %5022  ;;  %v1586_v49 = vmax.f32 %v1584_v50, %v1585_v51  ;;  %v1593_v52 = vmax.f32 %v1591_v41, %v1592_v25  ;;  %v1714_v16 = vsub.f32 1.0, %v1713_v31  ;;  %vm1718_vm15 = vweird.f32 %v6053_v26 }
 0x22a   : > { %v6071_v8 = vpop.eup %5024  ;;  %v1741_v11 = vmul.f32 %v5023_v47, %v6043_v61  ;;  %v1647_v6 = vrot.slane %v1646_v53, 1  ;;  %v1604_v39 = vsub.f32 %v6032_v22, %v1576_v27  ;;  %v1679_v33 = vadd.f32 %v1678_v24, %v1677_v4  ;;  %v1513_v12 = vpop.f32.mrf.mxu0  ;;  %vm6116_vm2 = vmor %vm1717_vm1, %vm1718_vm15 }
 0x22b   : > { %v1663_v60 = vsel %vm742_vm0, %v6071_v8, 0.0  ;;  %v1587_v1 = vrot.slane %v1586_v49, 2  ;;  %v1594_v21 = vrot.slane %v1593_v52, 2  ;;  %vm1746_vm13 = vweird.f32 %v5023_v47 }
 0x22c   : > { %v1742_v18 = vsub.f32 1.0, %v1741_v11  ;;  %v1664_v19 = vrot.slane %v1663_v60, 4  ;;  %v6081_v36 = vpop.eup %5026  ;;  %v6083_v42 = vadd.f32 %v1647_v6, %v1646_v53  ;;  %v1620_v50 = vmul.f32 1.442695, %v1604_v39  ;;  %vm1747_vm14 = vmor %vm1745_vm11, %vm1746_vm13 }
 0x22d   : > { %v1680_v41 = vrot.slane %v1679_v33, 2  ;;  %v6085_v31 = vpop.eup %5028  ;;  %v1656_v25 = vsel %vm742_vm0, %v6081_v36, 0.0  ;;  %v1588_v4 = vmax.f32 %v1586_v49, %v1587_v1  ;;  %v1595_v11 = vmax.f32 %v1593_v52, %v1594_v21 }
 0x22e   : > { %v1743_v51 = vmul.f32 %v5023_v47, %v1742_v18  ;;  %v1665_v22 = vadd.f32 %v1664_v19, %v1663_v60  ;;  %v1657_v27 = vrot.slane %v1656_v25, 4  ;;  %v1715_v12 = vmul.f32 %v6053_v26, %v1714_v16 }
 0x22f   : > { %v1681_v24 = vadd.f32 %v1680_v41, %v1679_v33  ;;  %5030 = vpow2.f32 %v1620_v50  ;;  %v1589_v6 = vrot.slane %v1588_v4, 1  ;;  %v1596_v18 = vrot.slane %v1595_v11, 1 }
 0x230   : > { %v1744_v7 = vadd.f32 %v5023_v47, %v1743_v51  ;;  %v1666_v57 = vrot.slane %v1665_v22, 2  ;;  %v1658_v53 = vadd.f32 %v1657_v27, %v1656_v25  ;;  %5032 = vrcp.f32 %v6083_v42 }
 0x231   : > { %v1682_v39 = vrot.slane %v1681_v24, 1  ;;  %v1590_v52 = vmax.f32 %v1588_v4, %v1589_v6  ;;  %v1597_v33 = vmax.f32 %v1595_v11, %v1596_v18  ;;  %v1716_v41 = vadd.f32 %v6053_v26, %v1715_v12 }
 0x232   : > { %v1748_v1 = vsel %vm1747_vm14, %v5023_v47, %v1744_v7  ;;  %v1667_v49 = vadd.f32 %v1666_v57, %v1665_v22  ;;  %v1659_v16 = vrot.slane %v1658_v53, 2  ;;  %v7878_v57 = vld [vmem:[#allocation4_spill] sm:$0xff]  ;;  %v1721_v25 = vand.u32 2147483647, %v6036_v48 }
 0x233   : > { %v1753_v21 = vsel %vm6074_vm12, %v1752_v0, %v1748_v1  ;;  %v6097_v60 = vadd.f32 %v1682_v39, %v1681_v24  ;;  %v1606_v50 = vsub.f32 %v6056_v20, %v1590_v52  ;;  %v1607_v4 = vsub.f32 %v6045_v3, %v1597_v33 }
 0x234   : > { %v1841_v61 = vmul.f32 %v6022_v14, %v1753_v21  ;;  %v1668_v19 = vrot.slane %v1667_v49, 1  ;;  %v1660_v51 = vadd.f32 %v1659_v16, %v1658_v53  ;;  %v1720_v6 = vsel %vm6116_vm2, %v6053_v26, %v1716_v41 }
 0x235   : > { %5034 = vrcp.f32 %v6097_v60  ;;  %v6104_v7 = vpop.eup %5030  ;;  %v1624_v35 = vmul.f32 1.442695, %v1606_v50  ;;  %v1807_v22 = vand.u32 2147483648, %v6097_v60  ;;  %v1805_v12 = vand.u32 2147483647, %v6097_v60 }
 0x236   : > { %v1851_v47 = vsub.f32 %v1841_v61, %v7878_v57  ;;  %v6107_v0 = vadd.f32 %v1668_v19, %v1667_v49  ;;  %v1661_v14 = vrot.slane %v1660_v51, 1  ;;  %v1670_v20 = vsel %vm742_vm0, %v6104_v7, 0.0  ;;  %v6120_v24 = vpop.eup %5032 }
 0x237   : > { %v1671_v11 = vrot.slane %v1670_v20, 4  ;;  %5036 = vpow2.f32 %v1624_v35  ;;  %v1626_v3 = vmul.f32 1.442695, %v1607_v4  ;;  %vm1801_vm3 = vweird.f32 %v6097_v60 }
 0x238   : > { %v6126_v53 = vmul.f32 0.0004, %v1851_v47  ;;  %v6128_v39 = vadd.f32 %v1661_v14, %v1660_v51  ;;  %5038 = vrcp.f32 %v6107_v0  ;;  %v1723_v1 = vand.u32 2147483648, %v6036_v48 }
 0x239   : > { %v1672_v18 = vadd.f32 %v1671_v11, %v1670_v20  ;;  %v1699_v49 = vmul.f32 %v6085_v31, %v6051_v37  ;;  %v1808_v21 = vor.u32 1.1754944e-38, %v1807_v22  ;;  %vm6135_vm4 = vcmp.eq.f32.partialorder %v1721_v25, 8.507059e+37 }
 0x23a   : > { %v1707_v16 = vand.u32 2147483647, %v6051_v37  ;;  %v1709_v33 = vand.u32 2147483648, %v6051_v37  ;;  %5040 = vpow2.f32 %v1626_v3  ;;  %vm1703_vm5 = vweird.f32 %v6051_v37 }
 0x23b   : > { %v5035_v52 = vpop.eup %5034  ;;  %v1673_v61 = vrot.slane %v1672_v18, 2  ;;  %5042 = vrcp.f32 %v6128_v39  ;;  %vm6144_vm7 = vcmp.eq.f32.partialorder %v1805_v12, 8.507059e+37  ;;  %v1724_v50 = vor.u32 1.1754944e-38, %v1723_v1 }
 0x23c   : > { %v1797_v19 = vmul.f32 %v5035_v52, %v6097_v60  ;;  %v1700_v41 = vsub.f32 1.0, %v1699_v49  ;;  %vm1704_vm8 = vweird.f32 %v6085_v31  ;;  %vm1802_vm9 = vweird.f32 %v5035_v52 }
 0x23d   : > { %v1674_v51 = vadd.f32 %v1673_v61, %v1672_v18  ;;  %v1727_v35 = vmul.f32 %v6120_v24, %v6083_v42  ;;  %v6151_v25 = vpop.eup %5036  ;;  %v1725_v14 = vsel %vm6135_vm4, %v1724_v50, %v1720_v6  ;;  %vm6156_vm10 = vcmp.eq.f32.partialorder %v1707_v16, 8.507059e+37  ;;  %v7887_v61 = vld [vmem:[#allocation10_spill] sm:$0xff]  ;;  %vm1705_vm12 = vmor %vm1703_vm5, %vm1704_vm8 }
 0x23e   : > { %v1798_v47 = vsub.f32 1.0, %v1797_v19  ;;  %v1701_v20 = vmul.f32 %v6085_v31, %v1700_v41  ;;  %v1710_v4 = vor.u32 1.1754944e-38, %v1709_v33  ;;  %v6160_v27 = vpop.eup %5038  ;;  %v1684_v3 = vsel %vm742_vm0, %v6151_v25, 0.0  ;;  %vm1803_vm13 = vmor %vm1801_vm3, %vm1802_vm9 }
 0x23f   : > { %v1675_v11 = vrot.slane %v1674_v51, 1  ;;  %v1839_v18 = vmul.f32 %v6012_v15, %v1725_v14  ;;  %v1685_v1 = vrot.slane %v1684_v3, 4  ;;  %v1728_v6 = vsub.f32 1.0, %v1727_v35 }
 0x240   : > { %v1799_v12 = vmul.f32 %v5035_v52, %v1798_v47  ;;  %v1702_v49 = vadd.f32 %v6085_v31, %v1701_v20  ;;  %vm1732_vm11 = vweird.f32 %v6120_v24  ;;  %v6167_v26 = vpop.eup %5040  ;;  %v1735_v19 = vand.u32 2147483647, %v6083_v42 }
 0x241   : > { %v1849_v33 = vsub.f32 %v1839_v18, %v7887_v61  ;;  %v1737_v15 = vand.u32 2147483648, %v6083_v42  ;;  %v6176_v50 = vpop.eup %5042  ;;  %v1686_v41 = vadd.f32 %v1685_v1, %v1684_v3  ;;  %v1691_v47 = vsel %vm742_vm0, %v6167_v26, 0.0 }
 0x242   : > { %v1800_v16 = vadd.f32 %v5035_v52, %v1799_v12  ;;  %v1706_v35 = vsel %vm1705_vm12, %v6085_v31, %v1702_v49  ;;  %v1729_v14 = vmul.f32 %v6120_v24, %v1728_v6  ;;  %v6185_v37 = vadd.f32 %v1675_v11, %v1674_v51 }
 0x243   : > { %v1692_v12 = vrot.slane %v1691_v47, 4  ;;  %v1859_v18 = vmul.f32 0.0004, %v1849_v33  ;;  %v1687_v61 = vrot.slane %v1686_v41, 2  ;;  %v1711_v57 = vsel %vm6156_vm10, %v1710_v4, %v1706_v35 }
 0x244   : > { %v1804_v20 = vsel %vm1803_vm13, %v5035_v52, %v1800_v16  ;;  %v1730_v60 = vadd.f32 %v6120_v24, %v1729_v14  ;;  %vm1731_vm14 = vweird.f32 %v6083_v42  ;;  %v1838_v51 = vmul.f32 %v6028_v17, %v1711_v57 }
 0x245   : > { %v1809_v3 = vsel %vm6144_vm7, %v1808_v21, %v1804_v20  ;;  %v1693_v1 = vadd.f32 %v1692_v12, %v1691_v47  ;;  %v2051_v31 = vsel %vm742_vm0, %v1859_v18, 0.0  ;;  %v1869_v49 = vpack.c.bf16 %v1859_v18, %v1859_v18  ;;  %vm1733_vm15 = vmor %vm1731_vm14, %vm1732_vm11 }
 0x246   : > { %v1688_v52 = vadd.f32 %v1687_v61, %v1686_v41  ;;  %2052 = vadd.xlane.f32.xlu2 %v2051_v31  ;;  %v1734_v22 = vsel %vm1733_vm15, %v6120_v24, %v1730_v60  ;;  %v1738_v4 = vor.u32 1.1754944e-38, %v1737_v15  ;;  %5044 = vrcp.f32 %v6185_v37 }
 0x247   : > { %v1694_v42 = vrot.slane %v1693_v1, 2  ;;  %4833 = vmatmul.msk.bf16.vlgmr.msrb.gmra.mxu3 %vm1093_vm6, %v1869_v49  ;;  %vm1736_vm1 = vcmp.eq.f32.partialorder %v1735_v19, 8.507059e+37  ;;  %v1871_v21 = vpack.c.bf16 %v6126_v53, %v6126_v53  ;;  %v1848_v11 = vsub.f32 %v1838_v51, %v5594_v55 }
 0x248   : > { %v1689_v48 = vrot.slane %v1688_v52, 1  ;;  %v1739_v6 = vsel %vm1736_vm1, %v1738_v4, %v1734_v22  ;;  %v1755_v16 = vmul.f32 %v6176_v50, %v6128_v39  ;;  %2031 = vmatpush.bf16.msrb.mxu3 %v5736_v58  ;;  %v1845_v17 = vmul.f32 %v6063_v38, %v1809_v3 }
 0x249   : > { %v1695_v57 = vadd.f32 %v1694_v42, %v1693_v1  ;;  %v1840_v24 = vmul.f32 %v6041_v23, %v1739_v6  ;;  %4835 = vmatmul.msk.bf16.vlgmr.msra.gmra.mxu1 %vm1093_vm6, %v1871_v21  ;;  %v1858_v33 = vmul.f32 0.0004, %v1848_v11  ;;  %vm1760_vm2 = vweird.f32 %v6176_v50  ;;  %v6246_v6 = vld [vmem:[%s5296_s6 + $0x10] sm:$0xff] }
 0x24a   : > { %v6209_v61 = vadd.f32 %v1689_v48, %v1688_v52  ;;  %v1756_v19 = vsub.f32 1.0, %v1755_v16  ;;  %2167 = vmatpush.bf16.xpose.msra.mxu1 %v5306_v9  ;;  %v1765_v47 = vand.u32 2147483648, %v6128_v39  ;;  %v1763_v14 = vand.u32 2147483647, %v6128_v39 }
 0x24b   : > { %v1696_v15 = vrot.slane %v1695_v57, 1  ;;  %v1850_v41 = vsub.f32 %v1840_v24, %v5698_v46  ;;  %v2048_v38 = vsel %vm742_vm0, %v1858_v33, 0.0  ;;  %v1868_v35 = vpack.c.bf16 %v1858_v33, %v1858_v33 }
 0x24c   : > { %v1757_v23 = vmul.f32 %v6176_v50, %v1756_v19  ;;  %2032 = vmatpush.bf16.msrb.mxu3 %v5937_v43  ;;  %v6219_v20 = vpop.eup %5044  ;;  %v1855_v12 = vsub.f32 %v1845_v17, %v5489_v63  ;;  %2049 = vadd.xlane.f32.xlu0 %v2048_v38  ;;  %5046 = vrcp.f32 %v6209_v61  ;;  %vm1759_vm3 = vweird.f32 %v6128_v39 }
 0x24d   : > { %v6222_v18 = vadd.f32 %v1696_v15, %v1695_v57  ;;  %v1860_v60 = vmul.f32 0.0004, %v1850_v41  ;;  %4832 = vmatmul.msk.bf16.vlgmr.msrb.gmra.mxu2 %vm1093_vm6, %v1868_v35  ;;  %v1769_v1 = vmul.f32 %v6160_v27, %v6107_v0  ;;  %vm1761_vm4 = vmor %vm1759_vm3, %vm1760_vm2  ;;  %v1766_v49 = vor.u32 1.1754944e-38, %v1765_v47 }
 0x24e   : > { %v1758_v3 = vadd.f32 %v6176_v50, %v1757_v23  ;;  %2015 = vmatpush.bf16.msrb.mxu2 %v5732_v59  ;;  %vm1764_vm5 = vcmp.eq.f32.partialorder %v1763_v14, 8.507059e+37  ;;  %v1783_v51 = vmul.f32 %v6219_v20, %v6185_v37  ;;  %v1865_v22 = vmul.f32 0.0004, %v1855_v12 }
 0x24f   : > { %5048 = vrcp.f32 %v6222_v18  ;;  %v2054_v43 = vsel %vm742_vm0, %v1860_v60, 0.0  ;;  %v1870_v31 = vpack.c.bf16 %v1860_v60, %v1860_v60  ;;  %v1770_v39 = vsub.f32 1.0, %v1769_v1 }
 0x250   : > { %2055 = vadd.xlane.f32.xlu1 %v2054_v43  ;;  %v1762_v52 = vsel %vm1761_vm4, %v6176_v50, %v1758_v3  ;;  %v1777_v42 = vand.u32 2147483647, %v6107_v0  ;;  %v1779_v21 = vand.u32 2147483648, %v6107_v0  ;;  %vm1774_vm7 = vweird.f32 %v6160_v27 }
 0x251   : > { %4834 = vmatmul.msk.bf16.vlgmr.msra.gmra.mxu0 %vm1093_vm6, %v1870_v31  ;;  %v1767_v4 = vsel %vm1764_vm5, %v1766_v49, %v1762_v52  ;;  %v1771_v11 = vmul.f32 %v6160_v27, %v1770_v39  ;;  %v1784_v50 = vsub.f32 1.0, %v1783_v51  ;;  %v2057_v16 = vsel %vm742_vm0, %v6126_v53, 0.0  ;;  %v6280_v52 = vld [vmem:[%s5296_s6] sm:$0xff] }
 0x252   : > { %v1842_v48 = vmul.f32 %v6081_v36, %v1767_v4  ;;  %2154 = vmatpush.bf16.xpose.msra.mxu0 %v5301_v5  ;;  %2168 = vmatpush.bf16.xpose.msra.mxu1 %v6246_v6  ;;  %vm1773_vm8 = vweird.f32 %v6107_v0  ;;  %vm1788_vm9 = vweird.f32 %v6219_v20  ;;  %v1793_v36 = vand.u32 2147483648, %v6185_v37  ;;  %v6255_v17 = vpop.eup %5046 }
 0x253   : > { %2016 = vmatpush.bf16.msrb.mxu2 %v5956_v54  ;;  %v1772_v24 = vadd.f32 %v6160_v27, %v1771_v11  ;;  %v1785_v33 = vmul.f32 %v6219_v20, %v1784_v50  ;;  %v1791_v19 = vand.u32 2147483647, %v6185_v37  ;;  %vm1775_vm10 = vmor %vm1773_vm8, %vm1774_vm7  ;;  %vm1778_vm11 = vcmp.eq.f32.partialorder %v1777_v42, 8.507059e+37 }
 0x254   : > { %v1852_v57 = vsub.f32 %v1842_v48, %v5753_v45  ;;  %2058 = vadd.xlane.f32.xlu0 %v2057_v16  ;;  %v1780_v0 = vor.u32 1.1754944e-38, %v1779_v21  ;;  %vm1787_vm12 = vweird.f32 %v6185_v37  ;;  %v1875_v54 = vpack.c.bf16 %v1865_v22, %v1865_v22 }
 0x255   : > { %v5049_v15 = vpop.eup %5048  ;;  %v1776_v41 = vsel %vm1775_vm10, %v6160_v27, %v1772_v24  ;;  %v1786_v47 = vadd.f32 %v6219_v20, %v1785_v33  ;;  %vm1789_vm13 = vmor %vm1787_vm12, %vm1788_vm9  ;;  %v1794_v23 = vor.u32 1.1754944e-38, %v1793_v36  ;;  %vm1792_vm14 = vcmp.eq.f32.partialorder %v1791_v19, 8.507059e+37 }
 0x256   : > { %v1862_v53 = vmul.f32 0.0004, %v1852_v57  ;;  %v1825_v38 = vmul.f32 %v5049_v15, %v6222_v18  ;;  %v1781_v35 = vsel %vm1778_vm11, %v1780_v0, %v1776_v41  ;;  %v2069_v27 = vsel %vm742_vm0, %v1865_v22, 0.0 }
 0x257   : > { %v1843_v12 = vmul.f32 %v6071_v8, %v1781_v35  ;;  %v1790_v37 = vsel %vm1789_vm13, %v6219_v20, %v1786_v47  ;;  %v1811_v1 = vmul.f32 %v6255_v17, %v6209_v61  ;;  %v1835_v8 = vand.u32 2147483648, %v6222_v18  ;;  %v6309_v47 = vld [vmem:[%s5296_s6 + $0x50] sm:$0xff] }
 0x258   : > { %v2060_v14 = vsel %vm742_vm0, %v1862_v53, 0.0  ;;  %v1795_v60 = vsel %vm1792_vm14, %v1794_v23, %v1790_v37  ;;  %v1826_v3 = vsub.f32 1.0, %v1825_v38  ;;  %v1872_v43 = vpack.c.bf16 %v1862_v53, %v1862_v53  ;;  %v6315_v23 = vld [vmem:[%s5296_s6 + $0x20] sm:$0xff] }
 0x259   : > { %2061 = vadd.xlane.f32.xlu2 %v2060_v14  ;;  %4839 = vmatmul.msk.bf16.vlgmr.msrb.gmra.mxu1 %vm1093_vm6, %v1875_v54  ;;  %v1853_v31 = vsub.f32 %v1843_v12, %v5708_v40  ;;  %v1844_v49 = vmul.f32 %v6104_v7, %v1795_v60  ;;  %vm1830_vm15 = vweird.f32 %v5049_v15  ;;  %v1833_v39 = vand.u32 2147483647, %v6222_v18  ;;  %v6320_v12 = vld [vmem:[%s5296_s6 + $0x30] sm:$0xff]  ;;  %v6324_v37 = vld [vmem:[%s5296_s6 + $0x40] sm:$0xff] }
 0x25a   : > { %2155 = vmatpush.bf16.xpose.msra.mxu0 %v6280_v52  ;;  %2219 = vmatpush.bf16.xpose.msrb.mxu1 %v5348_v29  ;;  %v1827_v20 = vmul.f32 %v5049_v15, %v1826_v3  ;;  %v1812_v51 = vsub.f32 1.0, %v1811_v1  ;;  %vm1829_vm1 = vweird.f32 %v6222_v18  ;;  %v1821_v7 = vand.u32 2147483648, %v6209_v61  ;;  %v6336_v3 = vld [vmem:[%s5296_s6 + $0x70] sm:$0xff] }
 0x25b   : > { %v1863_v22 = vmul.f32 0.0004, %v1853_v31  ;;  %v1854_v4 = vsub.f32 %v1844_v49, %v5787_v34  ;;  %vm1816_vm2 = vweird.f32 %v6255_v17  ;;  %v1819_v48 = vand.u32 2147483647, %v6209_v61  ;;  %vm1831_vm3 = vmor %vm1829_vm1, %vm1830_vm15 }
 0x25c   : > { %v1828_v42 = vadd.f32 %v5049_v15, %v1827_v20  ;;  %v1813_v21 = vmul.f32 %v6255_v17, %v1812_v51  ;;  %v1836_v36 = vor.u32 1.1754944e-38, %v1835_v8  ;;  %vm1834_vm4 = vcmp.eq.f32.partialorder %v1833_v39, 8.507059e+37  ;;  %v7890_v20 = vld [vmem:[#allocation16_spill] sm:$0xff] }
 0x25d   : > { %v1873_v11 = vpack.c.bf16 %v1863_v22, %v1863_v22  ;;  %v2063_v50 = vsel %vm742_vm0, %v1863_v22, 0.0  ;;  %4836 = vmatmul.msk.bf16.vlgmr.msra.gmra.mxu2 %vm1093_vm6, %v1872_v43  ;;  %v1864_v16 = vmul.f32 0.0004, %v1854_v4  ;;  %vm1815_vm5 = vweird.f32 %v6209_v61  ;;  %v7892_v22 = vld [vmem:[#allocation15_spill] sm:$0xff] }
 0x25e   : > { %2064 = vadd.xlane.f32.xlu1 %v2063_v50  ;;  %v1832_v18 = vsel %vm1831_vm3, %v5049_v15, %v1828_v42  ;;  %v1814_v57 = vadd.f32 %v6255_v17, %v1813_v21  ;;  %2180 = vmatpush.bf16.xpose.msra.mxu2 %v5308_v10  ;;  %vm1817_vm7 = vmor %vm1815_vm5, %vm1816_vm2  ;;  %v1822_v0 = vor.u32 1.1754944e-38, %v1821_v7  ;;  %vm1820_vm8 = vcmp.eq.f32.partialorder %v1819_v48, 8.507059e+37  ;;  %v7894_v7 = vld [vmem:[#allocation5_spill] sm:$0xff] }
 0x25f   : > { %4837 = vmatmul.msk.bf16.vlgmr.msra.gmra.mxu3 %vm1093_vm6, %v1873_v11  ;;  %v2066_v24 = vsel %vm742_vm0, %v1864_v16, 0.0  ;;  %v1874_v33 = vpack.c.bf16 %v1864_v16, %v1864_v16  ;;  %v1837_v19 = vsel %vm1834_vm4, %v1836_v36, %v1832_v18  ;;  %v7896_v48 = vld [vmem:[#allocation17_spill] sm:$0xff]  ;;  %v7898_v16 = vld [vmem:[#allocation7_spill] sm:$0xff]  ;;  %v7899_v36 = vld [vmem:[#allocation20_spill] sm:$0xff] }
 0x260   : > { %2067 = vadd.xlane.f32.xlu0 %v2066_v24  ;;  %v1847_v15 = vmul.f32 %v6167_v26, %v1837_v19  ;;  %v1818_v61 = vsel %vm1817_vm7, %v6255_v17, %v1814_v57  ;;  %2193 = vmatpush.bf16.xpose.msra.mxu3 %v5313_v13  ;;  %v7901_v19 = vld [vmem:[#allocation21_spill] sm:$0xff] }
 0x261   : > { %2070 = vadd.xlane.f32.xlu2 %v2069_v27  ;;  %4838 = vmatmul.msk.bf16.vlgmr.msrb.gmra.mxu0 %vm1093_vm6, %v1874_v33  ;;  %v1823_v54 = vsel %vm1820_vm8, %v1822_v0, %v1818_v61  ;;  %v6332_v27 = vld [vmem:[%s5296_s6 + $0x60] sm:$0xff] }
 0x262   : > { %v1857_v53 = vsub.f32 %v1847_v15, %v5834_v44  ;;  %v1846_v41 = vmul.f32 %v6151_v25, %v1823_v54  ;;  %2206 = vmatpush.bf16.xpose.msrb.mxu0 %v5346_v28  ;;  %2220 = vmatpush.bf16.xpose.msrb.mxu1 %v6309_v47  ;;  %v7903_v15 = vld [vmem:[#allocation3_spill] sm:$0xff] }
 0x264   : > { %v1867_v26 = vmul.f32 0.0004, %v1857_v53  ;;  %v1856_v17 = vsub.f32 %v1846_v41, %v5857_v62  ;;  %v7904_v41 = vld [vmem:[#allocation18_spill] sm:$0xff] }
 0x266   : > { %v2075_v38 = vsel %vm742_vm0, %v1867_v26, 0.0  ;;  %v1866_v35 = vmul.f32 0.0004, %v1856_v17  ;;  %2181 = vmatpush.bf16.xpose.msra.mxu2 %v6315_v23  ;;  %v1877_v60 = vpack.c.bf16 %v1867_v26, %v1867_v26 }
 0x268   : > { %2076 = vadd.xlane.f32.xlu0 %v2075_v38  ;;  %v2072_v25 = vsel %vm742_vm0, %v1866_v35, 0.0  ;;  %v1876_v14 = vpack.c.bf16 %v1866_v35, %v1866_v35  ;;  %2194 = vmatpush.bf16.xpose.msra.mxu3 %v6320_v12  ;;  %v7906_v38 = vld [vmem:[#allocation19_spill] sm:$0xff] }
 0x269   : > { %2073 = vadd.xlane.f32.xlu1 %v2072_v25 }
 0x26a   : > { %2207 = vmatpush.bf16.xpose.msrb.mxu0 %v6324_v37 }
 0x26d   : > { %4840 = vmatmul.msk.bf16.vlgmr.msrb.gmra.mxu2 %vm1093_vm6, %v1876_v14 }
 0x26e   : > { %2232 = vmatpush.bf16.xpose.msrb.mxu2 %v5350_v30 }
 0x26f   : > { %4841 = vmatmul.msk.bf16.vlgmr.msrb.gmra.mxu3 %vm1093_vm6, %v1877_v60 }
 0x270   : > { %2245 = vmatpush.bf16.xpose.msrb.mxu3 %v5354_v32 }
 0x276   : > { %2233 = vmatpush.bf16.xpose.msrb.mxu2 %v6332_v27 }
 0x278   : > { %2246 = vmatpush.bf16.xpose.msrb.mxu3 %v6336_v3 }
 0x2b9   : > { %v2053_v1 = vpop.xlane.xlu2 %2052 }
 0x2ba   : > { %v6340_v43 = vsub.f32 %v5889_v2, %v2053_v1  ;;  %v7908_v1 = vld [vmem:[#allocation6_spill] sm:$0xff] }
 0x2bc   : > { %7888 = vst [vmem:[#allocation32_spill] sm:$0xff] %v6340_v43  ;;  %2105 = vperm.xlu1 %4958, %v6340_v43  }
 0x2bf   : > { %v2050_v31 = vpop.xlane.xlu0 %2049 }
 0x2c0   : > { %v6344_v49 = vsub.f32 %v5893_v56, %v2050_v31  ;;  %v7909_v31 = vld [vmem:[#allocation23_spill] sm:$0xff] }
 0x2c2   : > { %7889 = vst [vmem:[#allocation33_spill] sm:$0xff] %v6344_v49  ;;  %2100 = vperm.xlu2 %4959, %v6344_v49  }
 0x2c3   : > { %v2056_v8 = vpop.xlane.xlu1 %2055 }
 0x2c4   : > { %v6348_v39 = vsub.f32 %v7890_v20, %v2056_v8  ;;  %v7911_v20 = vld [vmem:[#allocation24_spill] sm:$0xff] }
 0x2c6   : > { %7891 = vst [vmem:[#allocation16_spill] sm:$0xff] %v6348_v39  ;;  %2110 = vperm.xlu0 %4957, %v6348_v39   ;;  %v1938_v51 = vpop.f32.mrf.mxu1 }
 0x2c7   : > { %v6352_v4 = vsub.f32 %v7892_v22, %v1938_v51  ;;  %v2059_v2 = vpop.xlane.xlu0 %2058 }
 0x2c8   : > { %v6355_v42 = vsub.f32 %v7894_v7, %v2059_v2  ;;  %v7913_v7 = vld [vmem:[#allocation22_spill] sm:$0xff] }
 0x2c9   : > { %7893 = vst [vmem:[#allocation15_spill] sm:$0xff] %v6352_v4  ;;  %v2091_v56 = vpack.c.bf16 %v6352_v4, %v6352_v4 }
 0x2ca   : > { %7895 = vst [vmem:[#allocation5_spill] sm:$0xff] %v6355_v42  ;;  %v1906_v21 = vpop.f32.mrf.mxu3  ;;  %2115 = vperm.xlu2 %4959, %v6355_v42  }
 0x2cb   : > { %v6361_v11 = vsub.f32 %v7896_v48, %v1906_v21  ;;  %2195 = vmatmul.bf16.vlgmr.msra.gmra.mxu3 %v2091_v56  ;;  %v7915_v21 = vld [vmem:[#allocation2_spill] sm:$0xff]  ;;  %v6400_v48 = vld [vmem:[%s5296_s6 + $0x90] sm:$0xff] }
 0x2cc   : > { %v2062_v50 = vpop.xlane.xlu2 %2061  ;;  %2653 = vmatpush.bf16.msra.mxu3 %v7898_v16 }
 0x2cd   : > { %7897 = vst [vmem:[#allocation17_spill] sm:$0xff] %v6361_v11  ;;  %v6365_v18 = vsub.f32 %v7899_v36, %v2062_v50  ;;  %v2089_v57 = vpack.c.bf16 %v6361_v11, %v6361_v11 }
 0x2ce   : > { %v1922_v24 = vpop.f32.mrf.mxu0  ;;  %v1940_v33 = vpop.f32.mrf.mxu1 }
 0x2cf   : > { %7900 = vst [vmem:[#allocation20_spill] sm:$0xff] %v6365_v18  ;;  %v6370_v0 = vsub.f32 %v7901_v19, %v1922_v24  ;;  %2120 = vperm.xlu0 %4957, %v6365_v18   ;;  %2169 = vmatmul.bf16.vlgmr.msra.gmra.mxu1 %v2089_v57  ;;  %v7916_v24 = vld [vmem:[#allocation12_spill] sm:$0xff]  ;;  %v7917_v33 = vld [vmem:[#allocation25_spill] sm:$0xff] }
 0x2d0   : > { %2271 = vmatpush.bf16.xpose.msra.mxu1 %v7903_v15  ;;  %2654 = vmatpush.bf16.msra.mxu3 %v6246_v6  ;;  %v1890_v61 = vpop.f32.mrf.mxu2 }
 0x2d1   : > { %7902 = vst [vmem:[#allocation21_spill] sm:$0xff] %v6370_v0  ;;  %v2090_v54 = vpack.c.bf16 %v6370_v0, %v6370_v0  ;;  %v2065_v53 = vpop.xlane.xlu1 %2064  ;;  %v6378_v26 = vsub.f32 %v7904_v41, %v1890_v61 }
 0x2d2   : > { %v1908_v17 = vpop.f32.mrf.mxu3  ;;  %v6381_v35 = vsub.f32 %v7906_v38, %v2065_v53  ;;  %v7921_v38 = vld [vmem:[#allocation29_spill] sm:$0xff] }
 0x2d3   : > { %7905 = vst [vmem:[#allocation18_spill] sm:$0xff] %v6378_v26  ;;  %2182 = vmatmul.bf16.vlgmr.msra.gmra.mxu2 %v2090_v54  ;;  %v2088_v25 = vpack.c.bf16 %v6378_v26, %v6378_v26  ;;  %v2068_v14 = vpop.xlane.xlu0 %2067  ;;  %v7919_v54 = vld [vmem:[#allocation27_spill] sm:$0xff] }
 0x2d4   : > { %7907 = vst [vmem:[#allocation19_spill] sm:$0xff] %v6381_v35  ;;  %v2071_v60 = vpop.xlane.xlu2 %2070  ;;  %2637 = vmatpush.bf16.msra.mxu2 %v7908_v1  ;;  %2125 = vperm.xlu1 %4958, %v6381_v35   ;;  %v6388_v8 = vsub.f32 %v7909_v31, %v2068_v14 }
 0x2d5   : > { %v6391_v51 = vsub.f32 %v7911_v20, %v2071_v60  ;;  %2156 = vmatmul.bf16.vlgmr.msra.gmra.mxu0 %v2088_v25  ;;  %v7923_v60 = vld [vmem:[#allocation28_spill] sm:$0xff] }
 0x2d6   : > { %7910 = vst [vmem:[#allocation23_spill] sm:$0xff] %v6388_v8  ;;  %v1924_v22 = vpop.f32.mrf.mxu0  ;;  %v2002_v2 = vpop.f32.mrf.mxu1  ;;  %2130 = vperm.xlu2 %4959, %v6388_v8   ;;  %2258 = vmatpush.bf16.xpose.msra.mxu0 %v7915_v21 }
 0x2d7   : > { %7912 = vst [vmem:[#allocation24_spill] sm:$0xff] %v6391_v51  ;;  %2135 = vperm.xlu0 %4957, %v6391_v51   ;;  %v6396_v56 = vsub.f32 %v7913_v7, %v2002_v2  ;;  %v7925_v7 = vld [vmem:[#allocation26_spill] sm:$0xff] }
 0x2d8   : > { %2272 = vmatpush.bf16.xpose.msra.mxu1 %v6400_v48  ;;  %v1892_v50 = vpop.f32.mrf.mxu2  ;;  %2638 = vmatpush.bf16.msra.mxu2 %v6280_v52  ;;  %v6419_v52 = vld [vmem:[%s5296_s6 + $0x80] sm:$0xff] }
 0x2d9   : > { %7914 = vst [vmem:[#allocation22_spill] sm:$0xff] %v6396_v56  ;;  %v2095_v36 = vpack.c.bf16 %v6396_v56, %v6396_v56 }
 0x2db   : > { %2247 = vmatmul.bf16.vlgmr.msrb.gmra.mxu3 %v2095_v36  ;;  %v2077_v57 = vpop.xlane.xlu0 %2076  ;;  %v7927_v36 = vld [vmem:[#allocation11_spill] sm:$0xff] }
 0x2dc   : > { %2717 = vmatpush.bf16.msrb.mxu3 %v7916_v24  ;;  %v6408_v19 = vsub.f32 %v7917_v33, %v2077_v57  ;;  %v2074_v61 = vpop.xlane.xlu1 %2073  ;;  %v7928_v33 = vld [vmem:[#allocation8_spill] sm:$0xff] }
 0x2dd   : > { %v6411_v53 = vsub.f32 %v7919_v54, %v2074_v61  ;;  %v7929_v54 = vld [vmem:[#allocation9_spill] sm:$0xff] }
 0x2de   : > { %7918 = vst [vmem:[#allocation25_spill] sm:$0xff] %v6408_v19  ;;  %v2004_v41 = vpop.f32.mrf.mxu1  ;;  %v1986_v17 = vpop.f32.mrf.mxu0  ;;  %2145 = vperm.xlu2 %4959, %v6408_v19   ;;  %2259 = vmatpush.bf16.xpose.msra.mxu0 %v6419_v52 }
 0x2df   : > { %7920 = vst [vmem:[#allocation27_spill] sm:$0xff] %v6411_v53  ;;  %v6415_v25 = vsub.f32 %v7921_v38, %v1986_v17  ;;  %2140 = vperm.xlu1 %4958, %v6411_v53   ;;  %v7930_v38 = vld [vmem:[#allocation31_spill] sm:$0xff] }
 0x2e0   : > { %v1954_v14 = vpop.f32.mrf.mxu2  ;;  %2718 = vmatpush.bf16.msrb.mxu3 %v6309_v47 }
 0x2e1   : > { %7922 = vst [vmem:[#allocation29_spill] sm:$0xff] %v6415_v25  ;;  %v6424_v31 = vsub.f32 %v7923_v60, %v1954_v14  ;;  %v2094_v20 = vpack.c.bf16 %v6415_v25, %v6415_v25 }
 0x2e2   : > { %v1970_v22 = vpop.f32.mrf.mxu3 }
 0x2e3   : > { %7924 = vst [vmem:[#allocation28_spill] sm:$0xff] %v6424_v31  ;;  %v2092_v2 = vpack.c.bf16 %v6424_v31, %v6424_v31  ;;  %v6431_v50 = vsub.f32 %v7925_v7, %v1970_v22  ;;  %2234 = vmatmul.bf16.vlgmr.msrb.gmra.mxu2 %v2094_v20  ;;  %v7932_v22 = vld [vmem:[#allocation30_spill] sm:$0xff] }
 0x2e4   : > { %2701 = vmatpush.bf16.msrb.mxu2 %v7927_v36 }
 0x2e5   : > { %7926 = vst [vmem:[#allocation26_spill] sm:$0xff] %v6431_v50  ;;  %v2093_v57 = vpack.c.bf16 %v6431_v50, %v6431_v50  ;;  %2208 = vmatmul.bf16.vlgmr.msrb.gmra.mxu0 %v2092_v2 }
 0x2e6   : > { %v1988_v47 = vpop.f32.mrf.mxu0  ;;  %2669 = vmatpush.bf16.msrb.mxu0 %v7928_v33 }
 0x2e7   : > { %2221 = vmatmul.bf16.vlgmr.msrb.gmra.mxu1 %v2093_v57 }
 0x2e8   : > { %v1956_v61 = vpop.f32.mrf.mxu2  ;;  %2685 = vmatpush.bf16.msrb.mxu1 %v7929_v54  ;;  %2702 = vmatpush.bf16.msrb.mxu2 %v6324_v37  ;;  %v7934_v37 = vld [vmem:[#allocation13_spill] sm:$0xff] }
 0x2ea   : > { %v1972_v41 = vpop.f32.mrf.mxu3  ;;  %2670 = vmatpush.bf16.msrb.mxu0 %v6315_v23 }
 0x2ec   : > { %2686 = vmatpush.bf16.msrb.mxu1 %v6320_v12  ;;  %v7935_v12 = vld [vmem:[#allocation14_spill] sm:$0xff] }
 0x2f0   : > { %v2018_v17 = vpop.f32.mrf.mxu2 }
 0x2f1   : > { %v6442_v14 = vsub.f32 %v7930_v38, %v2018_v17 }
 0x2f2   : > { %v2034_v60 = vpop.f32.mrf.mxu3 }
 0x2f3   : > { %7931 = vst [vmem:[#allocation31_spill] sm:$0xff] %v6442_v14  ;;  %v2096_v20 = vpack.c.bf16 %v6442_v14, %v6442_v14  ;;  %v6447_v2 = vsub.f32 %v7932_v22, %v2034_v60 }
 0x2f5   : > { %7933 = vst [vmem:[#allocation30_spill] sm:$0xff] %v6447_v2  ;;  %v2097_v7 = vpack.c.bf16 %v6447_v2, %v6447_v2  ;;  %2260 = vmatmul.bf16.vlgmr.msra.gmra.mxu0 %v2096_v20 }
 0x2f6   : > { %2733 = vmatpush.bf16.msra.mxu0 %v7934_v37 }
 0x2f7   : > { %2273 = vmatmul.bf16.vlgmr.msra.gmra.mxu1 %v2097_v7 }
 0x2f8   : > { %v2020_v23 = vpop.f32.mrf.mxu2  ;;  %2749 = vmatpush.bf16.msra.mxu1 %v7935_v12 }
 0x2fa   : > { %v2036_v57 = vpop.f32.mrf.mxu3  ;;  %2734 = vmatpush.bf16.msra.mxu0 %v6332_v27 }
 0x2fc   : > { %2750 = vmatpush.bf16.msra.mxu1 %v6336_v3 }
 0x31c   : > { %v2101_v47 = vpop.permute.xlu2 %2100 }
 0x324   : > { %v2116_v60 = vpop.permute.xlu2 %2115 }
 0x32e   : > { %v2106_v41 = vpop.permute.xlu1 %2105 }
 0x338   : > { %v2111_v61 = vpop.permute.xlu0 %2110 }
 0x341   : > { %v2121_v57 = vpop.permute.xlu0 %2120 }
 0x349   : > { %v2136_v21 = vpop.permute.xlu0 %2135 }
 0x34c   : > { %v2170_v17 = vpop.f32.mrf.mxu1 }
 0x34d   : > { %v2171_v38 = vadd.f32 %v2170_v17, %v2106_v41 }
 0x34e   : > { %v2196_v22 = vpop.f32.mrf.mxu3 }
 0x34f   : > { %v2285_v20 = vsel %vm742_vm0, %v2171_v38, -inf  ;;  %v2197_v14 = vadd.f32 %v2196_v22, %v2116_v60 }
 0x350   : > { %v2286_v37 = vrot.slane %v2285_v20, 4 }
 0x351   : > { %v2299_v7 = vsel %vm742_vm0, %v2197_v14, -inf }
 0x352   : > { %v2287_v23 = vmax.f32 %v2285_v20, %v2286_v37  ;;  %v2300_v12 = vrot.slane %v2299_v7, 4  ;;  %v2157_v2 = vpop.f32.mrf.mxu0 }
 0x353   : > { %v2158_v27 = vadd.f32 %v2157_v2, %v2101_v47 }
 0x354   : > { %v2288_v33 = vrot.slane %v2287_v23, 2  ;;  %v2301_v3 = vmax.f32 %v2299_v7, %v2300_v12  ;;  %v2172_v36 = vpop.f32.mrf.mxu1 }
 0x355   : > { %v2278_v54 = vsel %vm742_vm0, %v2158_v27, -inf }
 0x356   : > { %v2289_v31 = vmax.f32 %v2287_v23, %v2288_v33  ;;  %v2183_v41 = vpop.f32.mrf.mxu2  ;;  %v2302_v17 = vrot.slane %v2301_v3, 2  ;;  %v2198_v25 = vpop.f32.mrf.mxu3  ;;  %v2279_v19 = vrot.slane %v2278_v54, 4 }
 0x357   : > { %v2184_v50 = vadd.f32 %v2183_v41, %v2111_v61 }
 0x358   : > { %v2290_v60 = vrot.slane %v2289_v31, 1  ;;  %v2303_v22 = vmax.f32 %v2301_v3, %v2302_v17  ;;  %v2280_v53 = vmax.f32 %v2278_v54, %v2279_v19 }
 0x359   : > { %v2292_v37 = vsel %vm742_vm0, %v2184_v50, -inf }
 0x35a   : > { %v2291_v20 = vmax.f32 %v2289_v31, %v2290_v60  ;;  %v2293_v51 = vrot.slane %v2292_v37, 4  ;;  %v2304_v8 = vrot.slane %v2303_v22, 1  ;;  %v2281_v2 = vrot.slane %v2280_v53, 2  ;;  %v2159_v47 = vpop.f32.mrf.mxu0 }
 0x35c   : > { %v2349_v12 = vsub.f32 %v2171_v38, %v2291_v20  ;;  %v2294_v36 = vmax.f32 %v2292_v37, %v2293_v51  ;;  %v2305_v7 = vmax.f32 %v2303_v22, %v2304_v8  ;;  %v2282_v33 = vmax.f32 %v2280_v53, %v2281_v2 }
 0x35e   : > { %v2360_v23 = vmul.f32 1.442695, %v2349_v12  ;;  %v2295_v1 = vrot.slane %v2294_v36, 2  ;;  %v2351_v25 = vsub.f32 %v2197_v14, %v2305_v7  ;;  %v2185_v24 = vpop.f32.mrf.mxu2  ;;  %v2248_v61 = vpop.f32.mrf.mxu3  ;;  %v2283_v41 = vrot.slane %v2282_v33, 1 }
 0x35f   : > { %v6459_v3 = vadd.f32 %v2248_v61, %v2136_v21  ;;  %v2126_v14 = vpop.permute.xlu1 %2125  ;;  %v2131_v7 = vpop.permute.xlu2 %2130 }
 0x360   : > { %5050 = vpow2.f32 %v2360_v23  ;;  %v2296_v19 = vmax.f32 %v2294_v36, %v2295_v1  ;;  %v2364_v31 = vmul.f32 1.442695, %v2351_v25  ;;  %v2284_v54 = vmax.f32 %v2282_v33, %v2283_v41 }
 0x361   : > { %v2327_v17 = vsel %vm742_vm0, %v6459_v3, -inf }
 0x362   : > { %v2297_v38 = vrot.slane %v2296_v19, 1  ;;  %5052 = vpow2.f32 %v2364_v31  ;;  %v2328_v8 = vrot.slane %v2327_v17, 4  ;;  %v2348_v51 = vsub.f32 %v2158_v27, %v2284_v54  ;;  %v2209_v53 = vpop.f32.mrf.mxu0 }
 0x363   : > { %v6463_v22 = vadd.f32 %v2209_v53, %v2121_v57 }
 0x364   : > { %v2298_v60 = vmax.f32 %v2296_v19, %v2297_v38  ;;  %v2329_v24 = vmax.f32 %v2327_v17, %v2328_v8  ;;  %v2358_v37 = vmul.f32 1.442695, %v2348_v51  ;;  %v2222_v21 = vpop.f32.mrf.mxu1 }
 0x365   : > { %v2306_v2 = vsel %vm742_vm0, %v6463_v22, -inf  ;;  %v6469_v47 = vadd.f32 %v2222_v21, %v2126_v14 }
 0x366   : > { %v6465_v20 = vpop.eup %5050  ;;  %v2350_v1 = vsub.f32 %v2184_v50, %v2298_v60  ;;  %v2330_v12 = vrot.slane %v2329_v24, 2  ;;  %v2250_v36 = vpop.f32.mrf.mxu3  ;;  %5054 = vpow2.f32 %v2358_v37  ;;  %v2307_v27 = vrot.slane %v2306_v2, 4 }
 0x367   : > { %v2385_v57 = vsel %vm742_vm0, %v6465_v20, 0.0  ;;  %v2235_v33 = vpop.f32.mrf.mxu2  ;;  %v2313_v50 = vsel %vm742_vm0, %v6469_v47, -inf }
 0x368   : > { %v6473_v23 = vpop.eup %5052  ;;  %v2386_v25 = vrot.slane %v2385_v57, 4  ;;  %v2362_v61 = vmul.f32 1.442695, %v2350_v1  ;;  %v6477_v41 = vadd.f32 %v2235_v33, %v2131_v7  ;;  %v2308_v31 = vmax.f32 %v2306_v2, %v2307_v27 }
 0x369   : > { %v2399_v19 = vsel %vm742_vm0, %v6473_v23, 0.0  ;;  %v2314_v54 = vrot.slane %v2313_v50, 4  ;;  %v2331_v17 = vmax.f32 %v2329_v24, %v2330_v12 }
 0x36a   : > { %v2387_v38 = vadd.f32 %v2386_v25, %v2385_v57  ;;  %5056 = vpow2.f32 %v2362_v61  ;;  %v2400_v8 = vrot.slane %v2399_v19, 4  ;;  %v2320_v51 = vsel %vm742_vm0, %v6477_v41, -inf  ;;  %v2211_v21 = vpop.f32.mrf.mxu0 }
 0x36b   : > { %v2309_v53 = vrot.slane %v2308_v31, 2  ;;  %v2315_v60 = vmax.f32 %v2313_v50, %v2314_v54  ;;  %v2321_v14 = vrot.slane %v2320_v51, 4  ;;  %v2332_v37 = vrot.slane %v2331_v17, 1 }
 0x36c   : > { %v2388_v1 = vrot.slane %v2387_v38, 2  ;;  %v2401_v36 = vadd.f32 %v2400_v8, %v2399_v19  ;;  %v6483_v7 = vpop.eup %5054  ;;  %v2224_v24 = vpop.f32.mrf.mxu1 }
 0x36d   : > { %v2310_v33 = vmax.f32 %v2308_v31, %v2309_v53  ;;  %v2316_v18 = vrot.slane %v2315_v60, 2  ;;  %v2322_v2 = vmax.f32 %v2320_v51, %v2321_v14  ;;  %v2333_v27 = vmax.f32 %v2331_v17, %v2332_v37 }
 0x36e   : > { %v2378_v12 = vsel %vm742_vm0, %v6483_v7, 0.0  ;;  %v2389_v57 = vadd.f32 %v2388_v1, %v2387_v38  ;;  %v2402_v25 = vrot.slane %v2401_v36, 2 }
 0x36f   : > { %v2379_v61 = vrot.slane %v2378_v12, 4  ;;  %v2311_v26 = vrot.slane %v2310_v33, 1  ;;  %v2317_v50 = vmax.f32 %v2315_v60, %v2316_v18  ;;  %v2323_v54 = vrot.slane %v2322_v2, 2  ;;  %v2237_v15 = vpop.f32.mrf.mxu2 }
 0x370   : > { %v6487_v21 = vpop.eup %5056  ;;  %v2390_v19 = vrot.slane %v2389_v57, 1  ;;  %v2403_v8 = vadd.f32 %v2402_v25, %v2401_v36  ;;  %v2355_v31 = vsub.f32 %v6459_v3, %v2333_v27 }
 0x371   : > { %v2380_v53 = vadd.f32 %v2379_v61, %v2378_v12  ;;  %v2392_v17 = vsel %vm742_vm0, %v6487_v21, 0.0  ;;  %v2312_v51 = vmax.f32 %v2310_v33, %v2311_v26  ;;  %v2318_v14 = vrot.slane %v2317_v50, 1 }
 0x372   : > { %v6492_v37 = vadd.f32 %v2390_v19, %v2389_v57  ;;  %v2393_v38 = vrot.slane %v2392_v17, 4  ;;  %v2404_v1 = vrot.slane %v2403_v8, 1  ;;  %v2324_v24 = vmax.f32 %v2322_v2, %v2323_v54  ;;  %v2261_v56 = vpop.f32.mrf.mxu0  ;;  %v2146_v54 = vpop.permute.xlu2 %2145 }
 0x373   : > { %v2381_v18 = vrot.slane %v2380_v53, 2  ;;  %v2352_v15 = vsub.f32 %v6463_v22, %v2312_v51  ;;  %v2319_v60 = vmax.f32 %v2317_v50, %v2318_v14  ;;  %v2372_v0 = vmul.f32 1.442695, %v2355_v31  ;;  %v2141_v22 = vpop.permute.xlu1 %2140 }
 0x374   : > { %5058 = vrcp.f32 %v6492_v37  ;;  %v2394_v3 = vadd.f32 %v2393_v38, %v2392_v17  ;;  %v6496_v36 = vadd.f32 %v2404_v1, %v2403_v8  ;;  %v2325_v27 = vrot.slane %v2324_v24, 1  ;;  %v2274_v57 = vpop.f32.mrf.mxu1 }
 0x375   : > { %v2382_v12 = vadd.f32 %v2381_v18, %v2380_v53  ;;  %v2366_v26 = vmul.f32 1.442695, %v2352_v15  ;;  %v2353_v33 = vsub.f32 %v6469_v47, %v2319_v60  ;;  %5060 = vpow2.f32 %v2372_v0 }
 0x376   : > { %v2395_v25 = vrot.slane %v2394_v3, 2  ;;  %5062 = vrcp.f32 %v6496_v36  ;;  %v2501_v61 = vand.u32 2147483648, %v6496_v36  ;;  %v2326_v8 = vmax.f32 %v2324_v24, %v2325_v27 }
 0x377   : > { %v2383_v2 = vrot.slane %v2382_v12, 1  ;;  %5064 = vpow2.f32 %v2366_v26  ;;  %v2368_v50 = vmul.f32 1.442695, %v2353_v33  ;;  %v6501_v31 = vadd.f32 %v2261_v56, %v2141_v22 }
 0x378   : > { %v2396_v19 = vadd.f32 %v2395_v25, %v2394_v3  ;;  %v2499_v47 = vand.u32 2147483647, %v6496_v36  ;;  %v6506_v0 = vadd.f32 %v2274_v57, %v2146_v54  ;;  %v2354_v14 = vsub.f32 %v6477_v41, %v2326_v8 }
 0x379   : > { %v6503_v53 = vadd.f32 %v2383_v2, %v2382_v12  ;;  %5066 = vpow2.f32 %v2368_v50  ;;  %v2334_v38 = vsel %vm742_vm0, %v6501_v31, -inf  ;;  %vm2495_vm9 = vweird.f32 %v6496_v36 }
 0x37a   : > { %v6508_v17 = vpop.eup %5058  ;;  %v2397_v51 = vrot.slane %v2396_v19, 1  ;;  %v2502_v56 = vor.u32 1.1754944e-38, %v2501_v61  ;;  %v2335_v24 = vrot.slane %v2334_v38, 4  ;;  %v2341_v18 = vsel %vm742_vm0, %v6506_v0, -inf  ;;  %v2263_v15 = vpop.f32.mrf.mxu0 }
 0x37b   : > { %v6513_v1 = vpop.eup %5060  ;;  %v2463_v60 = vmul.f32 %v6508_v17, %v6492_v37  ;;  %5068 = vrcp.f32 %v6503_v53  ;;  %v2370_v41 = vmul.f32 1.442695, %v2354_v14  ;;  %v2342_v12 = vrot.slane %v2341_v18, 4 }
 0x37c   : > { %v5063_v3 = vpop.eup %5062  ;;  %v2427_v27 = vsel %vm742_vm0, %v6513_v1, 0.0  ;;  %v6525_v33 = vadd.f32 %v2397_v51, %v2396_v19  ;;  %vm6528_vm10 = vcmp.eq.f32.partialorder %v2499_v47, 8.507059e+37  ;;  %v2336_v22 = vmax.f32 %v2334_v38, %v2335_v24  ;;  %v2276_v61 = vpop.f32.mrf.mxu1 }
 0x37d   : > { %v6523_v26 = vpop.eup %5064  ;;  %v2491_v57 = vmul.f32 %v5063_v3, %v6496_v36  ;;  %v2428_v2 = vrot.slane %v2427_v27, 4  ;;  %vm2496_vm11 = vweird.f32 %v5063_v3  ;;  %v2343_v54 = vmax.f32 %v2341_v18, %v2342_v12 }
 0x37e   : > { %v2406_v50 = vsel %vm742_vm0, %v6523_v26, 0.0  ;;  %v2464_v8 = vsub.f32 1.0, %v2463_v60  ;;  %5070 = vpow2.f32 %v2370_v41  ;;  %v2337_v35 = vrot.slane %v2336_v22, 2  ;;  %vm2497_vm12 = vmor %vm2495_vm9, %vm2496_vm11 }
 0x37f   : > { %v6534_v14 = vpop.eup %5066  ;;  %v2492_v15 = vsub.f32 1.0, %v2491_v57  ;;  %v2407_v19 = vrot.slane %v2406_v50, 4  ;;  %v2429_v51 = vadd.f32 %v2428_v2, %v2427_v27  ;;  %v2344_v11 = vrot.slane %v2343_v54, 2 }
 0x380   : > { %v2413_v47 = vsel %vm742_vm0, %v6534_v14, 0.0  ;;  %v2465_v38 = vmul.f32 %v6508_v17, %v2464_v8  ;;  %5072 = vrcp.f32 %v6525_v33  ;;  %v2338_v18 = vmax.f32 %v2336_v22, %v2337_v35 }
 0x381   : > { %v2493_v24 = vmul.f32 %v5063_v3, %v2492_v15  ;;  %v2408_v61 = vadd.f32 %v2407_v19, %v2406_v50  ;;  %v2414_v42 = vrot.slane %v2413_v47, 4  ;;  %v2430_v39 = vrot.slane %v2429_v51, 2  ;;  %v6539_v49 = vpop.eup %5068 }
 0x382   : > { %v2345_v60 = vmax.f32 %v2343_v54, %v2344_v11  ;;  %v6543_v41 = vadd.f32 %v6508_v17, %v2465_v38  ;;  %v2339_v50 = vrot.slane %v2338_v18, 1  ;;  %vm2468_vm13 = vweird.f32 %v6508_v17 }
 0x383   : > { %v2494_v27 = vadd.f32 %v5063_v3, %v2493_v24  ;;  %v2409_v12 = vrot.slane %v2408_v61, 2  ;;  %v2415_v57 = vadd.f32 %v2414_v42, %v2413_v47  ;;  %v2431_v2 = vadd.f32 %v2430_v39, %v2429_v51 }
 0x384   : > { %v2346_v8 = vrot.slane %v2345_v60, 1  ;;  %v2471_v15 = vand.u32 2147483647, %v6492_v37  ;;  %v6550_v19 = vpop.eup %5070  ;;  %v2340_v36 = vmax.f32 %v2338_v18, %v2339_v50  ;;  %vm2467_vm14 = vweird.f32 %v6492_v37 }
 0x385   : > { %v2498_v11 = vsel %vm2497_vm12, %v5063_v3, %v2494_v27  ;;  %v2410_v35 = vadd.f32 %v2409_v12, %v2408_v61  ;;  %v2416_v22 = vrot.slane %v2415_v57, 2  ;;  %v2432_v54 = vrot.slane %v2431_v2, 1  ;;  %vm6569_vm15 = vmor %vm2467_vm14, %vm2468_vm13 }
 0x386   : > { %v2503_v42 = vsel %vm6528_vm10, %v2502_v56, %v2498_v11  ;;  %v2420_v39 = vsel %vm742_vm0, %v6550_v19, 0.0  ;;  %v2347_v51 = vmax.f32 %v2345_v60, %v2346_v8  ;;  %v6557_v4 = vpop.eup %5072  ;;  %v2356_v3 = vsub.f32 %v6501_v31, %v2340_v36  ;;  %v7938_v56 = vld [vmem:[#allocation4_spill] sm:$0xff] }
 0x387   : > { %v2591_v47 = vmul.f32 %v6473_v23, %v2503_v42  ;;  %v2411_v38 = vrot.slane %v2410_v35, 1  ;;  %v2417_v24 = vadd.f32 %v2416_v22, %v2415_v57  ;;  %v2421_v16 = vrot.slane %v2420_v39, 4 }
 0x388   : > { %v6559_v43 = vadd.f32 %v2432_v54, %v2431_v2  ;;  %v2357_v61 = vsub.f32 %v6506_v0, %v2347_v51  ;;  %v2470_v0 = vsel %vm6569_vm15, %v6508_v17, %v6543_v41  ;;  %vm6583_vm1 = vcmp.eq.f32.partialorder %v2471_v15, 8.507059e+37 }
 0x389   : > { %v2601_v25 = vsub.f32 %v2591_v47, %v7938_v56  ;;  %v6565_v27 = vadd.f32 %v2411_v38, %v2410_v35  ;;  %v2418_v18 = vrot.slane %v2417_v24, 1  ;;  %v2422_v60 = vadd.f32 %v2421_v16, %v2420_v39 }
 0x38a   : > { %5074 = vrcp.f32 %v6559_v43  ;;  %v2557_v31 = vand.u32 2147483648, %v6559_v43  ;;  %v2555_v50 = vand.u32 2147483647, %v6559_v43  ;;  %v2374_v8 = vmul.f32 1.442695, %v2356_v3 }
 0x38b   : > { %v6579_v12 = vmul.f32 0.0004, %v2601_v25  ;;  %v6581_v57 = vadd.f32 %v2418_v18, %v2417_v24  ;;  %v2423_v16 = vrot.slane %v2422_v60, 2  ;;  %5076 = vrcp.f32 %v6565_v27 }
 0x38c   : > { %v2376_v11 = vmul.f32 1.442695, %v2357_v61  ;;  %v2473_v41 = vand.u32 2147483648, %v6492_v37  ;;  %vm2551_vm2 = vweird.f32 %v6559_v43  ;;  %v2558_v15 = vor.u32 1.1754944e-38, %v2557_v31 }
 0x38d   : > { %v2621_v35 = vpack.c.bf16 %v6579_v12, %v6579_v12  ;;  %5078 = vrcp.f32 %v6581_v57  ;;  %v2424_v17 = vadd.f32 %v2423_v16, %v2422_v60  ;;  %v2449_v22 = vmul.f32 %v6539_v49, %v6503_v53 }
 0x38e   : > { %5080 = vpow2.f32 %v2374_v8  ;;  %v2474_v42 = vor.u32 1.1754944e-38, %v2473_v41  ;;  %v2457_v39 = vand.u32 2147483647, %v6503_v53  ;;  %vm2453_vm3 = vweird.f32 %v6503_v53  ;;  %v7947_v8 = vld [vmem:[#allocation10_spill] sm:$0xff] }
 0x38f   : > { %v2425_v54 = vrot.slane %v2424_v17, 1  ;;  %5082 = vpow2.f32 %v2376_v11  ;;  %4845 = vmatmul.msk.bf16.vlgmr.msrb.gmra.mxu1 %vm1093_vm6, %v2621_v35  ;;  %v2450_v51 = vsub.f32 1.0, %v2449_v22  ;;  %v2459_v37 = vand.u32 2147483648, %v6503_v53 }
 0x390   : > { %v5075_v36 = vpop.eup %5074  ;;  %v2477_v47 = vmul.f32 %v6557_v4, %v6525_v33  ;;  %2917 = vmatpush.bf16.xpose.msrb.mxu1 %v5306_v9  ;;  %vm6604_vm4 = vcmp.eq.f32.partialorder %v2555_v50, 8.507059e+37  ;;  %v2475_v3 = vsel %vm6583_vm1, %v2474_v42, %v2470_v0  ;;  %vm2454_vm5 = vweird.f32 %v6539_v49 }
 0x391   : > { %v2547_v38 = vmul.f32 %v5075_v36, %v6559_v43  ;;  %vm2481_vm7 = vweird.f32 %v6525_v33  ;;  %v6612_v61 = vpop.eup %5076  ;;  %v6614_v25 = vadd.f32 %v2425_v54, %v2424_v17  ;;  %vm2552_vm8 = vweird.f32 %v5075_v36  ;;  %vm2455_vm11 = vmor %vm2453_vm3, %vm2454_vm5 }
 0x392   : > { %v2589_v18 = vmul.f32 %v6465_v20, %v2475_v3  ;;  %v2451_v60 = vmul.f32 %v6539_v49, %v2450_v51  ;;  %vm6620_vm9 = vcmp.eq.f32.partialorder %v2457_v39, 8.507059e+37  ;;  %v2460_v0 = vor.u32 1.1754944e-38, %v2459_v37  ;;  %vm6646_vm12 = vmor %vm2551_vm2, %vm2552_vm8 }
 0x393   : > { %v6618_v23 = vpop.eup %5078  ;;  %v2548_v31 = vsub.f32 1.0, %v2547_v38  ;;  %v2478_v2 = vsub.f32 1.0, %v2477_v47  ;;  %vm2482_vm10 = vweird.f32 %v6557_v4  ;;  %v2485_v20 = vand.u32 2147483647, %v6525_v33 }
 0x394   : > { %v6624_v50 = vpop.eup %5080  ;;  %v2599_v11 = vsub.f32 %v2589_v18, %v7947_v8  ;;  %v2452_v35 = vadd.f32 %v6539_v49, %v2451_v60  ;;  %v2487_v42 = vand.u32 2147483648, %v6525_v33  ;;  %vm6659_vm13 = vmor %vm2481_vm7, %vm2482_vm10  ;;  %5084 = vrcp.f32 %v6614_v25 }
 0x395   : > { %v6630_v17 = vpop.eup %5082  ;;  %v2549_v41 = vmul.f32 %v5075_v36, %v2548_v31  ;;  %v2434_v22 = vsel %vm742_vm0, %v6624_v50, 0.0  ;;  %v2479_v54 = vmul.f32 %v6557_v4, %v2478_v2  ;;  %vm2486_vm14 = vcmp.eq.f32.partialorder %v2485_v20, 8.507059e+37 }
 0x396   : > { %v2435_v39 = vrot.slane %v2434_v22, 4  ;;  %v2441_v51 = vsel %vm742_vm0, %v6630_v17, 0.0  ;;  %v2609_v37 = vmul.f32 0.0004, %v2599_v11  ;;  %v2456_v47 = vsel %vm2455_vm11, %v6539_v49, %v2452_v35 }
 0x397   : > { %v2550_v38 = vadd.f32 %v5075_v36, %v2549_v41  ;;  %v2442_v53 = vrot.slane %v2441_v51, 4  ;;  %v2461_v18 = vsel %vm6620_vm9, %v2460_v0, %v2456_v47  ;;  %v2480_v60 = vadd.f32 %v6557_v4, %v2479_v54 }
 0x398   : > { %v2436_v31 = vadd.f32 %v2435_v39, %v2434_v22  ;;  %v2801_v2 = vsel %vm742_vm0, %v2609_v37, 0.0  ;;  %v2619_v11 = vpack.c.bf16 %v2609_v37, %v2609_v37  ;;  %v2588_v49 = vmul.f32 %v6483_v7, %v2461_v18  ;;  %2918 = vmatpush.bf16.xpose.msrb.mxu1 %v6246_v6 }
 0x399   : > { %v2554_v16 = vsel %vm6646_vm12, %v5075_v36, %v2550_v38  ;;  %v2443_v0 = vadd.f32 %v2442_v53, %v2441_v51  ;;  %2802 = vadd.xlane.f32.xlu1 %v2801_v2  ;;  %v2484_v7 = vsel %vm6659_vm13, %v6557_v4, %v2480_v60  ;;  %v2488_v6 = vor.u32 1.1754944e-38, %v2487_v42 }
 0x39a   : > { %v2559_v33 = vsel %vm6604_vm4, %v2558_v15, %v2554_v16  ;;  %v2437_v35 = vrot.slane %v2436_v31, 2  ;;  %v2598_v41 = vsub.f32 %v2588_v49, %v5594_v55  ;;  %4843 = vmatmul.msk.bf16.vlgmr.msra.gmra.mxu3 %vm1093_vm6, %v2619_v11  ;;  %v2519_v36 = vmul.f32 %v6618_v23, %v6581_v57  ;;  %v6683_v3 = vpop.eup %5084 }
 0x39b   : > { %v2595_v22 = vmul.f32 %v6513_v1, %v2559_v33  ;;  %v2444_v54 = vrot.slane %v2443_v0, 2  ;;  %2781 = vmatpush.bf16.msra.mxu3 %v5736_v58  ;;  %v2489_v51 = vsel %vm2486_vm14, %v2488_v6, %v2484_v7  ;;  %vm2524_vm15 = vweird.f32 %v6618_v23 }
 0x39c   : > { %v2438_v39 = vadd.f32 %v2437_v35, %v2436_v31  ;;  %v2608_v4 = vmul.f32 0.0004, %v2598_v41  ;;  %v2590_v37 = vmul.f32 %v6487_v21, %v2489_v51  ;;  %v2520_v42 = vsub.f32 1.0, %v2519_v36 }
 0x39d   : > { %v2605_v15 = vsub.f32 %v2595_v22, %v5489_v63  ;;  %v2445_v24 = vadd.f32 %v2444_v54, %v2443_v0  ;;  %v2527_v38 = vand.u32 2147483647, %v6581_v57  ;;  %vm2523_vm1 = vweird.f32 %v6581_v57 }
 0x39e   : > { %v2439_v47 = vrot.slane %v2438_v39, 1  ;;  %v2798_v1 = vsel %vm742_vm0, %v2608_v4, 0.0  ;;  %v2618_v20 = vpack.c.bf16 %v2608_v4, %v2608_v4  ;;  %v2600_v60 = vsub.f32 %v2590_v37, %v5698_v46  ;;  %vm2525_vm2 = vmor %vm2523_vm1, %vm2524_vm15 }
 0x39f   : > { %v6685_v53 = vmul.f32 0.0004, %v2605_v15  ;;  %v2446_v18 = vrot.slane %v2445_v24, 1  ;;  %2799 = vadd.xlane.f32.xlu0 %v2798_v1  ;;  %v2521_v31 = vmul.f32 %v6618_v23, %v2520_v42  ;;  %2782 = vmatpush.bf16.msra.mxu3 %v6400_v48  ;;  %v2529_v2 = vand.u32 2147483648, %v6581_v57 }
 0x3a0   : > { %v6690_v21 = vadd.f32 %v2439_v47, %v2438_v39  ;;  %4842 = vmatmul.msk.bf16.vlgmr.msra.gmra.mxu2 %vm1093_vm6, %v2618_v20  ;;  %v2505_v11 = vmul.f32 %v6612_v61, %v6565_v27  ;;  %v2610_v16 = vmul.f32 0.0004, %v2600_v60  ;;  %vm2528_vm3 = vcmp.eq.f32.partialorder %v2527_v38, 8.507059e+37 }
 0x3a1   : > { %v2625_v49 = vpack.c.bf16 %v6685_v53, %v6685_v53  ;;  %v6699_v43 = vadd.f32 %v2446_v18, %v2445_v24  ;;  %v2522_v0 = vadd.f32 %v6618_v23, %v2521_v31  ;;  %2765 = vmatpush.bf16.msra.mxu2 %v5732_v59  ;;  %v2530_v48 = vor.u32 1.1754944e-38, %v2529_v2 }
 0x3a2   : > { %5086 = vrcp.f32 %v6690_v21  ;;  %v2506_v57 = vsub.f32 1.0, %v2505_v11  ;;  %v2804_v7 = vsel %vm742_vm0, %v2610_v16, 0.0  ;;  %v2620_v33 = vpack.c.bf16 %v2610_v16, %v2610_v16 }
 0x3a3   : > { %5088 = vrcp.f32 %v6699_v43  ;;  %v2526_v35 = vsel %vm2525_vm2, %v6618_v23, %v2522_v0  ;;  %4849 = vmatmul.msk.bf16.vlgmr.msra.gmra.mxu1 %vm1093_vm6, %v2625_v49  ;;  %2805 = vadd.xlane.f32.xlu2 %v2804_v7  ;;  %vm2510_vm4 = vweird.f32 %v6612_v61  ;;  %v2513_v22 = vand.u32 2147483647, %v6565_v27  ;;  %v6746_v49 = vld [vmem:[%s5296_s6 + $0x50] sm:$0xff] }
 0x3a4   : > { %v2531_v41 = vsel %vm2528_vm3, %v2530_v48, %v2526_v35  ;;  %v2507_v6 = vmul.f32 %v6612_v61, %v2506_v57  ;;  %2969 = vmatpush.bf16.xpose.msra.mxu1 %v5348_v29  ;;  %4844 = vmatmul.msk.bf16.vlgmr.msrb.gmra.mxu0 %vm1093_vm6, %v2620_v33  ;;  %v2515_v36 = vand.u32 2147483648, %v6565_v27  ;;  %v2533_v23 = vmul.f32 %v6683_v3, %v6614_v25 }
 0x3a5   : > { %v2593_v54 = vmul.f32 %v6534_v14, %v2531_v41  ;;  %2766 = vmatpush.bf16.msra.mxu2 %v6419_v52  ;;  %v2807_v39 = vsel %vm742_vm0, %v6579_v12, 0.0  ;;  %vm2509_vm5 = vweird.f32 %v6565_v27  ;;  %v2541_v51 = vand.u32 2147483647, %v6614_v25  ;;  %2904 = vmatpush.bf16.xpose.msrb.mxu0 %v5301_v5  ;;  %v6757_v41 = vld [vmem:[%s5296_s6] sm:$0xff] }
 0x3a6   : > { %v2508_v4 = vadd.f32 %v6612_v61, %v2507_v6  ;;  %vm2511_vm7 = vmor %vm2509_vm5, %vm2510_vm4  ;;  %v2516_v15 = vor.u32 1.1754944e-38, %v2515_v36  ;;  %v2534_v24 = vsub.f32 1.0, %v2533_v23  ;;  %vm2514_vm8 = vcmp.eq.f32.partialorder %v2513_v22, 8.507059e+37 }
 0x3a7   : > { %2808 = vadd.xlane.f32.xlu0 %v2807_v39  ;;  %v2603_v14 = vsub.f32 %v2593_v54, %v5708_v40  ;;  %v2543_v12 = vand.u32 2147483648, %v6614_v25  ;;  %vm2538_vm9 = vweird.f32 %v6683_v3  ;;  %vm2537_vm10 = vweird.f32 %v6614_v25 }
 0x3a8   : > { %v5087_v52 = vpop.eup %5086  ;;  %v2512_v37 = vsel %vm2511_vm7, %v6612_v61, %v2508_v4  ;;  %v2535_v1 = vmul.f32 %v6683_v3, %v2534_v24  ;;  %vm6735_vm11 = vcmp.eq.f32.partialorder %v2541_v51, 8.507059e+37  ;;  %vm2565_vm12 = vweird.f32 %v6690_v21  ;;  %vm2539_vm13 = vmor %vm2537_vm10, %vm2538_vm9 }
 0x3a9   : > { %v5089_v42 = vpop.eup %5088  ;;  %v2613_v27 = vmul.f32 0.0004, %v2603_v14  ;;  %v2517_v47 = vsel %vm2514_vm8, %v2516_v15, %v2512_v37  ;;  %v2561_v61 = vmul.f32 %v5087_v52, %v6690_v21  ;;  %vm2566_vm14 = vweird.f32 %v5087_v52 }
 0x3aa   : > { %v2592_v20 = vmul.f32 %v6523_v26, %v2517_v47  ;;  %v2536_v31 = vadd.f32 %v6683_v3, %v2535_v1  ;;  %v2544_v26 = vor.u32 1.1754944e-38, %v2543_v12  ;;  %v2575_v11 = vmul.f32 %v5089_v42, %v6699_v43  ;;  %vm2567_vm1 = vmor %vm2565_vm12, %vm2566_vm14 }
 0x3ab   : > { %v2623_v18 = vpack.c.bf16 %v2613_v27, %v2613_v27  ;;  %v2813_v60 = vsel %vm742_vm0, %v2613_v27, 0.0  ;;  %v2562_v25 = vsub.f32 1.0, %v2561_v61  ;;  %v2569_v0 = vand.u32 2147483647, %v6690_v21 }
 0x3ac   : > { %2814 = vadd.xlane.f32.xlu2 %v2813_v60  ;;  %v2602_v2 = vsub.f32 %v2592_v20, %v5753_v45  ;;  %2970 = vmatpush.bf16.xpose.msra.mxu1 %v6746_v49  ;;  %v2540_v16 = vsel %vm2539_vm13, %v6683_v3, %v2536_v31  ;;  %v2571_v48 = vand.u32 2147483648, %v6690_v21  ;;  %v2576_v35 = vsub.f32 1.0, %v2575_v11  ;;  %v6777_v20 = vld [vmem:[%s5296_s6 + $0x30] sm:$0xff] }
 0x3ad   : > { %4847 = vmatmul.msk.bf16.vlgmr.msrb.gmra.mxu3 %vm1093_vm6, %v2623_v18  ;;  %v2545_v7 = vsel %vm6735_vm11, %v2544_v26, %v2540_v16  ;;  %v2563_v33 = vmul.f32 %v5087_v52, %v2562_v25  ;;  %2905 = vmatpush.bf16.xpose.msrb.mxu0 %v6757_v41  ;;  %vm2580_vm15 = vweird.f32 %v5089_v42  ;;  %v2583_v3 = vand.u32 2147483647, %v6699_v43  ;;  %v6787_v18 = vld [vmem:[%s5296_s6 + $0x20] sm:$0xff]  ;;  %v6800_v26 = vld [vmem:[%s5296_s6 + $0x70] sm:$0xff] }
 0x3ae   : > { %v2612_v57 = vmul.f32 0.0004, %v2602_v2  ;;  %2943 = vmatpush.bf16.xpose.msrb.mxu3 %v5313_v13  ;;  %v2594_v6 = vmul.f32 %v6550_v19, %v2545_v7  ;;  %v2585_v22 = vand.u32 2147483648, %v6699_v43  ;;  %v2577_v39 = vmul.f32 %v5089_v42, %v2576_v35  ;;  %v6794_v2 = vld [vmem:[%s5296_s6 + $0x40] sm:$0xff] }
 0x3af   : > { %v2564_v23 = vadd.f32 %v5087_v52, %v2563_v33  ;;  %v2572_v51 = vor.u32 1.1754944e-38, %v2571_v48  ;;  %vm2570_vm2 = vcmp.eq.f32.partialorder %v2569_v0, 8.507059e+37  ;;  %vm2579_vm3 = vweird.f32 %v6699_v43  ;;  %v6804_v25 = vld [vmem:[%s5296_s6 + $0x60] sm:$0xff]  ;;  %v7954_v0 = vld [vmem:[#allocation32_spill] sm:$0xff] }
 0x3b0   : > { %v2810_v54 = vsel %vm742_vm0, %v2612_v57, 0.0  ;;  %v2622_v36 = vpack.c.bf16 %v2612_v57, %v2612_v57  ;;  %v2604_v4 = vsub.f32 %v2594_v6, %v5787_v34  ;;  %v2578_v14 = vadd.f32 %v5089_v42, %v2577_v39  ;;  %vm2581_vm4 = vmor %vm2579_vm3, %vm2580_vm15  ;;  %v7955_v57 = vld [vmem:[#allocation15_spill] sm:$0xff]  ;;  %v7959_v39 = vld [vmem:[#allocation16_spill] sm:$0xff] }
 0x3b1   : > { %2811 = vadd.xlane.f32.xlu1 %v2810_v54  ;;  %v2568_v19 = vsel %vm2567_vm1, %v5087_v52, %v2564_v23  ;;  %v2586_v37 = vor.u32 1.1754944e-38, %v2585_v22  ;;  %vm2584_vm5 = vcmp.eq.f32.partialorder %v2583_v3, 8.507059e+37  ;;  %v7956_v6 = vld [vmem:[#allocation7_spill] sm:$0xff]  ;;  %v7957_v3 = vld [vmem:[#allocation33_spill] sm:$0xff] }
 0x3b2   : > { %4846 = vmatmul.msk.bf16.vlgmr.msrb.gmra.mxu2 %vm1093_vm6, %v2622_v36  ;;  %v2614_v15 = vmul.f32 0.0004, %v2604_v4  ;;  %v2573_v24 = vsel %vm2570_vm2, %v2572_v51, %v2568_v19  ;;  %v2582_v21 = vsel %vm2581_vm4, %v5089_v42, %v2578_v14  ;;  %v6822_v36 = vld [vmem:[%s5296_s6 + $0x10] sm:$0xff]  ;;  %v7961_v19 = vld [vmem:[#allocation5_spill] sm:$0xff] }
 0x3b3   : > { %2930 = vmatpush.bf16.xpose.msrb.mxu2 %v5308_v10  ;;  %v2596_v12 = vmul.f32 %v6624_v50, %v2573_v24  ;;  %v2587_v52 = vsel %vm2584_vm5, %v2586_v37, %v2582_v21  ;;  %v2819_v50 = vsel %vm742_vm0, %v6685_v53, 0.0  ;;  %v7963_v24 = vld [vmem:[#allocation17_spill] sm:$0xff]  ;;  %v7965_v21 = vld [vmem:[#allocation19_spill] sm:$0xff] }
 0x3b4   : > { %v2624_v27 = vpack.c.bf16 %v2614_v15, %v2614_v15  ;;  %v2816_v47 = vsel %vm742_vm0, %v2614_v15, 0.0  ;;  %v2597_v43 = vmul.f32 %v6630_v17, %v2587_v52 }
 0x3b5   : > { %2817 = vadd.xlane.f32.xlu0 %v2816_v47  ;;  %v2606_v1 = vsub.f32 %v2596_v12, %v5857_v62 }
 0x3b6   : > { %2944 = vmatpush.bf16.xpose.msrb.mxu3 %v6777_v20  ;;  %4848 = vmatmul.msk.bf16.vlgmr.msra.gmra.mxu0 %vm1093_vm6, %v2624_v27  ;;  %v2607_v38 = vsub.f32 %v2597_v43, %v5834_v44 }
 0x3b7   : > { %v2616_v42 = vmul.f32 0.0004, %v2606_v1  ;;  %2956 = vmatpush.bf16.xpose.msra.mxu0 %v5346_v28  ;;  %v7967_v1 = vld [vmem:[#allocation22_spill] sm:$0xff] }
 0x3b8   : > { %v2617_v17 = vmul.f32 0.0004, %v2607_v38  ;;  %v7969_v38 = vld [vmem:[#allocation21_spill] sm:$0xff] }
 0x3b9   : > { %2820 = vadd.xlane.f32.xlu1 %v2819_v50  ;;  %v2822_v61 = vsel %vm742_vm0, %v2616_v42, 0.0  ;;  %v2626_v31 = vpack.c.bf16 %v2616_v42, %v2616_v42 }
 0x3ba   : > { %2823 = vadd.xlane.f32.xlu2 %v2822_v61  ;;  %v2627_v60 = vpack.c.bf16 %v2617_v17, %v2617_v17  ;;  %v2825_v53 = vsel %vm742_vm0, %v2617_v17, 0.0 }
 0x3bb   : > { %2931 = vmatpush.bf16.xpose.msrb.mxu2 %v6787_v18 }
 0x3bd   : > { %2826 = vadd.xlane.f32.xlu0 %v2825_v53  ;;  %4851 = vmatmul.msk.bf16.vlgmr.msra.gmra.mxu3 %vm1093_vm6, %v2627_v60  ;;  %v7971_v60 = vld [vmem:[#allocation3_spill] sm:$0xff] }
 0x3be   : > { %2995 = vmatpush.bf16.xpose.msra.mxu3 %v5354_v32 }
 0x3bf   : > { %2957 = vmatpush.bf16.xpose.msra.mxu0 %v6794_v2 }
 0x3c2   : > { %4850 = vmatmul.msk.bf16.vlgmr.msra.gmra.mxu2 %vm1093_vm6, %v2626_v31  ;;  %v7972_v31 = vld [vmem:[#allocation18_spill] sm:$0xff] }
 0x3c3   : > { %2982 = vmatpush.bf16.xpose.msra.mxu2 %v5350_v30 }
 0x3c6   : > { %2996 = vmatpush.bf16.xpose.msra.mxu3 %v6800_v26 }
 0x3cb   : > { %2983 = vmatpush.bf16.xpose.msra.mxu2 %v6804_v25 }
 0x40c   : > { %v2803_v11 = vpop.xlane.xlu1 %2802  ;;  %v2688_v16 = vpop.f32.mrf.mxu1 }
 0x40d   : > { %v6808_v48 = vsub.f32 %v7954_v0, %v2803_v11  ;;  %v6811_v7 = vsub.f32 %v7955_v57, %v2688_v16  ;;  %v7974_v16 = vld [vmem:[#allocation20_spill] sm:$0xff] }
 0x40f   : > { %2855 = vperm.xlu2 %4959, %v6808_v48   ;;  %v2841_v33 = vpack.c.bf16 %v6811_v7, %v6811_v7 }
 0x411   : > { %2945 = vmatmul.bf16.vlgmr.msrb.gmra.mxu3 %v2841_v33 }
 0x412   : > { %v2800_v35 = vpop.xlane.xlu0 %2799  ;;  %3403 = vmatpush.bf16.msrb.mxu3 %v7956_v6 }
 0x413   : > { %v6818_v22 = vsub.f32 %v7957_v3, %v2800_v35  ;;  %v7976_v3 = vld [vmem:[#allocation12_spill] sm:$0xff] }
 0x414   : > { %v2690_v54 = vpop.f32.mrf.mxu1 }
 0x415   : > { %7958 = vst [vmem:[#allocation4_spill] sm:$0xff] %v6818_v22  ;;  %2850 = vperm.xlu1 %4958, %v6818_v22  }
 0x416   : > { %3404 = vmatpush.bf16.msrb.mxu3 %v6822_v36  ;;  %v2806_v23 = vpop.xlane.xlu2 %2805 }
 0x417   : > { %v6826_v4 = vsub.f32 %v7959_v39, %v2806_v23  ;;  %v7977_v23 = vld [vmem:[#allocation6_spill] sm:$0xff] }
 0x419   : > { %7960 = vst [vmem:[#allocation10_spill] sm:$0xff] %v6826_v4  ;;  %2860 = vperm.xlu0 %4957, %v6826_v4  }
 0x41a   : > { %v2809_v51 = vpop.xlane.xlu0 %2808 }
 0x41b   : > { %v6830_v14 = vsub.f32 %v7961_v19, %v2809_v51  ;;  %v7978_v51 = vld [vmem:[#allocation2_spill] sm:$0xff]  ;;  %v7979_v19 = vld [vmem:[#allocation23_spill] sm:$0xff] }
 0x41d   : > { %7962 = vst [vmem:[#allocation32_spill] sm:$0xff] %v6830_v14  ;;  %2865 = vperm.xlu1 %4958, %v6830_v14   ;;  %v2656_v15 = vpop.f32.mrf.mxu3 }
 0x41e   : > { %v6834_v37 = vsub.f32 %v7963_v24, %v2656_v15 }
 0x41f   : > { %v2815_v12 = vpop.xlane.xlu2 %2814 }
 0x420   : > { %7964 = vst [vmem:[#allocation15_spill] sm:$0xff] %v6834_v37  ;;  %v6837_v27 = vsub.f32 %v7965_v21, %v2815_v12  ;;  %v2839_v47 = vpack.c.bf16 %v6834_v37, %v6834_v37  ;;  %v2752_v52 = vpop.f32.mrf.mxu1  ;;  %v6870_v21 = vld [vmem:[%s5296_s6 + $0x90] sm:$0xff] }
 0x421   : > { %v6842_v43 = vsub.f32 %v7967_v1, %v2752_v52  ;;  %v2672_v50 = vpop.f32.mrf.mxu0  ;;  %v7981_v52 = vld [vmem:[#allocation24_spill] sm:$0xff] }
 0x422   : > { %7966 = vst [vmem:[#allocation7_spill] sm:$0xff] %v6837_v27  ;;  %2875 = vperm.xlu2 %4959, %v6837_v27   ;;  %2919 = vmatmul.bf16.vlgmr.msrb.gmra.mxu1 %v2839_v47  ;;  %v6846_v61 = vsub.f32 %v7969_v38, %v2672_v50 }
 0x423   : > { %7968 = vst [vmem:[#allocation33_spill] sm:$0xff] %v6842_v43  ;;  %v2640_v42 = vpop.f32.mrf.mxu2  ;;  %v2845_v17 = vpack.c.bf16 %v6842_v43, %v6842_v43  ;;  %3021 = vmatpush.bf16.xpose.msrb.mxu1 %v7971_v60 }
 0x424   : > { %7970 = vst [vmem:[#allocation16_spill] sm:$0xff] %v6846_v61  ;;  %v2812_v53 = vpop.xlane.xlu1 %2811  ;;  %v6852_v11 = vsub.f32 %v7972_v31, %v2640_v42  ;;  %v2840_v57 = vpack.c.bf16 %v6846_v61, %v6846_v61  ;;  %v7983_v42 = vld [vmem:[#allocation27_spill] sm:$0xff] }
 0x425   : > { %v6855_v0 = vsub.f32 %v7974_v16, %v2812_v53  ;;  %v2658_v33 = vpop.f32.mrf.mxu3  ;;  %2997 = vmatmul.bf16.vlgmr.msra.gmra.mxu3 %v2845_v17  ;;  %v7985_v53 = vld [vmem:[#allocation26_spill] sm:$0xff] }
 0x426   : > { %7973 = vst [vmem:[#allocation5_spill] sm:$0xff] %v6852_v11  ;;  %v2838_v35 = vpack.c.bf16 %v6852_v11, %v6852_v11  ;;  %3467 = vmatpush.bf16.msra.mxu3 %v7976_v3  ;;  %2932 = vmatmul.bf16.vlgmr.msrb.gmra.mxu2 %v2840_v57  ;;  %v6887_v16 = vld [vmem:[%s5296_s6 + $0x80] sm:$0xff] }
 0x427   : > { %7975 = vst [vmem:[#allocation17_spill] sm:$0xff] %v6855_v0  ;;  %2870 = vperm.xlu0 %4957, %v6855_v0   ;;  %3387 = vmatpush.bf16.msrb.mxu2 %v7977_v23 }
 0x428   : > { %2906 = vmatmul.bf16.vlgmr.msrb.gmra.mxu0 %v2838_v35  ;;  %v2754_v54 = vpop.f32.mrf.mxu1  ;;  %v2818_v39 = vpop.xlane.xlu0 %2817 }
 0x429   : > { %3008 = vmatpush.bf16.xpose.msrb.mxu0 %v7978_v51  ;;  %v6866_v15 = vsub.f32 %v7979_v19, %v2818_v39  ;;  %v2674_v24 = vpop.f32.mrf.mxu0  ;;  %v7989_v39 = vld [vmem:[#allocation29_spill] sm:$0xff] }
 0x42a   : > { %3468 = vmatpush.bf16.msra.mxu3 %v6746_v49  ;;  %v7991_v24 = vld [vmem:[#allocation28_spill] sm:$0xff] }
 0x42b   : > { %7980 = vst [vmem:[#allocation19_spill] sm:$0xff] %v6866_v15  ;;  %v2642_v12 = vpop.f32.mrf.mxu2  ;;  %3022 = vmatpush.bf16.xpose.msrb.mxu1 %v6870_v21  ;;  %2880 = vperm.xlu1 %4958, %v6866_v15  }
 0x42c   : > { %v2821_v47 = vpop.xlane.xlu1 %2820  ;;  %3388 = vmatpush.bf16.msrb.mxu2 %v6757_v41  ;;  %v7987_v41 = vld [vmem:[#allocation25_spill] sm:$0xff] }
 0x42d   : > { %v6876_v1 = vsub.f32 %v7981_v52, %v2821_v47  ;;  %v2824_v50 = vpop.xlane.xlu2 %2823  ;;  %v7993_v47 = vld [vmem:[#allocation9_spill] sm:$0xff] }
 0x42e   : > { %v6880_v38 = vsub.f32 %v7983_v42, %v2824_v50 }
 0x42f   : > { %7982 = vst [vmem:[#allocation22_spill] sm:$0xff] %v6876_v1  ;;  %2885 = vperm.xlu0 %4957, %v6876_v1  }
 0x430   : > { %7984 = vst [vmem:[#allocation21_spill] sm:$0xff] %v6880_v38  ;;  %v2720_v49 = vpop.f32.mrf.mxu3  ;;  %v2827_v17 = vpop.xlane.xlu0 %2826  ;;  %2890 = vperm.xlu2 %4959, %v6880_v38  }
 0x431   : > { %v6883_v31 = vsub.f32 %v7985_v53, %v2720_v49  ;;  %3009 = vmatpush.bf16.xpose.msrb.mxu0 %v6887_v16  ;;  %v6891_v57 = vsub.f32 %v7987_v41, %v2827_v17  ;;  %v7994_v49 = vld [vmem:[#allocation11_spill] sm:$0xff]  ;;  %v7995_v17 = vld [vmem:[#allocation8_spill] sm:$0xff] }
 0x433   : > { %7986 = vst [vmem:[#allocation18_spill] sm:$0xff] %v6883_v31  ;;  %v2843_v33 = vpack.c.bf16 %v6883_v31, %v6883_v31  ;;  %v2736_v35 = vpop.f32.mrf.mxu0  ;;  %2895 = vperm.xlu1 %4958, %v6891_v57  }
 0x434   : > { %7988 = vst [vmem:[#allocation20_spill] sm:$0xff] %v6891_v57  ;;  %v6897_v19 = vsub.f32 %v7989_v39, %v2736_v35  ;;  %v7996_v35 = vld [vmem:[#allocation30_spill] sm:$0xff] }
 0x435   : > { %v2704_v54 = vpop.f32.mrf.mxu2  ;;  %2971 = vmatmul.bf16.vlgmr.msra.gmra.mxu1 %v2843_v33 }
 0x436   : > { %7990 = vst [vmem:[#allocation23_spill] sm:$0xff] %v6897_v19  ;;  %v6900_v12 = vsub.f32 %v7991_v24, %v2704_v54  ;;  %3435 = vmatpush.bf16.msra.mxu1 %v7993_v47  ;;  %v2844_v52 = vpack.c.bf16 %v6897_v19, %v6897_v19 }
 0x438   : > { %7992 = vst [vmem:[#allocation24_spill] sm:$0xff] %v6900_v12  ;;  %v2842_v50 = vpack.c.bf16 %v6900_v12, %v6900_v12  ;;  %v2722_v42 = vpop.f32.mrf.mxu3  ;;  %2984 = vmatmul.bf16.vlgmr.msra.gmra.mxu2 %v2844_v52  ;;  %v7998_v52 = vld [vmem:[#allocation31_spill] sm:$0xff] }
 0x439   : > { %3451 = vmatpush.bf16.msra.mxu2 %v7994_v49  ;;  %v8000_v42 = vld [vmem:[#allocation14_spill] sm:$0xff] }
 0x43a   : > { %2958 = vmatmul.bf16.vlgmr.msra.gmra.mxu0 %v2842_v50  ;;  %3436 = vmatpush.bf16.msra.mxu1 %v6777_v20 }
 0x43b   : > { %3419 = vmatpush.bf16.msra.mxu0 %v7995_v17  ;;  %v2738_v53 = vpop.f32.mrf.mxu0 }
 0x43d   : > { %v2706_v41 = vpop.f32.mrf.mxu2  ;;  %3452 = vmatpush.bf16.msra.mxu2 %v6794_v2 }
 0x43f   : > { %3420 = vmatpush.bf16.msra.mxu0 %v6787_v18  ;;  %v8001_v18 = vld [vmem:[#allocation13_spill] sm:$0xff] }
 0x440   : > { %v2784_v33 = vpop.f32.mrf.mxu3 }
 0x441   : > { %v6913_v54 = vsub.f32 %v7996_v35, %v2784_v33 }
 0x443   : > { %7997 = vst [vmem:[#allocation27_spill] sm:$0xff] %v6913_v54  ;;  %v2847_v39 = vpack.c.bf16 %v6913_v54, %v6913_v54 }
 0x445   : > { %v2768_v24 = vpop.f32.mrf.mxu2  ;;  %3023 = vmatmul.bf16.vlgmr.msrb.gmra.mxu1 %v2847_v39 }
 0x446   : > { %v6918_v50 = vsub.f32 %v7998_v52, %v2768_v24  ;;  %3499 = vmatpush.bf16.msrb.mxu1 %v8000_v42 }
 0x448   : > { %7999 = vst [vmem:[#allocation26_spill] sm:$0xff] %v6918_v50  ;;  %v2846_v20 = vpack.c.bf16 %v6918_v50, %v6918_v50  ;;  %v2786_v2 = vpop.f32.mrf.mxu3 }
 0x44a   : > { %3010 = vmatmul.bf16.vlgmr.msrb.gmra.mxu0 %v2846_v20  ;;  %3500 = vmatpush.bf16.msrb.mxu1 %v6800_v26 }
 0x44b   : > { %3483 = vmatpush.bf16.msrb.mxu0 %v8001_v18 }
 0x44d   : > { %v2770_v53 = vpop.f32.mrf.mxu2 }
 0x44f   : > { %3484 = vmatpush.bf16.msrb.mxu0 %v6804_v25 }
 0x469   : > { %v2856_v54 = vpop.permute.xlu2 %2855 }
 0x487   : > { %v2851_v41 = vpop.permute.xlu1 %2850 }
 0x48b   : > { %v2861_v33 = vpop.permute.xlu0 %2860 }
 0x48f   : > { %v2866_v35 = vpop.permute.xlu1 %2865 }
 0x494   : > { %v2946_v24 = vpop.f32.mrf.mxu3 }
 0x495   : > { %v2947_v52 = vadd.f32 %v2946_v24, %v2866_v35 }
 0x497   : > { %v3049_v39 = vsel %vm742_vm0, %v2947_v52, -inf }
 0x498   : > { %v3050_v42 = vrot.slane %v3049_v39, 4 }
 0x499   : > { %v6927_v49 = vpop.permute.xlu0 %2870 }
 0x49a   : > { %v3051_v20 = vmax.f32 %v3049_v39, %v3050_v42 }
 0x49c   : > { %v3052_v18 = vrot.slane %v3051_v20, 2  ;;  %v2948_v47 = vpop.f32.mrf.mxu3 }
 0x49e   : > { %v3053_v25 = vmax.f32 %v3051_v20, %v3052_v18 }
 0x49f   : > { %v2920_v2 = vpop.f32.mrf.mxu1 }
 0x4a0   : > { %v2921_v50 = vadd.f32 %v2920_v2, %v2856_v54  ;;  %v3054_v31 = vrot.slane %v3053_v25, 1 }
 0x4a1   : > { %v2886_v23 = vpop.permute.xlu0 %2885 }
 0x4a2   : > { %v3035_v26 = vsel %vm742_vm0, %v2921_v50, -inf  ;;  %v3055_v24 = vmax.f32 %v3053_v25, %v3054_v31 }
 0x4a3   : > { %v3036_v53 = vrot.slane %v3035_v26, 4 }
 0x4a4   : > { %v3101_v42 = vsub.f32 %v2947_v52, %v3055_v24  ;;  %v2876_v24 = vpop.permute.xlu2 %2875 }
 0x4a5   : > { %v2907_v17 = vpop.f32.mrf.mxu0  ;;  %v3037_v19 = vmax.f32 %v3035_v26, %v3036_v53 }
 0x4a6   : > { %v2908_v12 = vadd.f32 %v2907_v17, %v2851_v41  ;;  %v3114_v20 = vmul.f32 1.442695, %v3101_v42 }
 0x4a7   : > { %v3038_v35 = vrot.slane %v3037_v19, 2  ;;  %v2922_v57 = vpop.f32.mrf.mxu1 }
 0x4a8   : > { %v3028_v38 = vsel %vm742_vm0, %v2908_v12, -inf  ;;  %v2998_v54 = vpop.f32.mrf.mxu3  ;;  %5090 = vpow2.f32 %v3114_v20 }
 0x4a9   : > { %v3029_v15 = vrot.slane %v3028_v38, 4  ;;  %v3039_v51 = vmax.f32 %v3037_v19, %v3038_v35  ;;  %v2933_v39 = vpop.f32.mrf.mxu2  ;;  %v6931_v47 = vadd.f32 %v2998_v54, %v2886_v23 }
 0x4aa   : > { %v2934_v18 = vadd.f32 %v2933_v39, %v2861_v33 }
 0x4ab   : > { %v3030_v2 = vmax.f32 %v3028_v38, %v3029_v15  ;;  %v3040_v1 = vrot.slane %v3039_v51, 1  ;;  %v3077_v17 = vsel %vm742_vm0, %v6931_v47, -inf }
 0x4ac   : > { %v3042_v57 = vsel %vm742_vm0, %v2934_v18, -inf  ;;  %v3078_v19 = vrot.slane %v3077_v17, 4 }
 0x4ad   : > { %v3031_v41 = vrot.slane %v3030_v2, 2  ;;  %v3041_v31 = vmax.f32 %v3039_v51, %v3040_v1  ;;  %v2909_v26 = vpop.f32.mrf.mxu0  ;;  %v3043_v53 = vrot.slane %v3042_v57, 4 }
 0x4ae   : > { %v3079_v23 = vmax.f32 %v3077_v17, %v3078_v19  ;;  %v6936_v27 = vpop.eup %5090 }
 0x4af   : > { %v3032_v52 = vmax.f32 %v3030_v2, %v3031_v41  ;;  %v3099_v25 = vsub.f32 %v2921_v50, %v3041_v31  ;;  %v3044_v35 = vmax.f32 %v3042_v57, %v3043_v53  ;;  %v3149_v50 = vsel %vm742_vm0, %v6936_v27, 0.0 }
 0x4b0   : > { %v3000_v33 = vpop.f32.mrf.mxu3  ;;  %v3080_v61 = vrot.slane %v3079_v23, 2  ;;  %v3150_v41 = vrot.slane %v3149_v50, 4 }
 0x4b1   : > { %v3033_v15 = vrot.slane %v3032_v52, 1  ;;  %v3110_v38 = vmul.f32 1.442695, %v3099_v25  ;;  %v3045_v42 = vrot.slane %v3044_v35, 2  ;;  %v2935_v54 = vpop.f32.mrf.mxu2 }
 0x4b2   : > { %v2972_v39 = vpop.f32.mrf.mxu1  ;;  %v3081_v2 = vmax.f32 %v3079_v23, %v3080_v61  ;;  %v3151_v25 = vadd.f32 %v3150_v41, %v3149_v50 }
 0x4b3   : > { %v3034_v51 = vmax.f32 %v3032_v52, %v3033_v15  ;;  %5092 = vpow2.f32 %v3110_v38  ;;  %v6938_v1 = vadd.f32 %v2972_v39, %v2876_v24  ;;  %v3046_v20 = vmax.f32 %v3044_v35, %v3045_v42 }
 0x4b4   : > { %v3082_v53 = vrot.slane %v3081_v2, 1  ;;  %v3152_v61 = vrot.slane %v3151_v25, 2 }
 0x4b5   : > { %v3098_v17 = vsub.f32 %v2908_v12, %v3034_v51  ;;  %v3063_v31 = vsel %vm742_vm0, %v6938_v1, -inf  ;;  %v3047_v57 = vrot.slane %v3046_v20, 1 }
 0x4b6   : > { %v3064_v26 = vrot.slane %v3063_v31, 4  ;;  %v3083_v15 = vmax.f32 %v3081_v2, %v3082_v53 }
 0x4b7   : > { %v3108_v19 = vmul.f32 1.442695, %v3098_v17  ;;  %v2959_v33 = vpop.f32.mrf.mxu0  ;;  %v3048_v52 = vmax.f32 %v3046_v20, %v3047_v57  ;;  %v3153_v20 = vadd.f32 %v3152_v61, %v3151_v25  ;;  %v2881_v17 = vpop.permute.xlu1 %2880 }
 0x4b8   : > { %v6945_v24 = vadd.f32 %v2959_v33, %v6927_v49  ;;  %v3065_v35 = vmax.f32 %v3063_v31, %v3064_v26  ;;  %v3105_v49 = vsub.f32 %v6931_v47, %v3083_v15 }
 0x4b9   : > { %v6947_v38 = vpop.eup %5092  ;;  %5094 = vpow2.f32 %v3108_v19  ;;  %v3100_v23 = vsub.f32 %v2934_v18, %v3048_v52  ;;  %v3154_v26 = vrot.slane %v3153_v20, 1 }
 0x4ba   : > { %v3135_v12 = vsel %vm742_vm0, %v6947_v38, 0.0  ;;  %v3056_v42 = vsel %vm742_vm0, %v6945_v24, -inf  ;;  %v3066_v54 = vrot.slane %v3065_v35, 2  ;;  %v2974_v39 = vpop.f32.mrf.mxu1  ;;  %v3122_v33 = vmul.f32 1.442695, %v3105_v49 }
 0x4bb   : > { %v3136_v51 = vrot.slane %v3135_v12, 4  ;;  %v3057_v50 = vrot.slane %v3056_v42, 4  ;;  %v3112_v2 = vmul.f32 1.442695, %v3100_v23  ;;  %v2985_v31 = vpop.f32.mrf.mxu2  ;;  %v6958_v60 = vadd.f32 %v3154_v26, %v3153_v20 }
 0x4bc   : > { %v3067_v41 = vmax.f32 %v3065_v35, %v3066_v54  ;;  %v6954_v19 = vadd.f32 %v2985_v31, %v2881_v17 }
 0x4bd   : > { %v3137_v57 = vadd.f32 %v3136_v51, %v3135_v12  ;;  %v3058_v53 = vmax.f32 %v3056_v42, %v3057_v50  ;;  %5096 = vpow2.f32 %v3112_v2  ;;  %v3249_v31 = vand.u32 2147483647, %v6958_v60 }
 0x4be   : > { %v3068_v18 = vrot.slane %v3067_v41, 1  ;;  %v3070_v47 = vsel %vm742_vm0, %v6954_v19, -inf  ;;  %5098 = vpow2.f32 %v3122_v33  ;;  %v3251_v26 = vand.u32 2147483648, %v6958_v60 }
 0x4bf   : > { %v6956_v52 = vpop.eup %5094  ;;  %v3138_v39 = vrot.slane %v3137_v57, 2  ;;  %v3059_v25 = vrot.slane %v3058_v53, 2  ;;  %v2961_v15 = vpop.f32.mrf.mxu0  ;;  %v3071_v12 = vrot.slane %v3070_v47, 4  ;;  %5100 = vrcp.f32 %v6958_v60 }
 0x4c0   : > { %v3128_v35 = vsel %vm742_vm0, %v6956_v52, 0.0  ;;  %v3069_v61 = vmax.f32 %v3067_v41, %v3068_v18  ;;  %vm3245_vm7 = vweird.f32 %v6958_v60  ;;  %vm6983_vm8 = vcmp.eq.f32.partialorder %v3249_v31, 8.507059e+37 }
 0x4c1   : > { %v3129_v23 = vrot.slane %v3128_v35, 4  ;;  %v3139_v42 = vadd.f32 %v3138_v39, %v3137_v57  ;;  %v3060_v54 = vmax.f32 %v3058_v53, %v3059_v25  ;;  %v3072_v49 = vmax.f32 %v3070_v47, %v3071_v12  ;;  %v2896_v39 = vpop.permute.xlu1 %2895 }
 0x4c2   : > { %v3103_v51 = vsub.f32 %v6938_v1, %v3069_v61  ;;  %v3024_v17 = vpop.f32.mrf.mxu1  ;;  %v3252_v14 = vor.u32 1.1754944e-38, %v3251_v26 }
 0x4c3   : > { %v3130_v20 = vadd.f32 %v3129_v23, %v3128_v35  ;;  %v3140_v50 = vrot.slane %v3139_v42, 1  ;;  %v6966_v2 = vpop.eup %5096  ;;  %v3061_v41 = vrot.slane %v3060_v54, 1  ;;  %v2987_v33 = vpop.f32.mrf.mxu2  ;;  %v3073_v53 = vrot.slane %v3072_v49, 2 }
 0x4c4   : > { %v3118_v18 = vmul.f32 1.442695, %v3103_v51  ;;  %v3142_v1 = vsel %vm742_vm0, %v6966_v2, 0.0  ;;  %v6974_v25 = vpop.eup %5098  ;;  %v6977_v61 = vadd.f32 %v3024_v17, %v2896_v39  ;;  %v2891_v33 = vpop.permute.xlu2 %2890 }
 0x4c5   : > { %v3131_v15 = vrot.slane %v3130_v20, 2  ;;  %v6970_v57 = vadd.f32 %v3140_v50, %v3139_v42  ;;  %v3143_v47 = vrot.slane %v3142_v1, 4  ;;  %v3062_v35 = vmax.f32 %v3060_v54, %v3061_v41  ;;  %v5101_v12 = vpop.eup %5100 }
 0x4c6   : > { %5102 = vpow2.f32 %v3118_v18  ;;  %v3074_v42 = vmax.f32 %v3072_v49, %v3073_v53  ;;  %v3177_v51 = vsel %vm742_vm0, %v6974_v25, 0.0  ;;  %v3241_v3 = vmul.f32 %v5101_v12, %v6958_v60 }
 0x4c7   : > { %v3132_v23 = vadd.f32 %v3131_v15, %v3130_v20  ;;  %5104 = vrcp.f32 %v6970_v57  ;;  %v3011_v50 = vpop.f32.mrf.mxu0  ;;  %v3144_v11 = vadd.f32 %v3143_v47, %v3142_v1  ;;  %v3102_v54 = vsub.f32 %v6945_v24, %v3062_v35 }
 0x4c8   : > { %vm3246_vm9 = vweird.f32 %v5101_v12  ;;  %v3075_v17 = vrot.slane %v3074_v42, 1  ;;  %v3178_v20 = vrot.slane %v3177_v51, 4  ;;  %v6988_v41 = vadd.f32 %v3011_v50, %v2891_v33 }
 0x4c9   : > { %v3133_v49 = vrot.slane %v3132_v23, 1  ;;  %v3145_v18 = vrot.slane %v3144_v11, 2  ;;  %v3242_v15 = vsub.f32 1.0, %v3241_v3  ;;  %v3116_v39 = vmul.f32 1.442695, %v3102_v54  ;;  %vm3247_vm10 = vmor %vm3245_vm7, %vm3246_vm9 }
 0x4ca   : > { %v3076_v53 = vmax.f32 %v3074_v42, %v3075_v17  ;;  %v3179_v37 = vadd.f32 %v3178_v20, %v3177_v51  ;;  %v3084_v1 = vsel %vm742_vm0, %v6988_v41, -inf  ;;  %v3091_v31 = vsel %vm742_vm0, %v6977_v61, -inf  ;;  %v3026_v47 = vpop.f32.mrf.mxu1 }
 0x4cb   : > { %v3146_v24 = vadd.f32 %v3145_v18, %v3144_v11  ;;  %v3243_v35 = vmul.f32 %v5101_v12, %v3242_v15  ;;  %5106 = vpow2.f32 %v3116_v39  ;;  %v3085_v50 = vrot.slane %v3084_v1, 4 }
 0x4cc   : > { %v6994_v43 = vpop.eup %5102  ;;  %v3104_v42 = vsub.f32 %v6954_v19, %v3076_v53  ;;  %v3180_v51 = vrot.slane %v3179_v37, 2  ;;  %v7001_v54 = vadd.f32 %v3133_v49, %v3132_v23  ;;  %v3092_v15 = vrot.slane %v3091_v31, 4 }
 0x4cd   : > { %v6996_v33 = vpop.eup %5104  ;;  %v3163_v3 = vsel %vm742_vm0, %v6994_v43, 0.0  ;;  %v3244_v17 = vadd.f32 %v5101_v12, %v3243_v35  ;;  %v3086_v47 = vmax.f32 %v3084_v1, %v3085_v50  ;;  %v3147_v4 = vrot.slane %v3146_v24, 1 }
 0x4ce   : > { %v3164_v20 = vrot.slane %v3163_v3, 4  ;;  %v3120_v11 = vmul.f32 1.442695, %v3104_v42  ;;  %v3181_v18 = vadd.f32 %v3180_v51, %v3179_v37  ;;  %v3213_v26 = vmul.f32 %v6996_v33, %v6970_v57 }
 0x4cf   : > { %v3013_v39 = vpop.f32.mrf.mxu0  ;;  %v3248_v22 = vsel %vm3247_vm10, %v5101_v12, %v3244_v17  ;;  %v3087_v53 = vrot.slane %v3086_v47, 2  ;;  %v3093_v1 = vmax.f32 %v3091_v31, %v3092_v15  ;;  %v7019_v17 = vadd.f32 %v3147_v4, %v3146_v24 }
 0x4d0   : > { %v3165_v19 = vadd.f32 %v3164_v20, %v3163_v3  ;;  %v3253_v23 = vsel %vm6983_vm8, %v3252_v14, %v3248_v22  ;;  %5108 = vpow2.f32 %v3120_v11  ;;  %v3182_v49 = vrot.slane %v3181_v18, 1 }
 0x4d1   : > { %v7010_v35 = vpop.eup %5106  ;;  %5110 = vrcp.f32 %v7001_v54  ;;  %v3341_v37 = vmul.f32 %v6936_v27, %v3253_v23  ;;  %v3088_v50 = vmax.f32 %v3086_v47, %v3087_v53  ;;  %v3094_v3 = vrot.slane %v3093_v1, 2 }
 0x4d2   : > { %v3166_v60 = vrot.slane %v3165_v19, 2  ;;  %v3156_v42 = vsel %vm742_vm0, %v7010_v35, 0.0  ;;  %v7016_v12 = vadd.f32 %v3182_v49, %v3181_v18  ;;  %v3214_v51 = vsub.f32 1.0, %v3213_v26 }
 0x4d3   : > { %v3351_v22 = vsub.f32 %v3341_v37, %v7938_v56  ;;  %v3157_v14 = vrot.slane %v3156_v42, 4  ;;  %v3089_v31 = vrot.slane %v3088_v50, 1  ;;  %v3095_v26 = vmax.f32 %v3093_v1, %v3094_v3 }
 0x4d4   : > { %v3167_v0 = vadd.f32 %v3166_v60, %v3165_v19  ;;  %5112 = vrcp.f32 %v7016_v12  ;;  %v3307_v27 = vand.u32 2147483648, %v7016_v12  ;;  %v3305_v39 = vand.u32 2147483647, %v7016_v12 }
 0x4d5   : > { %v7023_v20 = vmul.f32 0.0004, %v3351_v22  ;;  %v3158_v47 = vadd.f32 %v3157_v14, %v3156_v42  ;;  %v3090_v15 = vmax.f32 %v3088_v50, %v3089_v31  ;;  %v3215_v53 = vmul.f32 %v6996_v33, %v3214_v51 }
 0x4d6   : > { %v3168_v11 = vrot.slane %v3167_v0, 1  ;;  %v7025_v18 = vpop.eup %5108  ;;  %5114 = vrcp.f32 %v7019_v17  ;;  %v3096_v50 = vrot.slane %v3095_v26, 1  ;;  %vm3301_vm11 = vweird.f32 %v7016_v12 }
 0x4d7   : > { %v7029_v19 = vpop.eup %5110  ;;  %v3371_v4 = vpack.c.bf16 %v7023_v20, %v7023_v20  ;;  %v3159_v24 = vrot.slane %v3158_v47, 2  ;;  %v3170_v49 = vsel %vm742_vm0, %v7025_v18, 0.0  ;;  %v3106_v60 = vsub.f32 %v6988_v41, %v3090_v15 }
 0x4d8   : > { %v7033_v23 = vadd.f32 %v3168_v11, %v3167_v0  ;;  %v3171_v37 = vrot.slane %v3170_v49, 4  ;;  %v3308_v42 = vor.u32 1.1754944e-38, %v3307_v27  ;;  %v3216_v3 = vadd.f32 %v6996_v33, %v3215_v53 }
 0x4d9   : > { %v3160_v1 = vadd.f32 %v3159_v24, %v3158_v47  ;;  %vm3218_vm12 = vweird.f32 %v6996_v33  ;;  %4855 = vmatmul.msk.bf16.vlgmr.msra.gmra.mxu1 %vm1093_vm6, %v3371_v4  ;;  %v3124_v14 = vmul.f32 1.442695, %v3106_v60  ;;  %v3097_v0 = vmax.f32 %v3095_v26, %v3096_v50 }
 0x4da   : > { %v5113_v51 = vpop.eup %5112  ;;  %v3172_v22 = vadd.f32 %v3171_v37, %v3170_v49  ;;  %v3221_v31 = vand.u32 2147483647, %v6970_v57  ;;  %3667 = vmatpush.bf16.xpose.msra.mxu1 %v5306_v9  ;;  %5116 = vrcp.f32 %v7033_v23  ;;  %vm7047_vm13 = vcmp.eq.f32.partialorder %v3305_v39, 8.507059e+37 }
 0x4db   : > { %v3161_v41 = vrot.slane %v3160_v1, 1  ;;  %v3297_v47 = vmul.f32 %v5113_v51, %v7016_v12  ;;  %vm3217_vm14 = vweird.f32 %v6970_v57  ;;  %vm3302_vm15 = vweird.f32 %v5113_v51 }
 0x4dc   : > { %v3173_v11 = vrot.slane %v3172_v22, 2  ;;  %5118 = vpow2.f32 %v3124_v14  ;;  %v3107_v15 = vsub.f32 %v6977_v61, %v3097_v0  ;;  %vm7055_vm1 = vmor %vm3217_vm14, %vm3218_vm12  ;;  %v3223_v53 = vand.u32 2147483648, %v6970_v57  ;;  %v7065_v24 = vpop.eup %5114 }
 0x4dd   : > { %v3298_v26 = vsub.f32 1.0, %v3297_v47  ;;  %v3220_v39 = vsel %vm7055_vm1, %v6996_v33, %v3216_v3  ;;  %v3199_v4 = vmul.f32 %v7029_v19, %v7001_v54  ;;  %v7067_v49 = vadd.f32 %v3161_v41, %v3160_v1  ;;  %vm3303_vm4 = vmor %vm3301_vm11, %vm3302_vm15 }
 0x4de   : > { %v3174_v61 = vadd.f32 %v3173_v11, %v3172_v22  ;;  %v3126_v37 = vmul.f32 1.442695, %v3107_v15  ;;  %vm3222_vm2 = vcmp.eq.f32.partialorder %v3221_v31, 8.507059e+37  ;;  %v3224_v50 = vor.u32 1.1754944e-38, %v3223_v53 }
 0x4df   : > { %v3299_v60 = vmul.f32 %v5113_v51, %v3298_v26  ;;  %v3200_v14 = vsub.f32 1.0, %v3199_v4  ;;  %vm3204_vm3 = vweird.f32 %v7029_v19  ;;  %v3207_v33 = vand.u32 2147483647, %v7001_v54 }
 0x4e0   : > { %v3175_v0 = vrot.slane %v3174_v61, 1  ;;  %5120 = vpow2.f32 %v3126_v37  ;;  %v3209_v57 = vand.u32 2147483648, %v7001_v54  ;;  %v7072_v3 = vpop.eup %5116  ;;  %v3225_v9 = vsel %vm3222_vm2, %v3224_v50, %v3220_v39 }
 0x4e1   : > { %v3300_v47 = vadd.f32 %v5113_v51, %v3299_v60  ;;  %v3201_v1 = vmul.f32 %v7029_v19, %v3200_v14  ;;  %v3227_v22 = vmul.f32 %v7065_v24, %v7019_v17  ;;  %5122 = vrcp.f32 %v7067_v49 }
 0x4e2   : > { %v7077_v31 = vpop.eup %5118  ;;  %v7080_v41 = vadd.f32 %v3175_v0, %v3174_v61  ;;  %v3339_v11 = vmul.f32 %v6947_v38, %v3225_v9  ;;  %vm3203_vm5 = vweird.f32 %v7001_v54  ;;  %3668 = vmatpush.bf16.xpose.msra.mxu1 %v6822_v36  ;;  %v3210_v38 = vor.u32 1.1754944e-38, %v3209_v57 }
 0x4e3   : > { %v3304_v15 = vsel %vm3303_vm4, %v5113_v51, %v3300_v47  ;;  %v3184_v26 = vsel %vm742_vm0, %v7077_v31, 0.0  ;;  %v3202_v39 = vadd.f32 %v7029_v19, %v3201_v1  ;;  %v3228_v53 = vsub.f32 1.0, %v3227_v22  ;;  %vm3205_vm7 = vmor %vm3203_vm5, %vm3204_vm3 }
 0x4e4   : > { %v3309_v4 = vsel %vm7047_vm13, %v3308_v42, %v3304_v15  ;;  %v3185_v61 = vrot.slane %v3184_v26, 4  ;;  %v3349_v12 = vsub.f32 %v3339_v11, %v7947_v8  ;;  %vm3208_vm8 = vcmp.eq.f32.partialorder %v3207_v33, 8.507059e+37 }
 0x4e5   : > { %v3345_v54 = vmul.f32 %v6974_v25, %v3309_v4  ;;  %v3206_v36 = vsel %vm3205_vm7, %v7029_v19, %v3202_v39  ;;  %v3229_v51 = vmul.f32 %v7065_v24, %v3228_v53  ;;  %vm3232_vm9 = vweird.f32 %v7065_v24 }
 0x4e6   : > { %v7099_v37 = vpop.eup %5120  ;;  %v3186_v60 = vadd.f32 %v3185_v61, %v3184_v26  ;;  %v3359_v50 = vmul.f32 0.0004, %v3349_v12  ;;  %v3211_v27 = vsel %vm3208_vm8, %v3210_v38, %v3206_v36  ;;  %vm3231_vm10 = vweird.f32 %v7019_v17 }
 0x4e7   : > { %v3355_v42 = vsub.f32 %v3345_v54, %v5489_v63  ;;  %v3191_v14 = vsel %vm742_vm0, %v7099_v37, 0.0  ;;  %v3338_v0 = vmul.f32 %v6956_v52, %v3211_v27  ;;  %v3230_v25 = vadd.f32 %v7065_v24, %v3229_v51  ;;  %v7107_v19 = vpop.eup %5122  ;;  %vm7119_vm11 = vmor %vm3231_vm10, %vm3232_vm9 }
 0x4e8   : > { %v3187_v33 = vrot.slane %v3186_v60, 2  ;;  %v3192_v57 = vrot.slane %v3191_v14, 4  ;;  %v3551_v47 = vsel %vm742_vm0, %v3359_v50, 0.0  ;;  %v3369_v9 = vpack.c.bf16 %v3359_v50, %v3359_v50 }
 0x4e9   : > { %v7110_v1 = vmul.f32 0.0004, %v3355_v42  ;;  %3552 = vadd.xlane.f32.xlu2 %v3551_v47  ;;  %v3348_v22 = vsub.f32 %v3338_v0, %v5594_v55  ;;  %v3235_v11 = vand.u32 2147483647, %v7019_v17  ;;  %5124 = vrcp.f32 %v7080_v41 }
 0x4ea   : > { %v3188_v52 = vadd.f32 %v3187_v33, %v3186_v60  ;;  %v3193_v15 = vadd.f32 %v3192_v57, %v3191_v14  ;;  %4853 = vmatmul.msk.bf16.vlgmr.msrb.gmra.mxu3 %vm1093_vm6, %v3369_v9  ;;  %v3237_v39 = vand.u32 2147483648, %v7019_v17  ;;  %v3234_v61 = vsel %vm7119_vm11, %v7065_v24, %v3230_v25 }
 0x4eb   : > { %v3375_v53 = vpack.c.bf16 %v7110_v1, %v7110_v1  ;;  %v3358_v4 = vmul.f32 0.0004, %v3348_v22  ;;  %v3255_v12 = vmul.f32 %v7107_v19, %v7067_v49  ;;  %3531 = vmatpush.bf16.msrb.mxu3 %v5736_v58  ;;  %vm3236_vm12 = vcmp.eq.f32.partialorder %v3235_v11, 8.507059e+37 }
 0x4ec   : > { %v3189_v38 = vrot.slane %v3188_v52, 1  ;;  %v3194_v54 = vrot.slane %v3193_v15, 2  ;;  %v3238_v36 = vor.u32 1.1754944e-38, %v3237_v39  ;;  %vm3260_vm13 = vweird.f32 %v7107_v19 }
 0x4ed   : > { %v3548_v51 = vsel %vm742_vm0, %v3358_v4, 0.0  ;;  %v3368_v17 = vpack.c.bf16 %v3358_v4, %v3358_v4  ;;  %v3256_v60 = vsub.f32 1.0, %v3255_v12  ;;  %4859 = vmatmul.msk.bf16.vlgmr.msrb.gmra.mxu1 %vm1093_vm6, %v3375_v53  ;;  %v3263_v42 = vand.u32 2147483647, %v7067_v49 }
 0x4ee   : > { %v7135_v50 = vadd.f32 %v3189_v38, %v3188_v52  ;;  %v3195_v24 = vadd.f32 %v3194_v54, %v3193_v15  ;;  %3549 = vadd.xlane.f32.xlu0 %v3548_v51  ;;  %v3239_v27 = vsel %vm3236_vm12, %v3238_v36, %v3234_v61  ;;  %3719 = vmatpush.bf16.xpose.msrb.mxu1 %v5348_v29  ;;  %v3265_v25 = vand.u32 2147483648, %v7067_v49 }
 0x4ef   : > { %4852 = vmatmul.msk.bf16.vlgmr.msrb.gmra.mxu2 %vm1093_vm6, %v3368_v17  ;;  %v3340_v14 = vmul.f32 %v6966_v2, %v3239_v27  ;;  %v3257_v0 = vmul.f32 %v7107_v19, %v3256_v60  ;;  %v3269_v33 = vmul.f32 %v7072_v3, %v7033_v23  ;;  %3532 = vmatpush.bf16.msrb.mxu3 %v6870_v21  ;;  %v7146_v57 = vpop.eup %5124  ;;  %vm3259_vm14 = vweird.f32 %v7067_v49  ;;  %v7188_v60 = vld [vmem:[%s5296_s6 + $0x50] sm:$0xff] }
 0x4f0   : > { %5126 = vrcp.f32 %v7135_v50  ;;  %v3196_v47 = vrot.slane %v3195_v24, 1  ;;  %vm7150_vm15 = vcmp.eq.f32.partialorder %v3263_v42, 8.507059e+37  ;;  %3515 = vmatpush.bf16.msrb.mxu2 %v5732_v59  ;;  %v3266_v22 = vor.u32 1.1754944e-38, %v3265_v25  ;;  %vm3261_vm1 = vmor %vm3259_vm14, %vm3260_vm13 }
 0x4f1   : > { %v3350_v2 = vsub.f32 %v3340_v14, %v5698_v46  ;;  %v3258_v9 = vadd.f32 %v7107_v19, %v3257_v0  ;;  %v3270_v11 = vsub.f32 1.0, %v3269_v33  ;;  %vm3274_vm2 = vweird.f32 %v7072_v3 }
 0x4f2   : > { %v7157_v21 = vadd.f32 %v3196_v47, %v3195_v24  ;;  %v3277_v49 = vand.u32 2147483647, %v7033_v23  ;;  %v3279_v52 = vand.u32 2147483648, %v7033_v23  ;;  %v3283_v53 = vmul.f32 %v7146_v57, %v7080_v41 }
 0x4f3   : > { %v3360_v15 = vmul.f32 0.0004, %v3350_v2  ;;  %v3262_v26 = vsel %vm3261_vm1, %v7107_v19, %v3258_v9  ;;  %v3271_v39 = vmul.f32 %v7072_v3, %v3270_v11  ;;  %v3557_v4 = vsel %vm742_vm0, %v7023_v20, 0.0 }
 0x4f4   : > { %5128 = vrcp.f32 %v7157_v21  ;;  %v3267_v61 = vsel %vm7150_vm15, %v3266_v22, %v3262_v26  ;;  %vm3273_vm3 = vweird.f32 %v7033_v23  ;;  %3516 = vmatpush.bf16.msrb.mxu2 %v6887_v16  ;;  %v3280_v20 = vor.u32 1.1754944e-38, %v3279_v52 }
 0x4f5   : > { %v3554_v12 = vsel %vm742_vm0, %v3360_v15, 0.0  ;;  %v3370_v19 = vpack.c.bf16 %v3360_v15, %v3360_v15  ;;  %v3342_v38 = vmul.f32 %v7010_v35, %v3267_v61  ;;  %v3272_v54 = vadd.f32 %v7072_v3, %v3271_v39  ;;  %vm3275_vm4 = vmor %vm3273_vm3, %vm3274_vm2 }
 0x4f6   : > { %v7178_v36 = vpop.eup %5126  ;;  %3555 = vadd.xlane.f32.xlu1 %v3554_v12  ;;  %3558 = vadd.xlane.f32.xlu0 %v3557_v4  ;;  %v3284_v51 = vsub.f32 1.0, %v3283_v53  ;;  %v3291_v23 = vand.u32 2147483647, %v7080_v41  ;;  %vm3278_vm5 = vcmp.eq.f32.partialorder %v3277_v49, 8.507059e+37  ;;  %v3293_v35 = vand.u32 2147483648, %v7080_v41 }
 0x4f7   : > { %4854 = vmatmul.msk.bf16.vlgmr.msra.gmra.mxu0 %vm1093_vm6, %v3370_v19  ;;  %v3352_v16 = vsub.f32 %v3342_v38, %v5753_v45  ;;  %v3276_v17 = vsel %vm3275_vm4, %v7072_v3, %v3272_v54  ;;  %3720 = vmatpush.bf16.xpose.msrb.mxu1 %v7188_v60  ;;  %vm3288_vm7 = vweird.f32 %v7146_v57  ;;  %vm3287_vm8 = vweird.f32 %v7080_v41  ;;  %v7224_v54 = vld [vmem:[%s5296_s6] sm:$0xff] }
 0x4f8   : > { %v3281_v24 = vsel %vm3278_vm5, %v3280_v20, %v3276_v17  ;;  %v3285_v27 = vmul.f32 %v7146_v57, %v3284_v51  ;;  %3654 = vmatpush.bf16.xpose.msra.mxu0 %v5301_v5  ;;  %vm3292_vm9 = vcmp.eq.f32.partialorder %v3291_v23, 8.507059e+37  ;;  %v3294_v25 = vor.u32 1.1754944e-38, %v3293_v35  ;;  %vm3289_vm10 = vmor %vm3287_vm8, %vm3288_vm7 }
 0x4f9   : > { %v3362_v42 = vmul.f32 0.0004, %v3352_v16  ;;  %v3343_v14 = vmul.f32 %v6994_v43, %v3281_v24  ;;  %v3311_v33 = vmul.f32 %v7178_v36, %v7135_v50  ;;  %v3333_v41 = vand.u32 2147483647, %v7157_v21 }
 0x4fa   : > { %v5129_v3 = vpop.eup %5128  ;;  %v3286_v0 = vadd.f32 %v7146_v57, %v3285_v27  ;;  %v3335_v9 = vand.u32 2147483648, %v7157_v21  ;;  %vm3316_vm12 = vweird.f32 %v7178_v36  ;;  %v3319_v26 = vand.u32 2147483647, %v7135_v50 }
 0x4fb   : > { %v3560_v47 = vsel %vm742_vm0, %v3362_v42, 0.0  ;;  %v3372_v29 = vpack.c.bf16 %v3362_v42, %v3362_v42  ;;  %v3353_v2 = vsub.f32 %v3343_v14, %v5708_v40  ;;  %v3325_v5 = vmul.f32 %v5129_v3, %v7157_v21 }
 0x4fc   : > { %3561 = vadd.xlane.f32.xlu2 %v3560_v47  ;;  %v3290_v43 = vsel %vm3289_vm10, %v7146_v57, %v3286_v0  ;;  %vm3330_vm11 = vweird.f32 %v5129_v3  ;;  %v3312_v52 = vsub.f32 1.0, %v3311_v33  ;;  %v3321_v39 = vand.u32 2147483648, %v7135_v50  ;;  %v7247_v0 = vld [vmem:[%s5296_s6 + $0x30] sm:$0xff]  ;;  %v7261_v47 = vld [vmem:[%s5296_s6 + $0x60] sm:$0xff] }
 0x4fd   : > { %v3363_v22 = vmul.f32 0.0004, %v3353_v2  ;;  %v3295_v11 = vsel %vm3292_vm9, %v3294_v25, %v3290_v43  ;;  %v3326_v49 = vsub.f32 1.0, %v3325_v5  ;;  %vm3329_vm13 = vweird.f32 %v7157_v21 }
 0x4fe   : > { %v3344_v15 = vmul.f32 %v7025_v18, %v3295_v11  ;;  %v3313_v61 = vmul.f32 %v7178_v36, %v3312_v52  ;;  %vm7217_vm14 = vmor %vm3329_vm13, %vm3330_vm11  ;;  %vm3315_vm15 = vweird.f32 %v7135_v50  ;;  %v3336_v21 = vor.u32 1.1754944e-38, %v3335_v9  ;;  %v8014_v11 = vld [vmem:[#allocation4_spill] sm:$0xff] }
 0x4ff   : > { %v3373_v53 = vpack.c.bf16 %v3363_v22, %v3363_v22  ;;  %v3563_v57 = vsel %vm742_vm0, %v3363_v22, 0.0  ;;  %4856 = vmatmul.msk.bf16.vlgmr.msra.gmra.mxu2 %vm1093_vm6, %v3372_v29  ;;  %v3327_v4 = vmul.f32 %v5129_v3, %v3326_v49  ;;  %vm3317_vm1 = vmor %vm3315_vm15, %vm3316_vm12  ;;  %v3322_v51 = vor.u32 1.1754944e-38, %v3321_v39  ;;  %v7265_v29 = vld [vmem:[%s5296_s6 + $0x70] sm:$0xff] }
 0x500   : > { %3564 = vadd.xlane.f32.xlu1 %v3563_v57  ;;  %v3354_v12 = vsub.f32 %v3344_v15, %v5787_v34  ;;  %3680 = vmatpush.bf16.xpose.msra.mxu2 %v5308_v10  ;;  %v3314_v38 = vadd.f32 %v7178_v36, %v3313_v61  ;;  %v3569_v10 = vsel %vm742_vm0, %v7110_v1, 0.0  ;;  %vm3334_vm2 = vcmp.eq.f32.partialorder %v3333_v41, 8.507059e+37  ;;  %v5227_v22 = vld [vmem:[%s5296_s6 + $0x10] sm:$0xff]  ;;  %v8015_v15 = vld [vmem:[#allocation10_spill] sm:$0xff] }
 0x501   : > { %4857 = vmatmul.msk.bf16.vlgmr.msra.gmra.mxu3 %vm1093_vm6, %v3373_v53  ;;  %v3328_v18 = vadd.f32 %v5129_v3, %v3327_v4  ;;  %3655 = vmatpush.bf16.xpose.msra.mxu0 %v7224_v54  ;;  %vm3320_vm3 = vcmp.eq.f32.partialorder %v3319_v26, 8.507059e+37  ;;  %v8017_v53 = vld [vmem:[#allocation33_spill] sm:$0xff] }
 0x502   : > { %v3364_v20 = vmul.f32 0.0004, %v3354_v12  ;;  %3693 = vmatpush.bf16.xpose.msra.mxu3 %v5313_v13  ;;  %v3318_v50 = vsel %vm3317_vm1, %v7178_v36, %v3314_v38  ;;  %v7242_v36 = vld [vmem:[%s5296_s6 + $0x20] sm:$0xff]  ;;  %v8018_v12 = vld [vmem:[#allocation15_spill] sm:$0xff]  ;;  %v8019_v38 = vld [vmem:[#allocation17_spill] sm:$0xff] }
 0x503   : > { %v3332_v23 = vsel %vm7217_vm14, %v5129_v3, %v3328_v18  ;;  %v3323_v35 = vsel %vm3320_vm3, %v3322_v51, %v3318_v50 }
 0x504   : > { %v3566_v16 = vsel %vm742_vm0, %v3364_v20, 0.0  ;;  %v3374_v17 = vpack.c.bf16 %v3364_v20, %v3364_v20  ;;  %3570 = vadd.xlane.f32.xlu2 %v3569_v10  ;;  %v3337_v1 = vsel %vm3334_vm2, %v3336_v21, %v3332_v23  ;;  %v3346_v13 = vmul.f32 %v7077_v31, %v3323_v35  ;;  %v8020_v21 = vld [vmem:[#allocation12_spill] sm:$0xff]  ;;  %v8023_v35 = vld [vmem:[#allocation7_spill] sm:$0xff] }
 0x505   : > { %3567 = vadd.xlane.f32.xlu0 %v3566_v16  ;;  %v3347_v24 = vmul.f32 %v7099_v37, %v3337_v1  ;;  %v8021_v16 = vld [vmem:[#allocation5_spill] sm:$0xff]  ;;  %v8022_v1 = vld [vmem:[#allocation3_spill] sm:$0xff] }
 0x506   : > { %v3356_v42 = vsub.f32 %v3346_v13, %v5857_v62 }
 0x507   : > { %4858 = vmatmul.msk.bf16.vlgmr.msrb.gmra.mxu0 %vm1093_vm6, %v3374_v17  ;;  %v3357_v27 = vsub.f32 %v3347_v24, %v5834_v44 }
 0x508   : > { %3681 = vmatpush.bf16.xpose.msra.mxu2 %v7242_v36  ;;  %v3366_v3 = vmul.f32 0.0004, %v3356_v42  ;;  %v8024_v42 = vld [vmem:[#allocation16_spill] sm:$0xff] }
 0x509   : > { %3706 = vmatpush.bf16.xpose.msrb.mxu0 %v5346_v28  ;;  %v3367_v14 = vmul.f32 0.0004, %v3357_v27  ;;  %v7255_v28 = vld [vmem:[%s5296_s6 + $0x40] sm:$0xff] }
 0x50a   : > { %3694 = vmatpush.bf16.xpose.msra.mxu3 %v7247_v0  ;;  %v3376_v37 = vpack.c.bf16 %v3366_v3, %v3366_v3  ;;  %v3572_v25 = vsel %vm742_vm0, %v3366_v3, 0.0 }
 0x50b   : > { %v3575_v31 = vsel %vm742_vm0, %v3367_v14, 0.0  ;;  %3573 = vadd.xlane.f32.xlu1 %v3572_v25  ;;  %v3377_v33 = vpack.c.bf16 %v3367_v14, %v3367_v14 }
 0x50d   : > { %3576 = vadd.xlane.f32.xlu0 %v3575_v31 }
 0x50f   : > { %4860 = vmatmul.msk.bf16.vlgmr.msrb.gmra.mxu2 %vm1093_vm6, %v3376_v37 }
 0x510   : > { %3732 = vmatpush.bf16.xpose.msrb.mxu2 %v5350_v30 }
 0x511   : > { %3707 = vmatpush.bf16.xpose.msrb.mxu0 %v7255_v28  ;;  %4861 = vmatmul.msk.bf16.vlgmr.msrb.gmra.mxu3 %vm1093_vm6, %v3377_v33  ;;  %v8025_v33 = vld [vmem:[#allocation22_spill] sm:$0xff] }
 0x512   : > { %3745 = vmatpush.bf16.xpose.msrb.mxu3 %v5354_v32 }
 0x518   : > { %3733 = vmatpush.bf16.xpose.msrb.mxu2 %v7261_v47 }
 0x51a   : > { %3746 = vmatpush.bf16.xpose.msrb.mxu3 %v7265_v29 }
 0x556   : > { %v3438_v2 = vpop.f32.mrf.mxu1 }
 0x557   : > { %v7269_v30 = vsub.f32 %v6811_v7, %v3438_v2 }
 0x559   : > { %v3591_v5 = vpack.c.bf16 %v7269_v30, %v7269_v30 }
 0x55b   : > { %3695 = vmatmul.bf16.vlgmr.msra.gmra.mxu3 %v3591_v5  ;;  %v8028_v5 = vld [vmem:[#allocation19_spill] sm:$0xff] }
 0x55c   : > { %v3553_v43 = vpop.xlane.xlu2 %3552  ;;  %4153 = vmatpush.bf16.msra.mxu3 %v7956_v6 }
 0x55d   : > { %v7274_v41 = vsub.f32 %v6808_v48, %v3553_v43  ;;  %v8016_v48 = vld [vmem:[#allocation32_spill] sm:$0xff] }
 0x55e   : > { %v3440_v32 = vpop.f32.mrf.mxu1 }
 0x55f   : > { %3605 = vperm.xlu1 %4958, %v7274_v41  }
 0x560   : > { %4154 = vmatpush.bf16.msra.mxu3 %v5227_v22  ;;  %v7332_v22 = vld [vmem:[%s5296_s6 + $0x90] sm:$0xff] }
 0x561   : > { %v3550_v9 = vpop.xlane.xlu0 %3549 }
 0x562   : > { %v7280_v49 = vsub.f32 %v8014_v11, %v3550_v9  ;;  %v8030_v9 = vld [vmem:[#allocation6_spill] sm:$0xff] }
 0x564   : > { %3600 = vperm.xlu2 %4959, %v7280_v49  }
 0x569   : > { %v3556_v7 = vpop.xlane.xlu1 %3555  ;;  %v3559_v52 = vpop.xlane.xlu0 %3558 }
 0x56a   : > { %v7284_v26 = vsub.f32 %v8015_v15, %v3556_v7  ;;  %v7287_v39 = vsub.f32 %v8016_v48, %v3559_v52  ;;  %v3502_v6 = vpop.f32.mrf.mxu1  ;;  %v8031_v15 = vld [vmem:[#allocation21_spill] sm:$0xff] }
 0x56b   : > { %v7290_v57 = vsub.f32 %v8017_v53, %v3502_v6  ;;  %v7341_v6 = vld [vmem:[%s5296_s6 + $0x80] sm:$0xff]  ;;  %v8033_v53 = vld [vmem:[#allocation20_spill] sm:$0xff] }
 0x56c   : > { %3610 = vperm.xlu0 %4957, %v7284_v26   ;;  %3615 = vperm.xlu2 %4959, %v7287_v39  }
 0x56d   : > { %v3406_v4 = vpop.f32.mrf.mxu3  ;;  %v3595_v61 = vpack.c.bf16 %v7290_v57, %v7290_v57 }
 0x56e   : > { %v7297_v18 = vsub.f32 %v8018_v12, %v3406_v4  ;;  %v8035_v12 = vld [vmem:[#allocation24_spill] sm:$0xff] }
 0x56f   : > { %v3562_v19 = vpop.xlane.xlu2 %3561  ;;  %3747 = vmatmul.bf16.vlgmr.msrb.gmra.mxu3 %v3595_v61 }
 0x570   : > { %v7300_v20 = vsub.f32 %v8019_v38, %v3562_v19  ;;  %v3589_v10 = vpack.c.bf16 %v7297_v18, %v7297_v18  ;;  %4217 = vmatpush.bf16.msrb.mxu3 %v8020_v21  ;;  %v8037_v21 = vld [vmem:[#allocation18_spill] sm:$0xff] }
 0x572   : > { %v3390_v51 = vpop.f32.mrf.mxu2  ;;  %3669 = vmatmul.bf16.vlgmr.msra.gmra.mxu1 %v3589_v10  ;;  %v3504_v23 = vpop.f32.mrf.mxu1 }
 0x573   : > { %v3565_v50 = vpop.xlane.xlu1 %3564  ;;  %v7306_v17 = vsub.f32 %v8021_v16, %v3390_v51  ;;  %3771 = vmatpush.bf16.xpose.msra.mxu1 %v8022_v1  ;;  %v8039_v23 = vld [vmem:[#allocation23_spill] sm:$0xff] }
 0x574   : > { %v7310_v24 = vsub.f32 %v8023_v35, %v3565_v50  ;;  %v3422_v13 = vpop.f32.mrf.mxu0  ;;  %3620 = vperm.xlu0 %4957, %v7300_v20   ;;  %4218 = vmatpush.bf16.msrb.mxu3 %v7188_v60  ;;  %v8027_v60 = vld [vmem:[#allocation2_spill] sm:$0xff]  ;;  %v8041_v35 = vld [vmem:[#allocation8_spill] sm:$0xff] }
 0x575   : > { %v3588_v27 = vpack.c.bf16 %v7306_v17, %v7306_v17  ;;  %v7317_v14 = vsub.f32 %v8024_v42, %v3422_v13  ;;  %v3408_v3 = vpop.f32.mrf.mxu3  ;;  %v8043_v42 = vld [vmem:[#allocation11_spill] sm:$0xff] }
 0x576   : > { %3625 = vperm.xlu1 %4958, %v7310_v24  }
 0x577   : > { %v3590_v31 = vpack.c.bf16 %v7317_v14, %v7317_v14  ;;  %3656 = vmatmul.bf16.vlgmr.msra.gmra.mxu0 %v3588_v27  ;;  %v3571_v37 = vpop.xlane.xlu2 %3570  ;;  %v8042_v27 = vld [vmem:[#allocation9_spill] sm:$0xff] }
 0x578   : > { %v3568_v25 = vpop.xlane.xlu0 %3567  ;;  %v7323_v2 = vsub.f32 %v8025_v33, %v3571_v37  ;;  %3758 = vmatpush.bf16.xpose.msra.mxu0 %v8027_v60 }
 0x579   : > { %v7327_v43 = vsub.f32 %v8028_v5, %v3568_v25  ;;  %3682 = vmatmul.bf16.vlgmr.msra.gmra.mxu2 %v3590_v31  ;;  %v8044_v25 = vld [vmem:[#allocation26_spill] sm:$0xff] }
 0x57a   : > { %8026 = vst [vmem:[#allocation25_spill] sm:$0xff] %v7323_v2  ;;  %v3392_v32 = vpop.f32.mrf.mxu2  ;;  %4137 = vmatpush.bf16.msra.mxu2 %v8030_v9 }
 0x57b   : > { %8029 = vst [vmem:[#allocation29_spill] sm:$0xff] %v7327_v43  ;;  %3630 = vperm.xlu2 %4959, %v7327_v43   ;;  %3772 = vmatpush.bf16.xpose.msra.mxu1 %v7332_v22  ;;  %v8046_v32 = vld [vmem:[#allocation27_spill] sm:$0xff] }
 0x57c   : > { %v3424_v11 = vpop.f32.mrf.mxu0  ;;  %3635 = vperm.xlu0 %4957, %v7323_v2  }
 0x57e   : > { %4138 = vmatpush.bf16.msra.mxu2 %v7224_v54  ;;  %v3574_v7 = vpop.xlane.xlu1 %3573 }
 0x57f   : > { %v7338_v48 = vsub.f32 %v8031_v15, %v3574_v7 }
 0x580   : > { %v3577_v52 = vpop.xlane.xlu0 %3576  ;;  %3759 = vmatpush.bf16.xpose.msra.mxu0 %v7341_v6 }
 0x581   : > { %8032 = vst [vmem:[#allocation28_spill] sm:$0xff] %v7338_v48  ;;  %v7345_v4 = vsub.f32 %v8033_v53, %v3577_v52  ;;  %3640 = vperm.xlu1 %4958, %v7338_v48  }
 0x582   : > { %v3454_v61 = vpop.f32.mrf.mxu2 }
 0x583   : > { %8034 = vst [vmem:[#allocation30_spill] sm:$0xff] %v7345_v4  ;;  %v7349_v19 = vsub.f32 %v8035_v12, %v3454_v61  ;;  %3645 = vperm.xlu2 %4959, %v7345_v4  }
 0x584   : > { %v3470_v54 = vpop.f32.mrf.mxu3  ;;  %v3486_v38 = vpop.f32.mrf.mxu0 }
 0x585   : > { %8036 = vst [vmem:[#allocation31_spill] sm:$0xff] %v7349_v19  ;;  %v3592_v10 = vpack.c.bf16 %v7349_v19, %v7349_v19  ;;  %v7355_v51 = vsub.f32 %v8037_v21, %v3470_v54  ;;  %v7358_v50 = vsub.f32 %v8039_v23, %v3486_v38 }
 0x587   : > { %8038 = vst [vmem:[#allocation4_spill] sm:$0xff] %v7355_v51  ;;  %v3593_v16 = vpack.c.bf16 %v7355_v51, %v7355_v51  ;;  %v3594_v1 = vpack.c.bf16 %v7358_v50, %v7358_v50  ;;  %3708 = vmatmul.bf16.vlgmr.msrb.gmra.mxu0 %v3592_v10 }
 0x588   : > { %8040 = vst [vmem:[#allocation10_spill] sm:$0xff] %v7358_v50  ;;  %4169 = vmatpush.bf16.msrb.mxu0 %v8041_v35 }
 0x589   : > { %3721 = vmatmul.bf16.vlgmr.msrb.gmra.mxu1 %v3593_v16  ;;  %3734 = vmatmul.bf16.vlgmr.msrb.gmra.mxu2 %v3594_v1 }
 0x58a   : > { %v3456_v13 = vpop.f32.mrf.mxu2  ;;  %4185 = vmatpush.bf16.msrb.mxu1 %v8042_v27  ;;  %4201 = vmatpush.bf16.msrb.mxu2 %v8043_v42 }
 0x58c   : > { %v3472_v3 = vpop.f32.mrf.mxu3  ;;  %v3488_v31 = vpop.f32.mrf.mxu0  ;;  %4170 = vmatpush.bf16.msrb.mxu0 %v7242_v36  ;;  %v8048_v36 = vld [vmem:[#allocation13_spill] sm:$0xff] }
 0x58e   : > { %4186 = vmatpush.bf16.msrb.mxu1 %v7247_v0  ;;  %4202 = vmatpush.bf16.msrb.mxu2 %v7255_v28  ;;  %v8049_v28 = vld [vmem:[#allocation14_spill] sm:$0xff] }
 0x592   : > { %v3518_v37 = vpop.f32.mrf.mxu2 }
 0x593   : > { %v7371_v33 = vsub.f32 %v8044_v25, %v3518_v37 }
 0x594   : > { %v3534_v60 = vpop.f32.mrf.mxu3 }
 0x595   : > { %8045 = vst [vmem:[#allocation32_spill] sm:$0xff] %v7371_v33  ;;  %v3596_v5 = vpack.c.bf16 %v7371_v33, %v7371_v33  ;;  %v7376_v9 = vsub.f32 %v8046_v32, %v3534_v60 }
 0x597   : > { %8047 = vst [vmem:[#allocation33_spill] sm:$0xff] %v7376_v9  ;;  %v3597_v11 = vpack.c.bf16 %v7376_v9, %v7376_v9  ;;  %3760 = vmatmul.bf16.vlgmr.msra.gmra.mxu0 %v3596_v5 }
 0x598   : > { %4233 = vmatpush.bf16.msra.mxu0 %v8048_v36 }
 0x599   : > { %3773 = vmatmul.bf16.vlgmr.msra.gmra.mxu1 %v3597_v11 }
 0x59a   : > { %v3520_v0 = vpop.f32.mrf.mxu2  ;;  %4249 = vmatpush.bf16.msra.mxu1 %v8049_v28 }
 0x59c   : > { %v3536_v7 = vpop.f32.mrf.mxu3  ;;  %4234 = vmatpush.bf16.msra.mxu0 %v7261_v47 }
 0x59e   : > { %4250 = vmatpush.bf16.msra.mxu1 %v7265_v29 }
 0x5be   : > { %v3601_v52 = vpop.permute.xlu2 %3600 }
 0x5c6   : > { %v3616_v53 = vpop.permute.xlu2 %3615 }
 0x5d1   : > { %v3606_v23 = vpop.permute.xlu1 %3605 }
 0x5de   : > { %v3611_v15 = vpop.permute.xlu0 %3610  ;;  %v3696_v61 = vpop.f32.mrf.mxu3 }
 0x5df   : > { %v3697_v12 = vadd.f32 %v3696_v61, %v3616_v53 }
 0x5e1   : > { %v3799_v54 = vsel %vm742_vm0, %v3697_v12, -inf }
 0x5e2   : > { %v3800_v38 = vrot.slane %v3799_v54, 4 }
 0x5e4   : > { %v3801_v21 = vmax.f32 %v3799_v54, %v3800_v38 }
 0x5e6   : > { %v3621_v10 = vpop.permute.xlu0 %3620  ;;  %v3802_v35 = vrot.slane %v3801_v21, 2  ;;  %v3698_v13 = vpop.f32.mrf.mxu3 }
 0x5e8   : > { %v3803_v47 = vmax.f32 %v3801_v21, %v3802_v35 }
 0x5ea   : > { %v3804_v3 = vrot.slane %v3803_v47, 1 }
 0x5ec   : > { %v3805_v25 = vmax.f32 %v3803_v47, %v3804_v3 }
 0x5ee   : > { %v3636_v11 = vpop.permute.xlu0 %3635  ;;  %v3851_v0 = vsub.f32 %v3697_v12, %v3805_v25 }
 0x5ef   : > { %v3670_v16 = vpop.f32.mrf.mxu1 }
 0x5f0   : > { %v3671_v1 = vadd.f32 %v3670_v16, %v3606_v23  ;;  %v3864_v54 = vmul.f32 1.442695, %v3851_v0 }
 0x5f2   : > { %v3785_v27 = vsel %vm742_vm0, %v3671_v1, -inf  ;;  %v3748_v28 = vpop.f32.mrf.mxu3  ;;  %5130 = vpow2.f32 %v3864_v54 }
 0x5f3   : > { %v3786_v42 = vrot.slane %v3785_v27, 4  ;;  %v3749_v53 = vadd.f32 %v3748_v28, %v3636_v11 }
 0x5f4   : > { %v3657_v29 = vpop.f32.mrf.mxu0 }
 0x5f5   : > { %v3658_v31 = vadd.f32 %v3657_v29, %v3601_v52  ;;  %v3787_v37 = vmax.f32 %v3785_v27, %v3786_v42  ;;  %v3827_v21 = vsel %vm742_vm0, %v3749_v53, -inf }
 0x5f6   : > { %v3828_v35 = vrot.slane %v3827_v21, 4 }
 0x5f7   : > { %v3778_v60 = vsel %vm742_vm0, %v3658_v31, -inf  ;;  %v3788_v5 = vrot.slane %v3787_v37, 2  ;;  %v3672_v32 = vpop.f32.mrf.mxu1 }
 0x5f8   : > { %v3779_v36 = vrot.slane %v3778_v60, 4  ;;  %v3829_v42 = vmax.f32 %v3827_v21, %v3828_v35  ;;  %v7389_v32 = vpop.eup %5130 }
 0x5f9   : > { %v3789_v7 = vmax.f32 %v3787_v37, %v3788_v5  ;;  %v3899_v28 = vsel %vm742_vm0, %v7389_v32, 0.0 }
 0x5fa   : > { %v3780_v61 = vmax.f32 %v3778_v60, %v3779_v36  ;;  %v3830_v25 = vrot.slane %v3829_v42, 2  ;;  %v3750_v60 = vpop.f32.mrf.mxu3 }
 0x5fb   : > { %v3790_v38 = vrot.slane %v3789_v7, 1 }
 0x5fc   : > { %v3781_v23 = vrot.slane %v3780_v61, 2  ;;  %v3683_v16 = vpop.f32.mrf.mxu2  ;;  %v3659_v52 = vpop.f32.mrf.mxu0  ;;  %v3831_v0 = vmax.f32 %v3829_v42, %v3830_v25 }
 0x5fd   : > { %v3791_v13 = vmax.f32 %v3789_v7, %v3790_v38  ;;  %v3684_v27 = vadd.f32 %v3683_v16, %v3611_v15 }
 0x5fe   : > { %v3782_v47 = vmax.f32 %v3780_v61, %v3781_v23  ;;  %v3900_v61 = vrot.slane %v3899_v28, 4  ;;  %v3832_v38 = vrot.slane %v3831_v0, 1  ;;  %v3626_v23 = vpop.permute.xlu1 %3625 }
 0x5ff   : > { %v3849_v29 = vsub.f32 %v3671_v1, %v3791_v13  ;;  %v3792_v12 = vsel %vm742_vm0, %v3684_v27, -inf }
 0x600   : > { %v3783_v3 = vrot.slane %v3782_v47, 1  ;;  %v3793_v37 = vrot.slane %v3792_v12, 4  ;;  %v3901_v35 = vadd.f32 %v3900_v61, %v3899_v28 }
 0x601   : > { %v3860_v5 = vmul.f32 1.442695, %v3849_v29 }
 0x602   : > { %v3784_v11 = vmax.f32 %v3782_v47, %v3783_v3  ;;  %v3794_v36 = vmax.f32 %v3792_v12, %v3793_v37  ;;  %v3833_v47 = vmax.f32 %v3831_v0, %v3832_v38  ;;  %v3902_v12 = vrot.slane %v3901_v35, 2  ;;  %v3631_v0 = vpop.permute.xlu2 %3630 }
 0x603   : > { %5132 = vpow2.f32 %v3860_v5 }
 0x604   : > { %v3848_v15 = vsub.f32 %v3658_v31, %v3784_v11  ;;  %v3795_v7 = vrot.slane %v3794_v36, 2  ;;  %v3685_v1 = vpop.f32.mrf.mxu2  ;;  %v3709_v54 = vpop.f32.mrf.mxu0  ;;  %v3855_v25 = vsub.f32 %v3749_v53, %v3833_v47  ;;  %v3903_v11 = vadd.f32 %v3902_v12, %v3901_v35 }
 0x605   : > { %v7393_v21 = vadd.f32 %v3709_v54, %v3621_v10 }
 0x606   : > { %v3858_v16 = vmul.f32 1.442695, %v3848_v15  ;;  %v3796_v52 = vmax.f32 %v3794_v36, %v3795_v7  ;;  %v3722_v13 = vpop.f32.mrf.mxu1  ;;  %v3872_v7 = vmul.f32 1.442695, %v3855_v25  ;;  %v3904_v1 = vrot.slane %v3903_v11, 1 }
 0x607   : > { %v3806_v42 = vsel %vm742_vm0, %v7393_v21, -inf  ;;  %v7397_v29 = vadd.f32 %v3722_v13, %v3626_v23 }
 0x608   : > { %5134 = vpow2.f32 %v3858_v16  ;;  %v3797_v31 = vrot.slane %v3796_v52, 1  ;;  %v3807_v3 = vrot.slane %v3806_v42, 4 }
 0x609   : > { %v7399_v37 = vpop.eup %5132  ;;  %v3813_v10 = vsel %vm742_vm0, %v7397_v29, -inf  ;;  %5136 = vpow2.f32 %v3872_v7 }
 0x60a   : > { %v3885_v60 = vsel %vm742_vm0, %v7399_v37, 0.0  ;;  %v3798_v5 = vmax.f32 %v3796_v52, %v3797_v31  ;;  %v3808_v36 = vmax.f32 %v3806_v42, %v3807_v3  ;;  %v3814_v15 = vrot.slane %v3813_v10, 4 }
 0x60b   : > { %v3886_v28 = vrot.slane %v3885_v60, 4  ;;  %v7409_v52 = vadd.f32 %v3904_v1, %v3903_v11 }
 0x60c   : > { %v3850_v61 = vsub.f32 %v3684_v27, %v3798_v5  ;;  %v3809_v54 = vrot.slane %v3808_v36, 2  ;;  %v3735_v38 = vpop.f32.mrf.mxu2  ;;  %v3711_v23 = vpop.f32.mrf.mxu0  ;;  %v3815_v13 = vmax.f32 %v3813_v10, %v3814_v15 }
 0x60d   : > { %v3887_v16 = vadd.f32 %v3886_v28, %v3885_v60  ;;  %v7405_v33 = vadd.f32 %v3735_v38, %v3631_v0  ;;  %v3999_v15 = vand.u32 2147483647, %v7409_v52  ;;  %vm3995_vm4 = vweird.f32 %v7409_v52 }
 0x60e   : > { %v7407_v53 = vpop.eup %5134  ;;  %v3862_v47 = vmul.f32 1.442695, %v3850_v61  ;;  %v3810_v35 = vmax.f32 %v3808_v36, %v3809_v54  ;;  %v3724_v42 = vpop.f32.mrf.mxu1  ;;  %v3816_v12 = vrot.slane %v3815_v13, 2 }
 0x60f   : > { %v3878_v31 = vsel %vm742_vm0, %v7407_v53, 0.0  ;;  %v3888_v27 = vrot.slane %v3887_v16, 2  ;;  %v3820_v3 = vsel %vm742_vm0, %v7405_v33, -inf  ;;  %v7416_v28 = vpop.eup %5136  ;;  %v3641_v42 = vpop.permute.xlu1 %3640  ;;  %vm7434_vm5 = vcmp.eq.f32.partialorder %v3999_v15, 8.507059e+37 }
 0x610   : > { %v3879_v25 = vrot.slane %v3878_v31, 4  ;;  %5138 = vpow2.f32 %v3862_v47  ;;  %v3811_v60 = vrot.slane %v3810_v35, 1  ;;  %v3817_v0 = vmax.f32 %v3815_v13, %v3816_v12 }
 0x611   : > { %v3889_v10 = vadd.f32 %v3888_v27, %v3887_v16  ;;  %5140 = vrcp.f32 %v7409_v52  ;;  %v3821_v11 = vrot.slane %v3820_v3, 4  ;;  %v3927_v38 = vsel %vm742_vm0, %v7416_v28, 0.0 }
 0x612   : > { %v3880_v5 = vadd.f32 %v3879_v25, %v3878_v31  ;;  %v3812_v7 = vmax.f32 %v3810_v35, %v3811_v60  ;;  %v3818_v1 = vrot.slane %v3817_v0, 1  ;;  %v4001_v13 = vand.u32 2147483648, %v7409_v52 }
 0x613   : > { %v3890_v36 = vrot.slane %v3889_v10, 1  ;;  %v3822_v54 = vmax.f32 %v3820_v3, %v3821_v11  ;;  %v3928_v27 = vrot.slane %v3927_v38, 4 }
 0x614   : > { %v3881_v61 = vrot.slane %v3880_v5, 2  ;;  %v3737_v23 = vpop.f32.mrf.mxu2  ;;  %v3761_v16 = vpop.f32.mrf.mxu0  ;;  %v3852_v31 = vsub.f32 %v7393_v21, %v3812_v7  ;;  %v3819_v35 = vmax.f32 %v3817_v0, %v3818_v1  ;;  %v4002_v43 = vor.u32 1.1754944e-38, %v4001_v13 }
 0x615   : > { %v7421_v47 = vadd.f32 %v3890_v36, %v3889_v10  ;;  %v3823_v3 = vrot.slane %v3822_v54, 2  ;;  %v7428_v60 = vadd.f32 %v3761_v16, %v3641_v42  ;;  %v3929_v9 = vadd.f32 %v3928_v27, %v3927_v38  ;;  %v3646_v38 = vpop.permute.xlu2 %3645 }
 0x616   : > { %v7425_v12 = vpop.eup %5138  ;;  %v3882_v25 = vadd.f32 %v3881_v61, %v3880_v5  ;;  %v3774_v11 = vpop.f32.mrf.mxu1  ;;  %v3866_v36 = vmul.f32 1.442695, %v3852_v31  ;;  %v3853_v0 = vsub.f32 %v7397_v29, %v3819_v35 }
 0x617   : > { %v5141_v23 = vpop.eup %5140  ;;  %5142 = vrcp.f32 %v7421_v47  ;;  %v3892_v10 = vsel %vm742_vm0, %v7425_v12, 0.0  ;;  %v3824_v61 = vmax.f32 %v3822_v54, %v3823_v3  ;;  %v3930_v1 = vrot.slane %v3929_v9, 2 }
 0x618   : > { %v3883_v21 = vrot.slane %v3882_v25, 1  ;;  %v3893_v7 = vrot.slane %v3892_v10, 4  ;;  %v3991_v19 = vmul.f32 %v5141_v23, %v7409_v52  ;;  %5144 = vpow2.f32 %v3866_v36 }
 0x619   : > { %vm3996_vm7 = vweird.f32 %v5141_v23  ;;  %v3834_v31 = vsel %vm742_vm0, %v7428_v60, -inf  ;;  %v3868_v27 = vmul.f32 1.442695, %v3853_v0  ;;  %v3825_v50 = vrot.slane %v3824_v61, 1 }
 0x61a   : > { %v3894_v16 = vadd.f32 %v3893_v7, %v3892_v10  ;;  %v3992_v42 = vsub.f32 1.0, %v3991_v19  ;;  %v3931_v4 = vadd.f32 %v3930_v1, %v3929_v9  ;;  %v3835_v51 = vrot.slane %v3834_v31, 4  ;;  %vm3997_vm8 = vmor %vm3995_vm4, %vm3996_vm7 }
 0x61b   : > { %v7441_v15 = vadd.f32 %v3883_v21, %v3882_v25  ;;  %v7443_v36 = vadd.f32 %v3774_v11, %v3646_v38  ;;  %5146 = vpow2.f32 %v3868_v27  ;;  %v3826_v19 = vmax.f32 %v3824_v61, %v3825_v50 }
 0x61c   : > { %v3895_v48 = vrot.slane %v3894_v16, 2  ;;  %v3993_v2 = vmul.f32 %v5141_v23, %v3992_v42  ;;  %v3763_v29 = vpop.f32.mrf.mxu0  ;;  %v3932_v35 = vrot.slane %v3931_v4, 1  ;;  %v3836_v3 = vmax.f32 %v3834_v31, %v3835_v51 }
 0x61d   : > { %v7445_v54 = vpop.eup %5142  ;;  %v3854_v11 = vsub.f32 %v7405_v33, %v3826_v19  ;;  %5148 = vrcp.f32 %v7441_v15  ;;  %vm3967_vm10 = vweird.f32 %v7421_v47  ;;  %vm3953_vm2 = vweird.f32 %v7441_v15 }
 0x61e   : > { %v3896_v10 = vadd.f32 %v3895_v48, %v3894_v16  ;;  %v3994_v7 = vadd.f32 %v5141_v23, %v3993_v2  ;;  %v3776_v0 = vpop.f32.mrf.mxu1  ;;  %v3963_v9 = vmul.f32 %v7445_v54, %v7421_v47  ;;  %v7449_v25 = vpop.eup %5144  ;;  %v7455_v21 = vadd.f32 %v3932_v35, %v3931_v4 }
 0x61f   : > { %v3837_v50 = vrot.slane %v3836_v3, 2  ;;  %v3841_v48 = vsel %vm742_vm0, %v7443_v36, -inf  ;;  %v3906_v13 = vsel %vm742_vm0, %v7449_v25, 0.0  ;;  %v3870_v1 = vmul.f32 1.442695, %v3854_v11 }
 0x620   : > { %v3897_v2 = vrot.slane %v3896_v10, 1  ;;  %v3998_v51 = vsel %vm3997_vm8, %v5141_v23, %v3994_v7  ;;  %v3907_v52 = vrot.slane %v3906_v13, 4  ;;  %5150 = vrcp.f32 %v7455_v21 }
 0x621   : > { %v4003_v61 = vsel %vm7434_vm5, %v4002_v43, %v3998_v51  ;;  %v3842_v16 = vrot.slane %v3841_v48, 4  ;;  %v3964_v42 = vsub.f32 1.0, %v3963_v9  ;;  %v7468_v31 = vpop.eup %5146  ;;  %5152 = vpow2.f32 %v3870_v1 }
 0x622   : > { %v7465_v4 = vadd.f32 %v3897_v2, %v3896_v10  ;;  %v4091_v33 = vmul.f32 %v7389_v32, %v4003_v61  ;;  %v3908_v38 = vadd.f32 %v3907_v52, %v3906_v13  ;;  %v4057_v23 = vand.u32 2147483648, %v7455_v21 }
 0x623   : > { %v3838_v27 = vmax.f32 %v3836_v3, %v3837_v50  ;;  %v3913_v5 = vsel %vm742_vm0, %v7468_v31, 0.0  ;;  %v4055_v29 = vand.u32 2147483647, %v7455_v21  ;;  %v7476_v7 = vpop.eup %5148  ;;  %vm4051_vm9 = vweird.f32 %v7455_v21 }
 0x624   : > { %5154 = vrcp.f32 %v7465_v4  ;;  %v4101_v43 = vsub.f32 %v4091_v33, %v7938_v56  ;;  %v3909_v19 = vrot.slane %v3908_v38, 2  ;;  %v3914_v32 = vrot.slane %v3913_v5, 4 }
 0x625   : > { %v4058_v35 = vor.u32 1.1754944e-38, %v4057_v23  ;;  %v3839_v10 = vrot.slane %v3838_v27, 1  ;;  %v3843_v3 = vmax.f32 %v3841_v48, %v3842_v16  ;;  %v3965_v9 = vmul.f32 %v7445_v54, %v3964_v42 }
 0x626   : > { %v7478_v0 = vmul.f32 0.0004, %v4101_v43  ;;  %v5151_v56 = vpop.eup %5150  ;;  %v3910_v11 = vadd.f32 %v3909_v19, %v3908_v38  ;;  %v3915_v50 = vadd.f32 %v3914_v32, %v3913_v5  ;;  %vm3968_vm11 = vweird.f32 %v7445_v54 }
 0x627   : > { %v3840_v2 = vmax.f32 %v3838_v27, %v3839_v10  ;;  %v4047_v13 = vmul.f32 %v5151_v56, %v7455_v21  ;;  %vm4052_vm12 = vweird.f32 %v5151_v56  ;;  %vm7487_vm13 = vcmp.eq.f32.partialorder %v4055_v29, 8.507059e+37  ;;  %v7491_v52 = vpop.eup %5152  ;;  %vm7507_vm14 = vmor %vm3967_vm10, %vm3968_vm11 }
 0x628   : > { %v4121_v51 = vpack.c.bf16 %v7478_v0, %v7478_v0  ;;  %v3844_v48 = vrot.slane %v3843_v3, 2  ;;  %v3911_v1 = vrot.slane %v3910_v11, 1  ;;  %v3916_v33 = vrot.slane %v3915_v50, 2  ;;  %vm4053_vm1 = vmor %vm4051_vm9, %vm4052_vm12 }
 0x629   : > { %v3856_v16 = vsub.f32 %v7428_v60, %v3840_v2  ;;  %v3966_v42 = vadd.f32 %v7445_v54, %v3965_v9  ;;  %v3920_v23 = vsel %vm742_vm0, %v7491_v52, 0.0  ;;  %v4048_v27 = vsub.f32 1.0, %v4047_v13 }
 0x62a   : > { %v7495_v38 = vpop.eup %5154  ;;  %v3845_v43 = vmax.f32 %v3843_v3, %v3844_v48  ;;  %v3971_v5 = vand.u32 2147483647, %v7421_v47  ;;  %4865 = vmatmul.msk.bf16.vlgmr.msrb.gmra.mxu1 %vm1093_vm6, %v4121_v51  ;;  %v7501_v29 = vadd.f32 %v3911_v1, %v3910_v11  ;;  %v3917_v19 = vadd.f32 %v3916_v33, %v3915_v50 }
 0x62b   : > { %v3921_v32 = vrot.slane %v3920_v23, 4  ;;  %v3874_v10 = vmul.f32 1.442695, %v3856_v16  ;;  %v4049_v9 = vmul.f32 %v5151_v56, %v4048_v27  ;;  %v3970_v3 = vsel %vm7507_vm14, %v7445_v54, %v3966_v42 }
 0x62c   : > { %v3846_v2 = vrot.slane %v3845_v43, 1  ;;  %vm7514_vm15 = vcmp.eq.f32.partialorder %v3971_v5, 8.507059e+37  ;;  %5156 = vrcp.f32 %v7501_v29  ;;  %v3918_v50 = vrot.slane %v3917_v19, 1 }
 0x62d   : > { %v3922_v51 = vadd.f32 %v3921_v32, %v3920_v23  ;;  %v3973_v13 = vand.u32 2147483648, %v7421_v47  ;;  %v4050_v48 = vadd.f32 %v5151_v56, %v4049_v9  ;;  %5158 = vpow2.f32 %v3874_v10 }
 0x62e   : > { %v3847_v1 = vmax.f32 %v3845_v43, %v3846_v2  ;;  %v3949_v33 = vmul.f32 %v7476_v7, %v7441_v15  ;;  %v7522_v16 = vadd.f32 %v3918_v50, %v3917_v19  ;;  %vm3954_vm3 = vweird.f32 %v7476_v7 }
 0x62f   : > { %v3923_v27 = vrot.slane %v3922_v51, 2  ;;  %v3974_v54 = vor.u32 1.1754944e-38, %v3973_v13  ;;  %v4054_v42 = vsel %vm4053_vm1, %v5151_v56, %v4050_v48  ;;  %v3957_v9 = vand.u32 2147483647, %v7441_v15  ;;  %vm3955_vm4 = vmor %vm3953_vm2, %vm3954_vm3 }
 0x630   : > { %v3857_v23 = vsub.f32 %v7443_v36, %v3847_v1  ;;  %v3950_v47 = vsub.f32 1.0, %v3949_v33  ;;  %5160 = vrcp.f32 %v7522_v16  ;;  %v4059_v5 = vsel %vm7487_vm13, %v4058_v35, %v4054_v42 }
 0x631   : > { %v3924_v43 = vadd.f32 %v3923_v27, %v3922_v51  ;;  %v3975_v19 = vsel %vm7514_vm15, %v3974_v54, %v3970_v3  ;;  %v4095_v21 = vmul.f32 %v7416_v28, %v4059_v5  ;;  %v3959_v2 = vand.u32 2147483648, %v7441_v15 }
 0x632   : > { %v3876_v32 = vmul.f32 1.442695, %v3857_v23  ;;  %v4089_v10 = vmul.f32 %v7399_v37, %v3975_v19  ;;  %v3951_v56 = vmul.f32 %v7476_v7, %v3950_v47  ;;  %v7538_v36 = vpop.eup %5156  ;;  %v3977_v35 = vmul.f32 %v7495_v38, %v7465_v4 }
 0x633   : > { %v3925_v60 = vrot.slane %v3924_v43, 1  ;;  %v7544_v61 = vpop.eup %5158  ;;  %v4105_v3 = vsub.f32 %v4095_v21, %v5489_v63  ;;  %vm3958_vm5 = vcmp.eq.f32.partialorder %v3957_v9, 8.507059e+37  ;;  %v3960_v51 = vor.u32 1.1754944e-38, %v3959_v2 }
 0x634   : > { %5162 = vpow2.f32 %v3876_v32  ;;  %v4099_v28 = vsub.f32 %v4089_v10, %v7947_v8  ;;  %v3952_v37 = vadd.f32 %v7476_v7, %v3951_v56  ;;  %v3934_v50 = vsel %vm742_vm0, %v7544_v61, 0.0 }
 0x635   : > { %v7549_v11 = vadd.f32 %v3925_v60, %v3924_v43  ;;  %v7557_v13 = vmul.f32 0.0004, %v4105_v3  ;;  %v3935_v63 = vrot.slane %v3934_v50, 4  ;;  %v3978_v27 = vsub.f32 1.0, %v3977_v35 }
 0x636   : > { %v4109_v48 = vmul.f32 0.0004, %v4099_v28  ;;  %v3956_v8 = vsel %vm3955_vm4, %v7476_v7, %v3952_v37  ;;  %v7560_v1 = vpop.eup %5160  ;;  %vm3982_vm7 = vweird.f32 %v7495_v38  ;;  %v3985_v7 = vand.u32 2147483647, %v7465_v4 }
 0x637   : > { %5164 = vrcp.f32 %v7549_v11  ;;  %v3961_v33 = vsel %vm3958_vm5, %v3960_v51, %v3956_v8  ;;  %v4125_v54 = vpack.c.bf16 %v7557_v13, %v7557_v13  ;;  %v3936_v42 = vadd.f32 %v3935_v63, %v3934_v50 }
 0x638   : > { %v4301_v15 = vsel %vm742_vm0, %v4109_v48, 0.0  ;;  %v4119_v23 = vpack.c.bf16 %v4109_v48, %v4109_v48  ;;  %v4088_v47 = vmul.f32 %v7407_v53, %v3961_v33  ;;  %v3979_v43 = vmul.f32 %v7495_v38, %v3978_v27 }
 0x639   : > { %4302 = vadd.xlane.f32.xlu1 %v4301_v15  ;;  %v3937_v19 = vrot.slane %v3936_v42, 2  ;;  %vm3981_vm8 = vweird.f32 %v7465_v4  ;;  %v3987_v21 = vand.u32 2147483648, %v7465_v4  ;;  %v4019_v32 = vmul.f32 %v7560_v1, %v7522_v16 }
 0x63a   : > { %v7570_v5 = vpop.eup %5162  ;;  %4863 = vmatmul.msk.bf16.vlgmr.msra.gmra.mxu3 %vm1093_vm6, %v4119_v23  ;;  %4869 = vmatmul.msk.bf16.vlgmr.msra.gmra.mxu1 %vm1093_vm6, %v4125_v54  ;;  %v4098_v10 = vsub.f32 %v4088_v47, %v5594_v55  ;;  %v3980_v56 = vadd.f32 %v7495_v38, %v3979_v43  ;;  %vm3986_vm9 = vcmp.eq.f32.partialorder %v3985_v7, 8.507059e+37  ;;  %vm3983_vm10 = vmor %vm3981_vm8, %vm3982_vm7  ;;  %vm4023_vm11 = vweird.f32 %v7522_v16 }
 0x63b   : > { %v3941_v53 = vsel %vm742_vm0, %v7570_v5, 0.0  ;;  %4281 = vmatpush.bf16.msra.mxu3 %v5736_v58  ;;  %v3938_v60 = vadd.f32 %v3937_v19, %v3936_v42  ;;  %v3988_v4 = vor.u32 1.1754944e-38, %v3987_v21  ;;  %v4020_v2 = vsub.f32 1.0, %v4019_v32 }
 0x63c   : > { %v3942_v9 = vrot.slane %v3941_v53, 4  ;;  %v4108_v3 = vmul.f32 0.0004, %v4098_v10  ;;  %v3984_v28 = vsel %vm3983_vm10, %v7495_v38, %v3980_v56  ;;  %vm4024_vm12 = vweird.f32 %v7560_v1 }
 0x63d   : > { %v7585_v35 = vpop.eup %5164  ;;  %v3939_v55 = vrot.slane %v3938_v60, 1  ;;  %v3989_v50 = vsel %vm3986_vm9, %v3988_v4, %v3984_v28  ;;  %v4021_v58 = vmul.f32 %v7560_v1, %v4020_v2  ;;  %v4027_v8 = vand.u32 2147483647, %v7522_v16  ;;  %vm4025_vm13 = vmor %vm4023_vm11, %vm4024_vm12 }
 0x63e   : > { %v3943_v37 = vadd.f32 %v3942_v9, %v3941_v53  ;;  %v4298_v51 = vsel %vm742_vm0, %v4108_v3, 0.0  ;;  %v4118_v63 = vpack.c.bf16 %v4108_v3, %v4108_v3  ;;  %v4090_v48 = vmul.f32 %v7425_v12, %v3989_v50 }
 0x63f   : > { %4282 = vmatpush.bf16.msra.mxu3 %v7332_v22  ;;  %v7595_v33 = vadd.f32 %v3939_v55, %v3938_v60  ;;  %4299 = vadd.xlane.f32.xlu0 %v4298_v51  ;;  %v4022_v27 = vadd.f32 %v7560_v1, %v4021_v58  ;;  %v4029_v54 = vand.u32 2147483648, %v7522_v16  ;;  %vm4028_vm14 = vcmp.eq.f32.partialorder %v4027_v8, 8.507059e+37 }
 0x640   : > { %v3944_v38 = vrot.slane %v3943_v37, 2  ;;  %4862 = vmatmul.msk.bf16.vlgmr.msra.gmra.mxu2 %vm1093_vm6, %v4118_v63  ;;  %v4100_v42 = vsub.f32 %v4090_v48, %v5698_v46  ;;  %v4005_v22 = vmul.f32 %v7538_v36, %v7501_v29  ;;  %vm4010_vm15 = vweird.f32 %v7538_v36 }
 0x641   : > { %5166 = vrcp.f32 %v7595_v33  ;;  %v4026_v15 = vsel %vm4025_vm13, %v7560_v1, %v4022_v27  ;;  %v4030_v23 = vor.u32 1.1754944e-38, %v4029_v54  ;;  %4265 = vmatpush.bf16.msra.mxu2 %v5732_v59  ;;  %v4013_v46 = vand.u32 2147483647, %v7501_v29 }
 0x642   : > { %v3945_v12 = vadd.f32 %v3944_v38, %v3943_v37  ;;  %v4110_v47 = vmul.f32 0.0004, %v4100_v42  ;;  %v4006_v43 = vsub.f32 1.0, %v4005_v22  ;;  %v4015_v19 = vand.u32 2147483648, %v7501_v29 }
 0x643   : > { %v4031_v7 = vsel %vm4028_vm14, %v4030_v23, %v4026_v15  ;;  %v4033_v21 = vmul.f32 %v7585_v35, %v7549_v11  ;;  %v4307_v56 = vsel %vm742_vm0, %v7478_v0, 0.0  ;;  %vm4009_vm1 = vweird.f32 %v7501_v29 }
 0x644   : > { %v3946_v16 = vrot.slane %v3945_v12, 1  ;;  %v4304_v32 = vsel %vm742_vm0, %v4110_v47, 0.0  ;;  %v4120_v53 = vpack.c.bf16 %v4110_v47, %v4110_v47  ;;  %v4093_v1 = vmul.f32 %v7468_v31, %v4031_v7  ;;  %vm4011_vm3 = vmor %vm4009_vm1, %vm4010_vm15 }
 0x645   : > { %v4007_v59 = vmul.f32 %v7538_v36, %v4006_v43  ;;  %4305 = vadd.xlane.f32.xlu2 %v4304_v32  ;;  %v4034_v60 = vsub.f32 1.0, %v4033_v21  ;;  %4266 = vmatpush.bf16.msra.mxu2 %v7341_v6  ;;  %v4016_v31 = vor.u32 1.1754944e-38, %v4015_v19  ;;  %vm4038_vm2 = vweird.f32 %v7585_v35 }
 0x646   : > { %v7618_v10 = vadd.f32 %v3946_v16, %v3945_v12  ;;  %4864 = vmatmul.msk.bf16.vlgmr.msrb.gmra.mxu0 %vm1093_vm6, %v4120_v53  ;;  %v4103_v9 = vsub.f32 %v4093_v1, %v5708_v40  ;;  %v4041_v6 = vand.u32 2147483647, %v7549_v11  ;;  %v4043_v29 = vand.u32 2147483648, %v7549_v11 }
 0x647   : > { %v4008_v4 = vadd.f32 %v7538_v36, %v4007_v59  ;;  %v5167_v2 = vpop.eup %5166  ;;  %4308 = vadd.xlane.f32.xlu0 %v4307_v56  ;;  %v4035_v0 = vmul.f32 %v7585_v35, %v4034_v60  ;;  %vm4014_vm4 = vcmp.eq.f32.partialorder %v4013_v46, 8.507059e+37  ;;  %vm4037_vm5 = vweird.f32 %v7549_v11 }
 0x648   : > { %5168 = vrcp.f32 %v7618_v10  ;;  %v4113_v3 = vmul.f32 0.0004, %v4103_v9  ;;  %v4061_v28 = vmul.f32 %v5167_v2, %v7595_v33  ;;  %v4044_v50 = vor.u32 1.1754944e-38, %v4043_v29  ;;  %vm4039_vm7 = vmor %vm4037_vm5, %vm4038_vm2  ;;  %v4939_v29 = vld [vmem:[%s7672_s12 + $0x18] sm:$0xff] }
 0x649   : > { %v4012_v40 = vsel %vm4011_vm3, %v7538_v36, %v4008_v4  ;;  %v4036_v37 = vadd.f32 %v7585_v35, %v4035_v0  ;;  %vm4042_vm8 = vcmp.eq.f32.partialorder %v4041_v6, 8.507059e+37  ;;  %vm4066_vm9 = vweird.f32 %v5167_v2 }
 0x64a   : > { %v4017_v55 = vsel %vm4014_vm4, %v4016_v31, %v4012_v40  ;;  %v4313_v58 = vsel %vm742_vm0, %v4113_v3, 0.0  ;;  %v4123_v51 = vpack.c.bf16 %v4113_v3, %v4113_v3  ;;  %v4062_v48 = vsub.f32 1.0, %v4061_v28  ;;  %v4940_v28 = vld [vmem:[%s7672_s12 + $0x20] sm:$0xff] }
 0x64b   : > { %v4092_v63 = vmul.f32 %v7449_v25, %v4017_v55  ;;  %4314 = vadd.xlane.f32.xlu1 %v4313_v58  ;;  %v4040_v36 = vsel %vm4039_vm7, %v7585_v35, %v4036_v37  ;;  %v4069_v8 = vand.u32 2147483647, %v7595_v33  ;;  %v4071_v54 = vand.u32 2147483648, %v7595_v33  ;;  %v4941_v55 = vld [vmem:[%s7672_s12 + $0x28] sm:$0xff] }
 0x64c   : > { %4867 = vmatmul.msk.bf16.vlgmr.msrb.gmra.mxu3 %vm1093_vm6, %v4123_v51  ;;  %v4045_v11 = vsel %vm4042_vm8, %v4044_v50, %v4040_v36  ;;  %v4063_v27 = vmul.f32 %v5167_v2, %v4062_v48  ;;  %vm4065_vm10 = vweird.f32 %v7595_v33  ;;  %vm4079_vm14 = vweird.f32 %v7618_v10  ;;  %v4943_v48 = vld [vmem:[%s7672_s12 + $0x38] sm:$0xff] }
 0x64d   : > { %v4102_v38 = vsub.f32 %v4092_v63, %v5753_v45  ;;  %v4094_v42 = vmul.f32 %v7491_v52, %v4045_v11  ;;  %vm4067_vm11 = vmor %vm4065_vm10, %vm4066_vm9  ;;  %vm4070_vm12 = vcmp.eq.f32.partialorder %v4069_v8, 8.507059e+37  ;;  %v4072_v45 = vor.u32 1.1754944e-38, %v4071_v54  ;;  %4488 = vmatpush.bf16.xpose.msrb.mxu3 %v4939_v29  ;;  %v4942_v63 = vld [vmem:[%s7672_s12 + $0x30] sm:$0xff] }
 0x64e   : > { %v5169_v25 = vpop.eup %5168  ;;  %v4064_v12 = vadd.f32 %v5167_v2, %v4063_v27  ;;  %v4085_v52 = vand.u32 2147483648, %v7618_v10  ;;  %v4319_v9 = vsel %vm742_vm0, %v7557_v13, 0.0  ;;  %v4936_v13 = vld [vmem:[%s7672_s12] sm:$0xff] }
 0x64f   : > { %v4112_v22 = vmul.f32 0.0004, %v4102_v38  ;;  %v4075_v35 = vmul.f32 %v5169_v25, %v7618_v10  ;;  %v4104_v15 = vsub.f32 %v4094_v42, %v5787_v34  ;;  %vm4080_vm13 = vweird.f32 %v5169_v25  ;;  %4431 = vmatpush.bf16.xpose.msrb.mxu0 %v4936_v13 }
 0x650   : > { %v4068_v43 = vsel %vm4067_vm11, %v5167_v2, %v4064_v12  ;;  %v4083_v34 = vand.u32 2147483647, %v7618_v10  ;;  %vm4081_vm15 = vmor %vm4079_vm14, %vm4080_vm13  ;;  %v4086_v59 = vor.u32 1.1754944e-38, %v4085_v52  ;;  %v8058_v52 = vld [vmem:[#allocation29_spill] sm:$0xff] }
 0x651   : > { %v4310_v23 = vsel %vm742_vm0, %v4112_v22, 0.0  ;;  %v4122_v47 = vpack.c.bf16 %v4112_v22, %v4112_v22  ;;  %v4076_v46 = vsub.f32 1.0, %v4075_v35  ;;  %v4114_v16 = vmul.f32 0.0004, %v4104_v15 }
 0x652   : > { %4311 = vadd.xlane.f32.xlu2 %v4310_v23  ;;  %v4073_v7 = vsel %vm4070_vm12, %v4072_v45, %v4068_v43  ;;  %vm4084_vm1 = vcmp.eq.f32.partialorder %v4083_v34, 8.507059e+37 }
 0x653   : > { %4866 = vmatmul.msk.bf16.vlgmr.msrb.gmra.mxu2 %vm1093_vm6, %v4122_v47  ;;  %v4096_v33 = vmul.f32 %v7544_v61, %v4073_v7  ;;  %v4077_v19 = vmul.f32 %v5169_v25, %v4076_v46  ;;  %v4124_v21 = vpack.c.bf16 %v4114_v16, %v4114_v16  ;;  %v4316_v32 = vsel %vm742_vm0, %v4114_v16, 0.0  ;;  %v4944_v46 = vld [vmem:[%s7672_s12 + $0x40] sm:$0xff] }
 0x654   : > { %4317 = vadd.xlane.f32.xlu0 %v4316_v32  ;;  %v8059_v32 = vld [vmem:[#allocation25_spill] sm:$0xff] }
 0x655   : > { %v4106_v53 = vsub.f32 %v4096_v33, %v5857_v62  ;;  %v4078_v1 = vadd.f32 %v5169_v25, %v4077_v19 }
 0x656   : > { %4868 = vmatmul.msk.bf16.vlgmr.msra.gmra.mxu0 %vm1093_vm6, %v4124_v21 }
 0x657   : > { %v4116_v56 = vmul.f32 0.0004, %v4106_v53  ;;  %v4082_v60 = vsel %vm4081_vm15, %v5169_v25, %v4078_v1  ;;  %4507 = vmatpush.bf16.xpose.msra.mxu0 %v4940_v28  ;;  %v8060_v53 = vld [vmem:[#allocation28_spill] sm:$0xff]  ;;  %v8065_v28 = vld [vmem:[#allocation33_spill] sm:$0xff] }
 0x658   : > { %v4087_v61 = vsel %vm4084_vm1, %v4086_v59, %v4082_v60  ;;  %v8061_v59 = vld [vmem:[#allocation4_spill] sm:$0xff] }
 0x659   : > { %v4322_v4 = vsel %vm742_vm0, %v4116_v56, 0.0  ;;  %v4097_v31 = vmul.f32 %v7570_v5, %v4087_v61  ;;  %v4126_v2 = vpack.c.bf16 %v4116_v56, %v4116_v56  ;;  %v4938_v5 = vld [vmem:[%s7672_s12 + $0x10] sm:$0xff] }
 0x65a   : > { %4320 = vadd.xlane.f32.xlu2 %v4319_v9  ;;  %4323 = vadd.xlane.f32.xlu1 %v4322_v4  ;;  %v8062_v9 = vld [vmem:[#allocation30_spill] sm:$0xff] }
 0x65b   : > { %v4107_v62 = vsub.f32 %v4097_v31, %v5834_v44  ;;  %v4937_v44 = vld [vmem:[%s7672_s12 + $0x8] sm:$0xff]  ;;  %4469 = vmatpush.bf16.xpose.msrb.mxu2 %v4938_v5 }
 0x65c   : > { %4450 = vmatpush.bf16.xpose.msrb.mxu1 %v4937_v44 }
 0x65d   : > { %v4117_v10 = vmul.f32 0.0004, %v4107_v62  ;;  %v8063_v62 = vld [vmem:[#allocation10_spill] sm:$0xff] }
 0x65f   : > { %v4127_v0 = vpack.c.bf16 %v4117_v10, %v4117_v10  ;;  %v4325_v6 = vsel %vm742_vm0, %v4117_v10, 0.0  ;;  %vm4608_vm0 = vcmask 118784  }
 0x660   : > { %4326 = vadd.xlane.f32.xlu0 %v4325_v6 }
 0x661   : > { %4871 = vmatmul.msk.bf16.vlgmr.msra.gmra.mxu3 %vm1093_vm6, %v4127_v0  ;;  %v8064_v0 = vld [vmem:[#allocation31_spill] sm:$0xff] }
 0x662   : > { %4564 = vmatpush.bf16.xpose.msra.mxu3 %v4943_v48 }
 0x663   : > { %4870 = vmatmul.msk.bf16.vlgmr.msra.gmra.mxu2 %vm1093_vm6, %v4126_v2 }
 0x664   : > { %4526 = vmatpush.bf16.xpose.msra.mxu1 %v4941_v55  ;;  %4545 = vmatpush.bf16.xpose.msra.mxu2 %v4942_v63 }
 0x6a7   : > { %v4188_v3 = vpop.f32.mrf.mxu1 }
 0x6a8   : > { %v4291_v40 = vsub.f32 %v7269_v30, %v4188_v3 }
 0x6aa   : > { %v4341_v37 = vpack.c.bf16 %v4291_v40, %v4291_v40 }
 0x6ac   : > { %v4303_v50 = vpop.xlane.xlu1 %4302  ;;  %4489 = vmatmul.bf16.vlgmr.msrb.gmra.mxu3 %v4341_v37 }
 0x6ad   : > { %v4329_v58 = vsub.f32 %v7274_v41, %v4303_v50  ;;  %v8066_v50 = vld [vmem:[#allocation32_spill] sm:$0xff] }
 0x6af   : > { %4375 = vperm.xlu1 %4958, %v4329_v58   ;;  %v4190_v51 = vpop.f32.mrf.mxu1 }
 0x6b2   : > { %v4300_v36 = vpop.xlane.xlu0 %4299 }
 0x6b3   : > { %v4328_v8 = vsub.f32 %v7280_v49, %v4300_v36  ;;  %v4945_v49 = vld [vmem:[%s7672_s12 + $0x48] sm:$0xff] }
 0x6b5   : > { %4370 = vperm.xlu2 %4959, %v4328_v8  }
 0x6b7   : > { %v4252_v38 = vpop.f32.mrf.mxu1 }
 0x6b8   : > { %v4306_v30 = vpop.xlane.xlu2 %4305  ;;  %v4295_v27 = vsub.f32 %v7290_v57, %v4252_v38 }
 0x6b9   : > { %v4330_v11 = vsub.f32 %v7284_v26, %v4306_v30 }
 0x6ba   : > { %v4309_v54 = vpop.xlane.xlu0 %4308  ;;  %v4345_v25 = vpack.c.bf16 %v4295_v27, %v4295_v27 }
 0x6bb   : > { %v4331_v41 = vsub.f32 %v7287_v39, %v4309_v54  ;;  %4380 = vperm.xlu0 %4957, %v4330_v11  }
 0x6bc   : > { %4565 = vmatmul.bf16.vlgmr.msra.gmra.mxu3 %v4345_v25 }
 0x6bd   : > { %v4156_v42 = vpop.f32.mrf.mxu3  ;;  %4385 = vperm.xlu2 %4959, %v4331_v41  }
 0x6be   : > { %v4289_v22 = vsub.f32 %v7297_v18, %v4156_v42  ;;  %v4315_v12 = vpop.xlane.xlu1 %4314 }
 0x6bf   : > { %v4333_v35 = vsub.f32 %v7310_v24, %v4315_v12  ;;  %v4254_v45 = vpop.f32.mrf.mxu1 }
 0x6c0   : > { %v4339_v15 = vpack.c.bf16 %v4289_v22, %v4289_v22 }
 0x6c1   : > { %4395 = vperm.xlu1 %4958, %v4333_v35  }
 0x6c2   : > { %4451 = vmatmul.bf16.vlgmr.msrb.gmra.mxu1 %v4339_v15 }
 0x6c3   : > { %4602 = vmatpush.bf16.xpose.msrb.mxu1 %v4945_v49  ;;  %v4140_v26 = vpop.f32.mrf.mxu2  ;;  %v4172_v57 = vpop.f32.mrf.mxu0 }
 0x6c4   : > { %v4288_v23 = vsub.f32 %v7306_v17, %v4140_v26  ;;  %v4290_v47 = vsub.f32 %v7317_v14, %v4172_v57 }
 0x6c5   : > { %v4312_v39 = vpop.xlane.xlu2 %4311  ;;  %v4158_v43 = vpop.f32.mrf.mxu3 }
 0x6c6   : > { %v4332_v18 = vsub.f32 %v7300_v20, %v4312_v39  ;;  %v4338_v16 = vpack.c.bf16 %v4288_v23, %v4288_v23  ;;  %v4340_v7 = vpack.c.bf16 %v4290_v47, %v4290_v47 }
 0x6c7   : > { %v4318_v24 = vpop.xlane.xlu0 %4317 }
 0x6c8   : > { %4390 = vperm.xlu0 %4957, %v4332_v18   ;;  %v4334_v33 = vsub.f32 %v8058_v52, %v4318_v24  ;;  %4432 = vmatmul.bf16.vlgmr.msrb.gmra.mxu0 %v4338_v16 }
 0x6c9   : > { %4470 = vmatmul.bf16.vlgmr.msrb.gmra.mxu2 %v4340_v7  ;;  %4583 = vmatpush.bf16.xpose.msrb.mxu0 %v4944_v46 }
 0x6ca   : > { %4400 = vperm.xlu2 %4959, %v4334_v33  }
 0x6cb   : > { %v4174_v19 = vpop.f32.mrf.mxu0  ;;  %v4142_v34 = vpop.f32.mrf.mxu2 }
 0x6cd   : > { %v4321_v21 = vpop.xlane.xlu2 %4320  ;;  %v4324_v17 = vpop.xlane.xlu1 %4323 }
 0x6ce   : > { %v4335_v14 = vsub.f32 %v8059_v32, %v4321_v21  ;;  %v4336_v1 = vsub.f32 %v8060_v53, %v4324_v17 }
 0x6cf   : > { %v4220_v20 = vpop.f32.mrf.mxu3 }
 0x6d0   : > { %4405 = vperm.xlu0 %4957, %v4335_v14   ;;  %4410 = vperm.xlu1 %4958, %v4336_v1   ;;  %v4293_v56 = vsub.f32 %v8061_v59, %v4220_v20 }
 0x6d2   : > { %v4343_v61 = vpack.c.bf16 %v4293_v56, %v4293_v56 }
 0x6d3   : > { %v4327_v60 = vpop.xlane.xlu0 %4326  ;;  %v4236_v31 = vpop.f32.mrf.mxu0 }
 0x6d4   : > { %v4337_v4 = vsub.f32 %v8062_v9, %v4327_v60  ;;  %v4294_v10 = vsub.f32 %v8063_v62, %v4236_v31  ;;  %4527 = vmatmul.bf16.vlgmr.msra.gmra.mxu1 %v4343_v61 }
 0x6d6   : > { %v4204_v2 = vpop.f32.mrf.mxu2  ;;  %4415 = vperm.xlu2 %4959, %v4337_v4   ;;  %v4344_v44 = vpack.c.bf16 %v4294_v10, %v4294_v10 }
 0x6d7   : > { %v4292_v6 = vsub.f32 %v8064_v0, %v4204_v2  ;;  %v4222_v13 = vpop.f32.mrf.mxu3 }
 0x6d9   : > { %v4342_v5 = vpack.c.bf16 %v4292_v6, %v4292_v6  ;;  %4546 = vmatmul.bf16.vlgmr.msra.gmra.mxu2 %v4344_v44 }
 0x6db   : > { %4508 = vmatmul.bf16.vlgmr.msra.gmra.mxu0 %v4342_v5  ;;  %v4238_v29 = vpop.f32.mrf.mxu0 }
 0x6de   : > { %v4206_v3 = vpop.f32.mrf.mxu2 }
 0x6e4   : > { %v4284_v40 = vpop.f32.mrf.mxu3 }
 0x6e5   : > { %v4297_v55 = vsub.f32 %v8065_v28, %v4284_v40 }
 0x6e6   : > { %v4268_v37 = vpop.f32.mrf.mxu2 }
 0x6e7   : > { %v4296_v58 = vsub.f32 %v8066_v50, %v4268_v37  ;;  %v4347_v51 = vpack.c.bf16 %v4297_v55, %v4297_v55 }
 0x6e9   : > { %v4346_v63 = vpack.c.bf16 %v4296_v58, %v4296_v58  ;;  %4603 = vmatmul.bf16.vlgmr.msrb.gmra.mxu1 %v4347_v51 }
 0x6eb   : > { %4584 = vmatmul.bf16.vlgmr.msrb.gmra.mxu0 %v4346_v63 }
 0x6ec   : > { %v4286_v48 = vpop.f32.mrf.mxu3 }
 0x6ee   : > { %v4270_v36 = vpop.f32.mrf.mxu2 }
 0x70f   : > { %v4371_v8 = vpop.permute.xlu2 %4370 }
 0x717   : > { %v4386_v30 = vpop.permute.xlu2 %4385 }
 0x721   : > { %v4376_v25 = vpop.permute.xlu1 %4375 }
 0x724   : > { %v4401_v33 = vpop.permute.xlu2 %4400 }
 0x72d   : > { %v4381_v27 = vpop.permute.xlu0 %4380 }
 0x72f   : > { %v4490_v38 = vpop.f32.mrf.mxu3 }
 0x730   : > { %v4491_v11 = vadd.f32 %v4490_v38, %v4386_v30  ;;  %v4416_v32 = vpop.permute.xlu2 %4415 }
 0x732   : > { %4612 = vst.msk [vmem:[%s7708_s15 + $0x18] sm:$0x1f] %vm4608_vm0, %v4491_v11 }
 0x733   : > { %v4396_v43 = vpop.permute.xlu1 %4395 }
 0x737   : > { %v4492_v54 = vpop.f32.mrf.mxu3 }
 0x73a   : > { %v4391_v41 = vpop.permute.xlu0 %4390 }
 0x73f   : > { %v4452_v42 = vpop.f32.mrf.mxu1  ;;  %v4566_v12 = vpop.f32.mrf.mxu3 }
 0x740   : > { %v4453_v22 = vadd.f32 %v4452_v42, %v4376_v25 }
 0x742   : > { %v4406_v49 = vpop.permute.xlu0 %4405  ;;  %4610 = vst.msk [vmem:[%s7708_s15 + $0x8] sm:$0x1f] %vm4608_vm0, %v4453_v22  ;;  %v4411_v1 = vpop.permute.xlu1 %4410 }
 0x743   : > { %v4567_v35 = vadd.f32 %v4566_v12, %v4406_v49 }
 0x745   : > { %4616 = vst.msk [vmem:[%s7708_s15 + $0x38] sm:$0x1f] %vm4608_vm0, %v4567_v35  ;;  %v4433_v15 = vpop.f32.mrf.mxu0 }
 0x746   : > { %v4434_v45 = vadd.f32 %v4433_v15, %v4371_v8 }
 0x747   : > { %v4454_v26 = vpop.f32.mrf.mxu1  ;;  %v4568_v57 = vpop.f32.mrf.mxu3 }
 0x748   : > { %4609 = vst.msk [vmem:[%s7708_s15] sm:$0x1f] %vm4608_vm0, %v4434_v45 }
 0x74c   : > { %v4471_v39 = vpop.f32.mrf.mxu2 }
 0x74d   : > { %v4472_v23 = vadd.f32 %v4471_v39, %v4381_v27  ;;  %v4435_v47 = vpop.f32.mrf.mxu0 }
 0x74f   : > { %4611 = vst.msk [vmem:[%s7708_s15 + $0x10] sm:$0x1f] %vm4608_vm0, %v4472_v23 }
 0x751   : > { %v4528_v18 = vpop.f32.mrf.mxu1 }
 0x752   : > { %v4529_v46 = vadd.f32 %v4528_v18, %v4396_v43 }
 0x754   : > { %v4473_v16 = vpop.f32.mrf.mxu2  ;;  %4614 = vst.msk [vmem:[%s7708_s15 + $0x28] sm:$0x1f] %vm4608_vm0, %v4529_v46 }
 0x758   : > { %v4509_v7 = vpop.f32.mrf.mxu0 }
 0x759   : > { %v4510_v24 = vadd.f32 %v4509_v7, %v4391_v41  ;;  %v4530_v52 = vpop.f32.mrf.mxu1 }
 0x75b   : > { %4613 = vst.msk [vmem:[%s7708_s15 + $0x20] sm:$0x1f] %vm4608_vm0, %v4510_v24 }
 0x75c   : > { %v4547_v19 = vpop.f32.mrf.mxu2 }
 0x75d   : > { %v4548_v34 = vadd.f32 %v4547_v19, %v4401_v33 }
 0x75f   : > { %4615 = vst.msk [vmem:[%s7708_s15 + $0x30] sm:$0x1f] %vm4608_vm0, %v4548_v34 }
 0x760   : > { %v4511_v21 = vpop.f32.mrf.mxu0 }
 0x764   : > { %v4549_v17 = vpop.f32.mrf.mxu2 }
 0x766   : > { %v4604_v14 = vpop.f32.mrf.mxu1 }
 0x767   : > { %v4605_v53 = vadd.f32 %v4604_v14, %v4416_v32 }
 0x768   : > { %v4585_v20 = vpop.f32.mrf.mxu0 }
 0x769   : > { %v4586_v59 = vadd.f32 %v4585_v20, %v4411_v1  ;;  %4618 = vst.msk [vmem:[%s7708_s15 + $0x48] sm:$0x1f] %vm4608_vm0, %v4605_v53 }
 0x76b   : > { %4617 = vst.msk [vmem:[%s7708_s15 + $0x40] sm:$0x1f] %vm4608_vm0, %v4586_v59 }
 0x76e   : > { %v4606_v56 = vpop.f32.mrf.mxu1 }
 0x770   : > { %v4587_v60 = vpop.f32.mrf.mxu0 }
 0x771 PF: > { %s15_s18 = sadd.s32 1, %s5236_s18  }
 0x772   : > { %p12_p4 = scmp.ge.s32.totalorder %s15_s18, 4  }
 0x774   :  { %14 = sbr.rel (!%p12_p4) target bundleno = 1 (0x1), region = 82 }

</bundles_post_ra>
